<compile_context>
chip_gen: v7x
topology: tpu7x:2x2x1
jax: 0.10.0
libtpu: 0.0.40
codegen_flags: <defaults>
</compile_context>

<pallas_src>
import functools
import math

import numpy as np

import jax
import jax.numpy as jnp
from jax.experimental import pallas as pl
from jax.experimental.pallas import tpu as pltpu

_BN_EPS = 0.0      # BatchNorm2d(C, False) -> eps == False == 0.0

# Fixed geometry implied by the module (T = 120 time steps, 61 electrodes).
_T = 120           # conv1 output "height"
_W_IN = 61         # conv1 kernel width == input width
_W_C2 = 122        # conv2 output width   (153 - 32 + 1, pads folded into Toeplitz)
_W_P2 = 31         # pool2 output width   ((122 - 2)//4 + 1)
_W_C3 = 33         # conv3 output width   (34 - 2 + 1, pads folded into Toeplitz)


# ---------------------------------------------------------------------------
# The single fused kernel: everything value-level, one output store, no scratch.
# ---------------------------------------------------------------------------
def _fused_kernel(xt_ref, w1t_ref, pc1_ref,
                  t2_ref, b2row_ref, r2_ref, rt2_ref, pc2_ref, s2_ref, rs2_ref,
                  t3w_ref, shifts_ref, b3row_ref, r3_ref, rt3_ref, pc3_ref,
                  s3_ref, rs3_ref, out_ref, *, batch):
    f32 = jnp.float32
    bf16 = jnp.bfloat16

    def elu(z):
        return jnp.where(z > 0.0, z, jnp.exp(z) - 1.0)

    # ----- stage 1: conv1 (1x61) + bias + ELU + BN1 (channels on sublanes, B*T lanes)
    z1 = jnp.dot(w1t_ref[...], xt_ref[...], preferred_element_type=f32)   # (16, B*120)
    a1 = elu(z1 + pc1_ref[:, 0:1])
    m1 = jnp.mean(a1, axis=1, keepdims=True)
    v1 = jnp.mean((a1 - m1) ** 2, axis=1, keepdims=True)                  # biased var
    y1 = (a1 - m1) * jax.lax.rsqrt(v1 + _BN_EPS) * pc1_ref[:, 1:2] + pc1_ref[:, 2:3]
    # TODO(synk): F.dropout(0.25) in training mode (mask + rescale) -> identity here.

    # ----- permute(0,3,1,2) + conv2 LHS build: pure value slicing/concat (no ref stores)
    # Row di=0 block = conv1 channels, di=1 block = channels shifted up with a zero row
    # per batch (the ZeroPad2d bottom row); left/right 16/17 zero-pad is folded into t2.
    zrow = jnp.zeros((1, _T), f32)
    pieces = []
    for b in range(batch):
        yb = y1[:, b * _T:(b + 1) * _T]                                   # (16, 120)
        yb_dn = jnp.concatenate([y1[1:16, b * _T:(b + 1) * _T], zrow], axis=0)
        pieces.append(jnp.concatenate([yb, yb_dn], axis=1))               # (16, 240)
    lhs2 = jnp.concatenate(pieces, axis=0).astype(bf16)                   # (B*16, 240)

    # ----- stage 2: conv2 (2x32) as one banded matmul + bias row + ELU + BN2
    acc2 = jnp.dot(lhs2, t2_ref[...], preferred_element_type=f32) + b2row_ref[...]
    a2 = elu(acc2)                                                        # (B*16, 488)
    n2 = float(batch * 16 * _W_C2)
    sum2 = jnp.sum(jnp.dot(a2, r2_ref[...], preferred_element_type=f32),
                   axis=0, keepdims=True)                                 # (1, 4)
    sq2 = jnp.sum(jnp.dot(a2 * a2, r2_ref[...], preferred_element_type=f32),
                  axis=0, keepdims=True)
    mean2 = sum2 / n2
    var2 = jnp.maximum(sq2 / n2 - mean2 * mean2, 0.0)                     # biased var
    sc2 = pc2_ref[0:1, :] * jax.lax.rsqrt(var2 + _BN_EPS)                 # gamma / std
    sh2 = pc2_ref[1:2, :] - mean2 * sc2                                   # beta - mean*sc
    st2 = jnp.dot(jnp.concatenate([sc2, sh2], axis=0), rt2_ref[...],
                  preferred_element_type=f32)                             # (2, 488)
    bn2 = a2 * st2[0:1, :] + st2[1:2, :]
    # TODO(synk): dropout -> identity.

    # ----- MaxPool2d(2, stride 4): pairwise maxima + selection matmuls (lane compaction)
    cmax = jnp.maximum(bn2[:, :-1], bn2[:, 1:]).astype(bf16)              # (B*16, 487)
    csel = jnp.dot(cmax, s2_ref[...], preferred_element_type=f32)         # (B*16, 124)
    rpair = jnp.maximum(csel[:-1, :], csel[1:, :])                        # (B*16-1, 124)
    pooled2 = jnp.dot(rs2_ref[...], rpair, preferred_element_type=f32)    # (B*4, 124)

    # ----- stage 3: conv3 (4->4 ch, 8x2) = one wide matmul + 7 tiny row-shift matmuls
    u = jnp.dot(pooled2.astype(bf16), t3w_ref[...],
                preferred_element_type=f32)                               # (B*4, 7*132)
    nc3 = 4 * _W_C3                                                       # 132
    acc3 = b3row_ref[...]                                                 # (1, 132)
    for k in range(7):                                                    # di = k + 1
        acc3 = acc3 + jnp.dot(shifts_ref[k], u[:, k * nc3:(k + 1) * nc3],
                              preferred_element_type=f32)                 # (B*4, 132)
    a3 = elu(acc3)
    n3 = float(batch * 4 * _W_C3)
    sum3 = jnp.sum(jnp.dot(a3, r3_ref[...], preferred_element_type=f32),
                   axis=0, keepdims=True)
    sq3 = jnp.sum(jnp.dot(a3 * a3, r3_ref[...], preferred_element_type=f32),
                  axis=0, keepdims=True)
    mean3 = sum3 / n3
    var3 = jnp.maximum(sq3 / n3 - mean3 * mean3, 0.0)
    sc3 = pc3_ref[0:1, :] * jax.lax.rsqrt(var3 + _BN_EPS)
    sh3 = pc3_ref[1:2, :] - mean3 * sc3
    st3 = jnp.dot(jnp.concatenate([sc3, sh3], axis=0), rt3_ref[...],
                  preferred_element_type=f32)                             # (2, 132)
    bn3 = a3 * st3[0:1, :] + st3[1:2, :]                                  # (B*4, 132)

    # ----- MaxPool2d((2,4)), kernel == stride; single lane-dense output store
    c1 = jnp.maximum(bn3[:, :-1], bn3[:, 1:])                             # (B*4, 131)
    c4 = jnp.maximum(c1[:, :-2], c1[:, 2:])                               # (B*4, 129)
    csel3 = jnp.dot(c4, s3_ref[...], preferred_element_type=f32)          # (B*4, 32)
    rpair3 = jnp.maximum(csel3[:-1, :], csel3[1:, :])                     # (B*4-1, 32)
    out_ref[...] = jnp.dot(rs3_ref[...], rpair3,
                           preferred_element_type=f32)                    # (B*2, 32)


# ---------------------------------------------------------------------------
# pallas_call wrapper (gridless: everything resident in VMEM, one invocation)
# ---------------------------------------------------------------------------
def com_eegnet_forward(x, kp):
    b, cin, h, w = x.shape
    assert cin == 1 and h == _T and w == _W_IN, (cin, h, w)
    xt = x.reshape(b * h, w).T                       # (61, B*120)

    vmem = pl.BlockSpec(memory_space=pltpu.MemorySpace.VMEM)
    out = pl.pallas_call(
        functools.partial(_fused_kernel, batch=b),
        out_shape=jax.ShapeDtypeStruct((b * 2, 32), jnp.float32),
        in_specs=[vmem] * 18,
        out_specs=vmem,
    )(xt, kp['w1t'], kp['pc1'],
      kp['t2'], kp['b2row'], kp['r2'], kp['rt2'], kp['pc2'], kp['s2'], kp['rs2'],
      kp['t3w'], kp['shifts'], kp['b3row'], kp['r3'], kp['rt3'], kp['pc3'],
      kp['s3'], kp['rs3'])
    # rows = (batch, pooled height), cols = (out channel, pooled width) -> NCHW (B,4,2,8)
    return out.reshape(b, 2, 4, 8).transpose(0, 2, 1, 3)


# ---------------------------------------------------------------------------
# Parameters: PyTorch-shaped raw weights + host-side preprocessing
# ---------------------------------------------------------------------------
def init_raw_params(key):
    ks = jax.random.split(key, 6)

    def uinit(k, shape, fan_in):
        bound = 1.0 / math.sqrt(fan_in)
        return jax.random.uniform(k, shape, jnp.float32, -bound, bound)

    return dict(
        w1=uinit(ks[0], (16, 1, 1, 61), 61), b1=uinit(ks[1], (16,), 61),
        w2=uinit(ks[2], (4, 1, 2, 32), 64),  b2=uinit(ks[3], (4,), 64),
        w3=uinit(ks[4], (4, 4, 8, 2), 64),   b3=uinit(ks[5], (4,), 64),
        g1=jnp.ones((16,), jnp.float32), be1=jnp.zeros((16,), jnp.float32),
        g2=jnp.ones((4,), jnp.float32),  be2=jnp.zeros((4,), jnp.float32),
        g3=jnp.ones((4,), jnp.float32),  be3=jnp.zeros((4,), jnp.float32),
    )
    # fc1 exists in __init__ but is unused in forward(), so it is omitted.


def prepare_kernel_params(raw, batch):
    """Banded conv matrices with all zero-padding folded in, plus selection/reduction
    matrices and packed per-channel params. Big matrices are bf16 (MXU), rest f32."""
    w2 = np.asarray(raw['w2'], np.float32)           # (4, 1, 2, 32)
    w3 = np.asarray(raw['w3'], np.float32)           # (4, 4, 8, 2)
    b2 = np.asarray(raw['b2'], np.float32)
    b3 = np.asarray(raw['b3'], np.float32)

    # conv2 Toeplitz (ZeroPad2d((16,17,0,1)) width-pad folded; bottom row-pad handled by
    # the zero row appended to the di=1 LHS block):
    #   T2[di*120 + t, o*122 + j] = w2[o, 0, di, t + 16 - j]   when 0 <= t+16-j < 32
    t2 = np.zeros((2 * _T, 4 * _W_C2), np.float32)
    j2 = np.arange(_W_C2)
    for di in range(2):
        for o in range(4):
            for dj in range(32):
                t = j2 + dj - 16
                m = (t >= 0) & (t < _T)
                t2[di * _T + t[m], o * _W_C2 + j2[m]] = w2[o, 0, di, dj]

    # conv3 wide Toeplitz (ZeroPad2d((2,1,4,3)) width-pad folded; di=0 taps only padded
    # zeros and is dropped; height-pad handled by the zero rows of the shift matrices):
    #   T3w[c*31 + q, (di-1)*132 + oc*33 + j] = w3[oc, c, di, q + 2 - j], q+2-j in {0,1}
    t3w = np.zeros((4 * _W_P2, 7 * 4 * _W_C3), np.float32)
    j3 = np.arange(_W_C3)
    for di in range(1, 8):
        for oc in range(4):
            for c in range(4):
                for dj in range(2):
                    q = j3 + dj - 2
                    m = (q >= 0) & (q < _W_P2)
                    t3w[c * _W_P2 + q[m],
                        (di - 1) * 4 * _W_C3 + oc * _W_C3 + j3[m]] = w3[oc, c, di, dj]

    # Per-di row-shift matrices: Shift[di-1][b*4+i, b*4+p] = 1  iff  p == i + di - 4
    shifts = np.zeros((7, batch * 4, batch * 4), np.float32)
    for di in range(1, 8):
        for b in range(batch):
            for i in range(4):
                p = i + di - 4
                if 0 <= p <= 3:
                    shifts[di - 1, b * 4 + i, b * 4 + p] = 1.0

    # Pool2 column selection (block-diagonal): picks col o*122 + 4q -> o*31 + q
    s2 = np.zeros((4 * _W_C2 - 1, 4 * _W_P2), np.float32)
    for o in range(4):
        for q in range(_W_P2):
            s2[o * _W_C2 + 4 * q, o * _W_P2 + q] = 1.0
    # Pool2 row selection: picks row b*16 + 4p -> b*4 + p
    rs2 = np.zeros((batch * 4, batch * 16 - 1), np.float32)
    for b in range(batch):
        for p in range(4):
            rs2[b * 4 + p, b * 16 + 4 * p] = 1.0

    # Pool3 column selection: picks col oc*33 + 4q -> oc*8 + q
    s3 = np.zeros((4 * _W_C3 - 3, 32), np.float32)
    for oc in range(4):
        for q in range(8):
            s3[oc * _W_C3 + 4 * q, oc * 8 + q] = 1.0
    # Pool3 row selection: picks row b*4 + 2p -> b*2 + p
    rs3 = np.zeros((batch * 2, batch * 4 - 1), np.float32)
    for b in range(batch):
        for p in range(2):
            rs3[b * 2 + p, b * 4 + 2 * p] = 1.0

    # One-hot per-channel reduction / broadcast matrices for BN2 / BN3.
    r2 = np.zeros((4 * _W_C2, 4), np.float32)
    r3 = np.zeros((4 * _W_C3, 4), np.float32)
    for o in range(4):
        r2[o * _W_C2:(o + 1) * _W_C2, o] = 1.0
        r3[o * _W_C3:(o + 1) * _W_C3, o] = 1.0

    b2row = np.repeat(b2, _W_C2)[None, :]            # (1, 488)
    b3row = np.repeat(b3, _W_C3)[None, :]            # (1, 132)

    return dict(
        w1t=raw['w1'].reshape(16, 61),                                    # (16, 61) f32
        pc1=jnp.stack([raw['b1'], raw['g1'], raw['be1']], axis=1),        # (16, 3)
        t2=jnp.asarray(t2, jnp.bfloat16),                                 # (240, 488)
        b2row=jnp.asarray(b2row),                                         # (1, 488)
        r2=jnp.asarray(r2), rt2=jnp.asarray(r2.T.copy()),                 # (488,4)/(4,488)
        pc2=jnp.stack([raw['g2'], raw['be2']], axis=0),                   # (2, 4)
        s2=jnp.asarray(s2, jnp.bfloat16),                                 # (487, 124)
        rs2=jnp.asarray(rs2),                                             # (B*4, B*16-1)
        t3w=jnp.asarray(t3w, jnp.bfloat16),                               # (124, 924)
        shifts=jnp.asarray(shifts),                                       # (7, B*4, B*4)
        b3row=jnp.asarray(b3row),                                         # (1, 132)
        r3=jnp.asarray(r3), rt3=jnp.asarray(r3.T.copy()),                 # (132,4)/(4,132)
        pc3=jnp.stack([raw['g3'], raw['be3']], axis=0),                   # (2, 4)
        s3=jnp.asarray(s3),                                               # (129, 32) f32
        rs3=jnp.asarray(rs3),                                             # (B*2, B*4-1)
    )


# ---------------------------------------------------------------------------
# Pure-JAX reference (independent of the kernel's Toeplitz / pooling tricks)
# ---------------------------------------------------------------------------
def _elu_ref(x):
    return jnp.where(x > 0.0, x, jnp.exp(x) - 1.0)


def _bn_ref(x, gamma, beta):
    mean = jnp.mean(x, axis=(0, 2, 3), keepdims=True)
    var = jnp.mean((x - mean) ** 2, axis=(0, 2, 3), keepdims=True)
    xn = (x - mean) * jax.lax.rsqrt(var + _BN_EPS)
    return xn * gamma[None, :, None, None] + beta[None, :, None, None]


def _conv_ref(x, w, b):
    y = jax.lax.conv_general_dilated(
        x, w, window_strides=(1, 1), padding='VALID',
        dimension_numbers=('NCHW', 'OIHW', 'NCHW'),
        precision=jax.lax.Precision.HIGHEST)
    return y + b[None, :, None, None]


def _maxpool_ref(x, window, strides):
    return jax.lax.reduce_window(
        x, -jnp.inf, jax.lax.max,
        window_dimensions=(1, 1) + window, window_strides=(1, 1) + strides,
        padding='VALID')


def reference_forward(x, raw):
    y = _bn_ref(_elu_ref(_conv_ref(x, raw['w1'], raw['b1'])), raw['g1'], raw['be1'])
    y = jnp.transpose(y, (0, 3, 1, 2))
    y = jnp.pad(y, ((0, 0), (0, 0), (0, 1), (16, 17)))
    y = _bn_ref(_elu_ref(_conv_ref(y, raw['w2'], raw['b2'])), raw['g2'], raw['be2'])
    y = _maxpool_ref(y, (2, 2), (4, 4))
    y = jnp.pad(y, ((0, 0), (0, 0), (4, 3), (2, 1)))
    y = _bn_ref(_elu_ref(_conv_ref(y, raw['w3'], raw['b3'])), raw['g3'], raw['be3'])
    y = _maxpool_ref(y, (2, 4), (2, 4))
    return y


if __name__ == "__main__":
    key = jax.random.PRNGKey(0)
    kx, kp_key = jax.random.split(key)
    # Input implied by the module: NCHW (B, 1, T=120, 61); width must be 61 so conv1
    # collapses the last dim (permuted channel dim becomes 1 = conv2's in_channels).
    B = 2
    x = jax.random.normal(kx, (B, 1, _T, _W_IN), dtype=jnp.float32)

    raw = init_raw_params(kp_key)
    kparams = prepare_kernel_params(raw, B)

    fwd = jax.jit(com_eegnet_forward)
    out = fwd(x, kparams)
    jax.block_until_ready(out)

    assert out.shape == (B, 4, 2, 8), out.shape
    assert bool(jnp.all(jnp.isfinite(out)))

    ref = reference_forward(x, raw)
    max_err = float(jnp.max(jnp.abs(out - ref)))
    assert max_err < 0.1, f"mismatch vs reference: {max_err}"

    print("KERNEL_OK")
</pallas_src>

<mosaic_0001>
module attributes {stable_mosaic.version = 11 : i64} {
  func.func @_fused_kernel(%arg0: memref<61x240xf32, #tpu.memory_space<vmem>>, %arg1: memref<16x61xf32, #tpu.memory_space<vmem>>, %arg2: memref<16x3xf32, #tpu.memory_space<vmem>>, %arg3: memref<240x488xbf16, #tpu.memory_space<vmem>>, %arg4: memref<1x488xf32, #tpu.memory_space<vmem>>, %arg5: memref<488x4xf32, #tpu.memory_space<vmem>>, %arg6: memref<4x488xf32, #tpu.memory_space<vmem>>, %arg7: memref<2x4xf32, #tpu.memory_space<vmem>>, %arg8: memref<487x124xbf16, #tpu.memory_space<vmem>>, %arg9: memref<8x31xf32, #tpu.memory_space<vmem>>, %arg10: memref<124x924xbf16, #tpu.memory_space<vmem>>, %arg11: memref<7x8x8xf32, #tpu.memory_space<vmem>>, %arg12: memref<1x132xf32, #tpu.memory_space<vmem>>, %arg13: memref<132x4xf32, #tpu.memory_space<vmem>>, %arg14: memref<4x132xf32, #tpu.memory_space<vmem>>, %arg15: memref<2x4xf32, #tpu.memory_space<vmem>>, %arg16: memref<129x32xf32, #tpu.memory_space<vmem>>, %arg17: memref<4x7xf32, #tpu.memory_space<vmem>>, %arg18: memref<4x32xf32, #tpu.memory_space<vmem>>) attributes {dimension_semantics = [], scalar_prefetch = 0 : i64, scratch_operands = 0 : i64, tpu.core_type = #tpu.core_type<tc>} {
    %c0 = arith.constant 0 : index
    %c0_0 = arith.constant 0 : index
    %0 = vector.load %arg1[%c0, %c0_0] : memref<16x61xf32, #tpu.memory_space<vmem>>, vector<16x61xf32>
    %c0_1 = arith.constant 0 : index
    %c0_2 = arith.constant 0 : index
    %1 = vector.load %arg0[%c0_1, %c0_2] : memref<61x240xf32, #tpu.memory_space<vmem>>, vector<61x240xf32>
    %cst = arith.constant dense<0.000000e+00> : vector<16x240xf32>
    %2 = tpu.matmul %0, %1, %cst {dimension_numbers = #tpu.dot_dimension_numbers<[1], [0], [0], [1], [0, 0, 1, 1], [], []>} : vector<16x61xf32>, vector<61x240xf32>, vector<16x240xf32> -> vector<16x240xf32>
    %c0_3 = arith.constant 0 : index
    %c0_4 = arith.constant 0 : index
    %3 = vector.load %arg2[%c0_3, %c0_4] : memref<16x3xf32, #tpu.memory_space<vmem>>, vector<16x1xf32>
    %4 = vector.broadcast %3 : vector<16x1xf32> to vector<16x240xf32>
    %5 = arith.addf %2, %4 : vector<16x240xf32>
    %cst_5 = arith.constant 0.000000e+00 : f32
    %6 = vector.broadcast %cst_5 : f32 to vector<16x240xf32>
    %7 = arith.cmpf ogt, %5, %6 : vector<16x240xf32>
    %8 = math.exp %5 : vector<16x240xf32>
    %cst_6 = arith.constant 1.000000e+00 : f32
    %9 = vector.broadcast %cst_6 : f32 to vector<16x240xf32>
    %10 = arith.subf %8, %9 : vector<16x240xf32>
    %11 = arith.select %7, %5, %10 : vector<16x240xi1>, vector<16x240xf32>
    %cst_7 = arith.constant dense<0.000000e+00> : vector<16xf32>
    %12 = vector.multi_reduction <add>, %11, %cst_7 [1] : vector<16x240xf32> to vector<16xf32>
    %13 = vector.shape_cast %12 : vector<16xf32> to vector<16x1xf32>
    %cst_8 = arith.constant 2.400000e+02 : f32
    %14 = vector.broadcast %cst_8 : f32 to vector<16x1xf32>
    %15 = arith.divf %13, %14 : vector<16x1xf32>
    %16 = vector.broadcast %15 : vector<16x1xf32> to vector<16x240xf32>
    %17 = arith.subf %11, %16 : vector<16x240xf32>
    %18 = arith.mulf %17, %17 : vector<16x240xf32>
    %cst_9 = arith.constant dense<0.000000e+00> : vector<16xf32>
    %19 = vector.multi_reduction <add>, %18, %cst_9 [1] : vector<16x240xf32> to vector<16xf32>
    %20 = vector.shape_cast %19 : vector<16xf32> to vector<16x1xf32>
    %cst_10 = arith.constant 2.400000e+02 : f32
    %21 = vector.broadcast %cst_10 : f32 to vector<16x1xf32>
    %22 = arith.divf %20, %21 : vector<16x1xf32>
    %23 = vector.broadcast %15 : vector<16x1xf32> to vector<16x240xf32>
    %24 = arith.subf %11, %23 : vector<16x240xf32>
    %cst_11 = arith.constant 0.000000e+00 : f32
    %25 = vector.broadcast %cst_11 : f32 to vector<16x1xf32>
    %26 = arith.addf %22, %25 : vector<16x1xf32>
    %27 = math.rsqrt %26 : vector<16x1xf32>
    %28 = vector.broadcast %27 : vector<16x1xf32> to vector<16x240xf32>
    %29 = arith.mulf %24, %28 : vector<16x240xf32>
    %c0_12 = arith.constant 0 : index
    %c1 = arith.constant 1 : index
    %30 = vector.load %arg2[%c0_12, %c1] : memref<16x3xf32, #tpu.memory_space<vmem>>, vector<16x1xf32>
    %31 = vector.broadcast %30 : vector<16x1xf32> to vector<16x240xf32>
    %32 = arith.mulf %29, %31 : vector<16x240xf32>
    %c0_13 = arith.constant 0 : index
    %c2 = arith.constant 2 : index
    %33 = vector.load %arg2[%c0_13, %c2] : memref<16x3xf32, #tpu.memory_space<vmem>>, vector<16x1xf32>
    %34 = vector.broadcast %33 : vector<16x1xf32> to vector<16x240xf32>
    %35 = arith.addf %32, %34 : vector<16x240xf32>
    %cst_14 = arith.constant 0.000000e+00 : f32
    %36 = vector.broadcast %cst_14 : f32 to vector<1x120xf32>
    %37 = vector.extract_strided_slice %35 {offsets = [0, 0], sizes = [16, 120], strides = [1, 1]} : vector<16x240xf32> to vector<16x120xf32>
    %38 = vector.extract_strided_slice %35 {offsets = [1, 0], sizes = [15, 120], strides = [1, 1]} : vector<16x240xf32> to vector<15x120xf32>
    %39 = tpu.concatenate %38, %36 in 0 : vector<15x120xf32>, vector<1x120xf32> -> vector<16x120xf32>
    %40 = tpu.concatenate %37, %39 in 1 : vector<16x120xf32>, vector<16x120xf32> -> vector<16x240xf32>
    %41 = vector.extract_strided_slice %35 {offsets = [0, 120], sizes = [16, 120], strides = [1, 1]} : vector<16x240xf32> to vector<16x120xf32>
    %42 = vector.extract_strided_slice %35 {offsets = [1, 120], sizes = [15, 120], strides = [1, 1]} : vector<16x240xf32> to vector<15x120xf32>
    %43 = tpu.concatenate %42, %36 in 0 : vector<15x120xf32>, vector<1x120xf32> -> vector<16x120xf32>
    %44 = tpu.concatenate %41, %43 in 1 : vector<16x120xf32>, vector<16x120xf32> -> vector<16x240xf32>
    %45 = tpu.concatenate %40, %44 in 0 : vector<16x240xf32>, vector<16x240xf32> -> vector<32x240xf32>
    %46 = arith.truncf %45 : vector<32x240xf32> to vector<32x240xbf16>
    %c0_15 = arith.constant 0 : index
    %c0_16 = arith.constant 0 : index
    %47 = vector.load %arg3[%c0_15, %c0_16] : memref<240x488xbf16, #tpu.memory_space<vmem>>, vector<240x488xbf16>
    %cst_17 = arith.constant dense<0.000000e+00> : vector<32x488xf32>
    %48 = tpu.matmul %46, %47, %cst_17 {dimension_numbers = #tpu.dot_dimension_numbers<[1], [0], [0], [1], [0, 0, 1, 1], [], []>} : vector<32x240xbf16>, vector<240x488xbf16>, vector<32x488xf32> -> vector<32x488xf32>
    %c0_18 = arith.constant 0 : index
    %c0_19 = arith.constant 0 : index
    %49 = vector.load %arg4[%c0_18, %c0_19] : memref<1x488xf32, #tpu.memory_space<vmem>>, vector<1x488xf32>
    %50 = vector.broadcast %49 : vector<1x488xf32> to vector<32x488xf32>
    %51 = arith.addf %48, %50 : vector<32x488xf32>
    %cst_20 = arith.constant 0.000000e+00 : f32
    %52 = vector.broadcast %cst_20 : f32 to vector<32x488xf32>
    %53 = arith.cmpf ogt, %51, %52 : vector<32x488xf32>
    %54 = math.exp %51 : vector<32x488xf32>
    %cst_21 = arith.constant 1.000000e+00 : f32
    %55 = vector.broadcast %cst_21 : f32 to vector<32x488xf32>
    %56 = arith.subf %54, %55 : vector<32x488xf32>
    %57 = arith.select %53, %51, %56 : vector<32x488xi1>, vector<32x488xf32>
    %c0_22 = arith.constant 0 : index
    %c0_23 = arith.constant 0 : index
    %58 = vector.load %arg5[%c0_22, %c0_23] : memref<488x4xf32, #tpu.memory_space<vmem>>, vector<488x4xf32>
    %cst_24 = arith.constant dense<0.000000e+00> : vector<32x4xf32>
    %59 = tpu.matmul %57, %58, %cst_24 {dimension_numbers = #tpu.dot_dimension_numbers<[1], [0], [0], [1], [0, 0, 1, 1], [], []>} : vector<32x488xf32>, vector<488x4xf32>, vector<32x4xf32> -> vector<32x4xf32>
    %cst_25 = arith.constant dense<0.000000e+00> : vector<4xf32>
    %60 = vector.multi_reduction <add>, %59, %cst_25 [0] : vector<32x4xf32> to vector<4xf32>
    %61 = vector.shape_cast %60 : vector<4xf32> to vector<1x4xf32>
    %62 = arith.mulf %57, %57 : vector<32x488xf32>
    %c0_26 = arith.constant 0 : index
    %c0_27 = arith.constant 0 : index
    %63 = vector.load %arg5[%c0_26, %c0_27] : memref<488x4xf32, #tpu.memory_space<vmem>>, vector<488x4xf32>
    %cst_28 = arith.constant dense<0.000000e+00> : vector<32x4xf32>
    %64 = tpu.matmul %62, %63, %cst_28 {dimension_numbers = #tpu.dot_dimension_numbers<[1], [0], [0], [1], [0, 0, 1, 1], [], []>} : vector<32x488xf32>, vector<488x4xf32>, vector<32x4xf32> -> vector<32x4xf32>
    %cst_29 = arith.constant dense<0.000000e+00> : vector<4xf32>
    %65 = vector.multi_reduction <add>, %64, %cst_29 [0] : vector<32x4xf32> to vector<4xf32>
    %66 = vector.shape_cast %65 : vector<4xf32> to vector<1x4xf32>
    %cst_30 = arith.constant 3.904000e+03 : f32
    %67 = vector.broadcast %cst_30 : f32 to vector<1x4xf32>
    %68 = arith.divf %61, %67 : vector<1x4xf32>
    %cst_31 = arith.constant 3.904000e+03 : f32
    %69 = vector.broadcast %cst_31 : f32 to vector<1x4xf32>
    %70 = arith.divf %66, %69 : vector<1x4xf32>
    %71 = arith.mulf %68, %68 : vector<1x4xf32>
    %72 = arith.subf %70, %71 : vector<1x4xf32>
    %cst_32 = arith.constant 0.000000e+00 : f32
    %73 = vector.broadcast %cst_32 : f32 to vector<1x4xf32>
    %74 = arith.maximumf %72, %73 : vector<1x4xf32>
    %c0_33 = arith.constant 0 : index
    %c0_34 = arith.constant 0 : index
    %75 = vector.load %arg7[%c0_33, %c0_34] : memref<2x4xf32, #tpu.memory_space<vmem>>, vector<1x4xf32>
    %cst_35 = arith.constant 0.000000e+00 : f32
    %76 = vector.broadcast %cst_35 : f32 to vector<1x4xf32>
    %77 = arith.addf %74, %76 : vector<1x4xf32>
    %78 = math.rsqrt %77 : vector<1x4xf32>
    %79 = arith.mulf %75, %78 : vector<1x4xf32>
    %c1_36 = arith.constant 1 : index
    %c0_37 = arith.constant 0 : index
    %80 = vector.load %arg7[%c1_36, %c0_37] : memref<2x4xf32, #tpu.memory_space<vmem>>, vector<1x4xf32>
    %81 = arith.mulf %68, %79 : vector<1x4xf32>
    %82 = arith.subf %80, %81 : vector<1x4xf32>
    %83 = tpu.concatenate %79, %82 in 0 : vector<1x4xf32>, vector<1x4xf32> -> vector<2x4xf32>
    %c0_38 = arith.constant 0 : index
    %c0_39 = arith.constant 0 : index
    %84 = vector.load %arg6[%c0_38, %c0_39] : memref<4x488xf32, #tpu.memory_space<vmem>>, vector<4x488xf32>
    %cst_40 = arith.constant dense<0.000000e+00> : vector<2x488xf32>
    %85 = tpu.matmul %83, %84, %cst_40 {dimension_numbers = #tpu.dot_dimension_numbers<[1], [0], [0], [1], [0, 0, 1, 1], [], []>} : vector<2x4xf32>, vector<4x488xf32>, vector<2x488xf32> -> vector<2x488xf32>
    %86 = vector.extract_strided_slice %85 {offsets = [0, 0], sizes = [1, 488], strides = [1, 1]} : vector<2x488xf32> to vector<1x488xf32>
    %87 = vector.broadcast %86 : vector<1x488xf32> to vector<32x488xf32>
    %88 = arith.mulf %57, %87 : vector<32x488xf32>
    %89 = vector.extract_strided_slice %85 {offsets = [1, 0], sizes = [1, 488], strides = [1, 1]} : vector<2x488xf32> to vector<1x488xf32>
    %90 = vector.broadcast %89 : vector<1x488xf32> to vector<32x488xf32>
    %91 = arith.addf %88, %90 : vector<32x488xf32>
    %92 = vector.extract_strided_slice %91 {offsets = [0, 0], sizes = [32, 487], strides = [1, 1]} : vector<32x488xf32> to vector<32x487xf32>
    %93 = vector.extract_strided_slice %91 {offsets = [0, 1], sizes = [32, 487], strides = [1, 1]} : vector<32x488xf32> to vector<32x487xf32>
    %94 = arith.maximumf %92, %93 : vector<32x487xf32>
    %95 = arith.truncf %94 : vector<32x487xf32> to vector<32x487xbf16>
    %c0_41 = arith.constant 0 : index
    %c0_42 = arith.constant 0 : index
    %96 = vector.load %arg8[%c0_41, %c0_42] : memref<487x124xbf16, #tpu.memory_space<vmem>>, vector<487x124xbf16>
    %cst_43 = arith.constant dense<0.000000e+00> : vector<32x124xf32>
    %97 = tpu.matmul %95, %96, %cst_43 {dimension_numbers = #tpu.dot_dimension_numbers<[1], [0], [0], [1], [0, 0, 1, 1], [], []>} : vector<32x487xbf16>, vector<487x124xbf16>, vector<32x124xf32> -> vector<32x124xf32>
    %98 = vector.extract_strided_slice %97 {offsets = [0, 0], sizes = [31, 124], strides = [1, 1]} : vector<32x124xf32> to vector<31x124xf32>
    %99 = vector.extract_strided_slice %97 {offsets = [1, 0], sizes = [31, 124], strides = [1, 1]} : vector<32x124xf32> to vector<31x124xf32>
    %100 = arith.maximumf %98, %99 : vector<31x124xf32>
    %c0_44 = arith.constant 0 : index
    %c0_45 = arith.constant 0 : index
    %101 = vector.load %arg9[%c0_44, %c0_45] : memref<8x31xf32, #tpu.memory_space<vmem>>, vector<8x31xf32>
    %cst_46 = arith.constant dense<0.000000e+00> : vector<8x124xf32>
    %102 = tpu.matmul %101, %100, %cst_46 {dimension_numbers = #tpu.dot_dimension_numbers<[1], [0], [0], [1], [0, 0, 1, 1], [], []>} : vector<8x31xf32>, vector<31x124xf32>, vector<8x124xf32> -> vector<8x124xf32>
    %103 = arith.truncf %102 : vector<8x124xf32> to vector<8x124xbf16>
    %c0_47 = arith.constant 0 : index
    %c0_48 = arith.constant 0 : index
    %104 = vector.load %arg10[%c0_47, %c0_48] : memref<124x924xbf16, #tpu.memory_space<vmem>>, vector<124x924xbf16>
    %cst_49 = arith.constant dense<0.000000e+00> : vector<8x924xf32>
    %105 = tpu.matmul %103, %104, %cst_49 {dimension_numbers = #tpu.dot_dimension_numbers<[1], [0], [0], [1], [0, 0, 1, 1], [], []>} : vector<8x124xbf16>, vector<124x924xbf16>, vector<8x924xf32> -> vector<8x924xf32>
    %c0_50 = arith.constant 0 : index
    %c0_51 = arith.constant 0 : index
    %106 = vector.load %arg12[%c0_50, %c0_51] : memref<1x132xf32, #tpu.memory_space<vmem>>, vector<1x132xf32>
    %c0_52 = arith.constant 0 : index
    %c0_53 = arith.constant 0 : index
    %c0_54 = arith.constant 0 : index
    %107 = vector.load %arg11[%c0_52, %c0_53, %c0_54] : memref<7x8x8xf32, #tpu.memory_space<vmem>>, vector<1x8x8xf32>
    %108 = vector.shape_cast %107 : vector<1x8x8xf32> to vector<8x8xf32>
    %109 = vector.extract_strided_slice %105 {offsets = [0, 0], sizes = [8, 132], strides = [1, 1]} : vector<8x924xf32> to vector<8x132xf32>
    %cst_55 = arith.constant dense<0.000000e+00> : vector<8x132xf32>
    %110 = tpu.matmul %108, %109, %cst_55 {dimension_numbers = #tpu.dot_dimension_numbers<[1], [0], [0], [1], [0, 0, 1, 1], [], []>} : vector<8x8xf32>, vector<8x132xf32>, vector<8x132xf32> -> vector<8x132xf32>
    %111 = vector.broadcast %106 : vector<1x132xf32> to vector<8x132xf32>
    %112 = arith.addf %111, %110 : vector<8x132xf32>
    %c1_56 = arith.constant 1 : index
    %c0_57 = arith.constant 0 : index
    %c0_58 = arith.constant 0 : index
    %113 = vector.load %arg11[%c1_56, %c0_57, %c0_58] : memref<7x8x8xf32, #tpu.memory_space<vmem>>, vector<1x8x8xf32>
    %114 = vector.shape_cast %113 : vector<1x8x8xf32> to vector<8x8xf32>
    %115 = vector.extract_strided_slice %105 {offsets = [0, 132], sizes = [8, 132], strides = [1, 1]} : vector<8x924xf32> to vector<8x132xf32>
    %cst_59 = arith.constant dense<0.000000e+00> : vector<8x132xf32>
    %116 = tpu.matmul %114, %115, %cst_59 {dimension_numbers = #tpu.dot_dimension_numbers<[1], [0], [0], [1], [0, 0, 1, 1], [], []>} : vector<8x8xf32>, vector<8x132xf32>, vector<8x132xf32> -> vector<8x132xf32>
    %117 = arith.addf %112, %116 : vector<8x132xf32>
    %c2_60 = arith.constant 2 : index
    %c0_61 = arith.constant 0 : index
    %c0_62 = arith.constant 0 : index
    %118 = vector.load %arg11[%c2_60, %c0_61, %c0_62] : memref<7x8x8xf32, #tpu.memory_space<vmem>>, vector<1x8x8xf32>
    %119 = vector.shape_cast %118 : vector<1x8x8xf32> to vector<8x8xf32>
    %120 = vector.extract_strided_slice %105 {offsets = [0, 264], sizes = [8, 132], strides = [1, 1]} : vector<8x924xf32> to vector<8x132xf32>
    %cst_63 = arith.constant dense<0.000000e+00> : vector<8x132xf32>
    %121 = tpu.matmul %119, %120, %cst_63 {dimension_numbers = #tpu.dot_dimension_numbers<[1], [0], [0], [1], [0, 0, 1, 1], [], []>} : vector<8x8xf32>, vector<8x132xf32>, vector<8x132xf32> -> vector<8x132xf32>
    %122 = arith.addf %117, %121 : vector<8x132xf32>
    %c3 = arith.constant 3 : index
    %c0_64 = arith.constant 0 : index
    %c0_65 = arith.constant 0 : index
    %123 = vector.load %arg11[%c3, %c0_64, %c0_65] : memref<7x8x8xf32, #tpu.memory_space<vmem>>, vector<1x8x8xf32>
    %124 = vector.shape_cast %123 : vector<1x8x8xf32> to vector<8x8xf32>
    %125 = vector.extract_strided_slice %105 {offsets = [0, 396], sizes = [8, 132], strides = [1, 1]} : vector<8x924xf32> to vector<8x132xf32>
    %cst_66 = arith.constant dense<0.000000e+00> : vector<8x132xf32>
    %126 = tpu.matmul %124, %125, %cst_66 {dimension_numbers = #tpu.dot_dimension_numbers<[1], [0], [0], [1], [0, 0, 1, 1], [], []>} : vector<8x8xf32>, vector<8x132xf32>, vector<8x132xf32> -> vector<8x132xf32>
    %127 = arith.addf %122, %126 : vector<8x132xf32>
    %c4 = arith.constant 4 : index
    %c0_67 = arith.constant 0 : index
    %c0_68 = arith.constant 0 : index
    %128 = vector.load %arg11[%c4, %c0_67, %c0_68] : memref<7x8x8xf32, #tpu.memory_space<vmem>>, vector<1x8x8xf32>
    %129 = vector.shape_cast %128 : vector<1x8x8xf32> to vector<8x8xf32>
    %130 = vector.extract_strided_slice %105 {offsets = [0, 528], sizes = [8, 132], strides = [1, 1]} : vector<8x924xf32> to vector<8x132xf32>
    %cst_69 = arith.constant dense<0.000000e+00> : vector<8x132xf32>
    %131 = tpu.matmul %129, %130, %cst_69 {dimension_numbers = #tpu.dot_dimension_numbers<[1], [0], [0], [1], [0, 0, 1, 1], [], []>} : vector<8x8xf32>, vector<8x132xf32>, vector<8x132xf32> -> vector<8x132xf32>
    %132 = arith.addf %127, %131 : vector<8x132xf32>
    %c5 = arith.constant 5 : index
    %c0_70 = arith.constant 0 : index
    %c0_71 = arith.constant 0 : index
    %133 = vector.load %arg11[%c5, %c0_70, %c0_71] : memref<7x8x8xf32, #tpu.memory_space<vmem>>, vector<1x8x8xf32>
    %134 = vector.shape_cast %133 : vector<1x8x8xf32> to vector<8x8xf32>
    %135 = vector.extract_strided_slice %105 {offsets = [0, 660], sizes = [8, 132], strides = [1, 1]} : vector<8x924xf32> to vector<8x132xf32>
    %cst_72 = arith.constant dense<0.000000e+00> : vector<8x132xf32>
    %136 = tpu.matmul %134, %135, %cst_72 {dimension_numbers = #tpu.dot_dimension_numbers<[1], [0], [0], [1], [0, 0, 1, 1], [], []>} : vector<8x8xf32>, vector<8x132xf32>, vector<8x132xf32> -> vector<8x132xf32>
    %137 = arith.addf %132, %136 : vector<8x132xf32>
    %c6 = arith.constant 6 : index
    %c0_73 = arith.constant 0 : index
    %c0_74 = arith.constant 0 : index
    %138 = vector.load %arg11[%c6, %c0_73, %c0_74] : memref<7x8x8xf32, #tpu.memory_space<vmem>>, vector<1x8x8xf32>
    %139 = vector.shape_cast %138 : vector<1x8x8xf32> to vector<8x8xf32>
    %140 = vector.extract_strided_slice %105 {offsets = [0, 792], sizes = [8, 132], strides = [1, 1]} : vector<8x924xf32> to vector<8x132xf32>
    %cst_75 = arith.constant dense<0.000000e+00> : vector<8x132xf32>
    %141 = tpu.matmul %139, %140, %cst_75 {dimension_numbers = #tpu.dot_dimension_numbers<[1], [0], [0], [1], [0, 0, 1, 1], [], []>} : vector<8x8xf32>, vector<8x132xf32>, vector<8x132xf32> -> vector<8x132xf32>
    %142 = arith.addf %137, %141 : vector<8x132xf32>
    %cst_76 = arith.constant 0.000000e+00 : f32
    %143 = vector.broadcast %cst_76 : f32 to vector<8x132xf32>
    %144 = arith.cmpf ogt, %142, %143 : vector<8x132xf32>
    %145 = math.exp %142 : vector<8x132xf32>
    %cst_77 = arith.constant 1.000000e+00 : f32
    %146 = vector.broadcast %cst_77 : f32 to vector<8x132xf32>
    %147 = arith.subf %145, %146 : vector<8x132xf32>
    %148 = arith.select %144, %142, %147 : vector<8x132xi1>, vector<8x132xf32>
    %c0_78 = arith.constant 0 : index
    %c0_79 = arith.constant 0 : index
    %149 = vector.load %arg13[%c0_78, %c0_79] : memref<132x4xf32, #tpu.memory_space<vmem>>, vector<132x4xf32>
    %cst_80 = arith.constant dense<0.000000e+00> : vector<8x4xf32>
    %150 = tpu.matmul %148, %149, %cst_80 {dimension_numbers = #tpu.dot_dimension_numbers<[1], [0], [0], [1], [0, 0, 1, 1], [], []>} : vector<8x132xf32>, vector<132x4xf32>, vector<8x4xf32> -> vector<8x4xf32>
    %cst_81 = arith.constant dense<0.000000e+00> : vector<4xf32>
    %151 = vector.multi_reduction <add>, %150, %cst_81 [0] : vector<8x4xf32> to vector<4xf32>
    %152 = vector.shape_cast %151 : vector<4xf32> to vector<1x4xf32>
    %153 = arith.mulf %148, %148 : vector<8x132xf32>
    %c0_82 = arith.constant 0 : index
    %c0_83 = arith.constant 0 : index
    %154 = vector.load %arg13[%c0_82, %c0_83] : memref<132x4xf32, #tpu.memory_space<vmem>>, vector<132x4xf32>
    %cst_84 = arith.constant dense<0.000000e+00> : vector<8x4xf32>
    %155 = tpu.matmul %153, %154, %cst_84 {dimension_numbers = #tpu.dot_dimension_numbers<[1], [0], [0], [1], [0, 0, 1, 1], [], []>} : vector<8x132xf32>, vector<132x4xf32>, vector<8x4xf32> -> vector<8x4xf32>
    %cst_85 = arith.constant dense<0.000000e+00> : vector<4xf32>
    %156 = vector.multi_reduction <add>, %155, %cst_85 [0] : vector<8x4xf32> to vector<4xf32>
    %157 = vector.shape_cast %156 : vector<4xf32> to vector<1x4xf32>
    %cst_86 = arith.constant 2.640000e+02 : f32
    %158 = vector.broadcast %cst_86 : f32 to vector<1x4xf32>
    %159 = arith.divf %152, %158 : vector<1x4xf32>
    %cst_87 = arith.constant 2.640000e+02 : f32
    %160 = vector.broadcast %cst_87 : f32 to vector<1x4xf32>
    %161 = arith.divf %157, %160 : vector<1x4xf32>
    %162 = arith.mulf %159, %159 : vector<1x4xf32>
    %163 = arith.subf %161, %162 : vector<1x4xf32>
    %cst_88 = arith.constant 0.000000e+00 : f32
    %164 = vector.broadcast %cst_88 : f32 to vector<1x4xf32>
    %165 = arith.maximumf %163, %164 : vector<1x4xf32>
    %c0_89 = arith.constant 0 : index
    %c0_90 = arith.constant 0 : index
    %166 = vector.load %arg15[%c0_89, %c0_90] : memref<2x4xf32, #tpu.memory_space<vmem>>, vector<1x4xf32>
    %cst_91 = arith.constant 0.000000e+00 : f32
    %167 = vector.broadcast %cst_91 : f32 to vector<1x4xf32>
    %168 = arith.addf %165, %167 : vector<1x4xf32>
    %169 = math.rsqrt %168 : vector<1x4xf32>
    %170 = arith.mulf %166, %169 : vector<1x4xf32>
    %c1_92 = arith.constant 1 : index
    %c0_93 = arith.constant 0 : index
    %171 = vector.load %arg15[%c1_92, %c0_93] : memref<2x4xf32, #tpu.memory_space<vmem>>, vector<1x4xf32>
    %172 = arith.mulf %159, %170 : vector<1x4xf32>
    %173 = arith.subf %171, %172 : vector<1x4xf32>
    %174 = tpu.concatenate %170, %173 in 0 : vector<1x4xf32>, vector<1x4xf32> -> vector<2x4xf32>
    %c0_94 = arith.constant 0 : index
    %c0_95 = arith.constant 0 : index
    %175 = vector.load %arg14[%c0_94, %c0_95] : memref<4x132xf32, #tpu.memory_space<vmem>>, vector<4x132xf32>
    %cst_96 = arith.constant dense<0.000000e+00> : vector<2x132xf32>
    %176 = tpu.matmul %174, %175, %cst_96 {dimension_numbers = #tpu.dot_dimension_numbers<[1], [0], [0], [1], [0, 0, 1, 1], [], []>} : vector<2x4xf32>, vector<4x132xf32>, vector<2x132xf32> -> vector<2x132xf32>
    %177 = vector.extract_strided_slice %176 {offsets = [0, 0], sizes = [1, 132], strides = [1, 1]} : vector<2x132xf32> to vector<1x132xf32>
    %178 = vector.broadcast %177 : vector<1x132xf32> to vector<8x132xf32>
    %179 = arith.mulf %148, %178 : vector<8x132xf32>
    %180 = vector.extract_strided_slice %176 {offsets = [1, 0], sizes = [1, 132], strides = [1, 1]} : vector<2x132xf32> to vector<1x132xf32>
    %181 = vector.broadcast %180 : vector<1x132xf32> to vector<8x132xf32>
    %182 = arith.addf %179, %181 : vector<8x132xf32>
    %183 = vector.extract_strided_slice %182 {offsets = [0, 0], sizes = [8, 131], strides = [1, 1]} : vector<8x132xf32> to vector<8x131xf32>
    %184 = vector.extract_strided_slice %182 {offsets = [0, 1], sizes = [8, 131], strides = [1, 1]} : vector<8x132xf32> to vector<8x131xf32>
    %185 = arith.maximumf %183, %184 : vector<8x131xf32>
    %186 = vector.extract_strided_slice %185 {offsets = [0, 0], sizes = [8, 129], strides = [1, 1]} : vector<8x131xf32> to vector<8x129xf32>
    %187 = vector.extract_strided_slice %185 {offsets = [0, 2], sizes = [8, 129], strides = [1, 1]} : vector<8x131xf32> to vector<8x129xf32>
    %188 = arith.maximumf %186, %187 : vector<8x129xf32>
    %c0_97 = arith.constant 0 : index
    %c0_98 = arith.constant 0 : index
    %189 = vector.load %arg16[%c0_97, %c0_98] : memref<129x32xf32, #tpu.memory_space<vmem>>, vector<129x32xf32>
    %cst_99 = arith.constant dense<0.000000e+00> : vector<8x32xf32>
    %190 = tpu.matmul %188, %189, %cst_99 {dimension_numbers = #tpu.dot_dimension_numbers<[1], [0], [0], [1], [0, 0, 1, 1], [], []>} : vector<8x129xf32>, vector<129x32xf32>, vector<8x32xf32> -> vector<8x32xf32>
    %191 = vector.extract_strided_slice %190 {offsets = [0, 0], sizes = [7, 32], strides = [1, 1]} : vector<8x32xf32> to vector<7x32xf32>
    %192 = vector.extract_strided_slice %190 {offsets = [1, 0], sizes = [7, 32], strides = [1, 1]} : vector<8x32xf32> to vector<7x32xf32>
    %193 = arith.maximumf %191, %192 : vector<7x32xf32>
    %c0_100 = arith.constant 0 : index
    %c0_101 = arith.constant 0 : index
    %194 = vector.load %arg17[%c0_100, %c0_101] : memref<4x7xf32, #tpu.memory_space<vmem>>, vector<4x7xf32>
    %cst_102 = arith.constant dense<0.000000e+00> : vector<4x32xf32>
    %195 = tpu.matmul %194, %193, %cst_102 {dimension_numbers = #tpu.dot_dimension_numbers<[1], [0], [0], [1], [0, 0, 1, 1], [], []>} : vector<4x7xf32>, vector<7x32xf32>, vector<4x32xf32> -> vector<4x32xf32>
    %c0_103 = arith.constant 0 : index
    %c0_104 = arith.constant 0 : index
    %196 = vector.load %arg18[%c0_103, %c0_104] : memref<4x32xf32, #tpu.memory_space<vmem>>, vector<4x32xf32>
    tpu.vector_store %arg18[%c0_103, %c0_104], %195 {strides = array<i32>} : memref<4x32xf32, #tpu.memory_space<vmem>>, vector<4x32xf32>,
    return
  }
}

</mosaic_0001>

<bundles_post_ra>
// kernel: com_eegnet_forward.1
= control target key start
LH: loop header
LB: loop body
LE: loop exit
PB: predicated region body
PF: predicated region fallthrough
CT: control target
= control target key end

     0   :  { %v6402_v3 = vmov 0.0   ;;  %v6398_v8 = vmov 0   ;;  %vm97_vm0 = vcmask 1044480   ;;  %vm4727_vm1 = vmmov 1   ;;  %s4733_s22 = smov 127   ;;  %s4736_s21 = smov 124   ;;  %s6376_s0 = inlined_call_operand.vmem [shape: f32[61,240], index: 0, kind: input, shape index: {}]   ;;  %s6377_s2 = inlined_call_operand.vmem [shape: f32[16,3], index: 2, kind: input, shape index: {}]   ;;  %s6378_s1 = inlined_call_operand.vmem [shape: f32[16,61], index: 1, kind: input, shape index: {}]   ;;  %s6379_s3 = inlined_call_operand.vmem [shape: bf16[240,488], index: 3, kind: input, shape index: {}]   ;;  %s6380_s5 = inlined_call_operand.vmem [shape: f32[488,4], index: 5, kind: input, shape index: {}]   ;;  %s6381_s4 = inlined_call_operand.vmem [shape: f32[1,488], index: 4, kind: input, shape index: {}]   ;;  %s6382_s6 = inlined_call_operand.vmem [shape: f32[4,488], index: 6, kind: input, shape index: {}]   ;;  %s6383_s7 = inlined_call_operand.vmem [shape: f32[2,4], index: 7, kind: input, shape index: {}]   ;;  %s6384_s8 = inlined_call_operand.vmem [shape: bf16[487,124], index: 8, kind: input, shape index: {}]   ;;  %s6385_s10 = inlined_call_operand.vmem [shape: bf16[124,924], index: 10, kind: input, shape index: {}]   ;;  %s6386_s9 = inlined_call_operand.vmem [shape: f32[8,31], index: 9, kind: input, shape index: {}]   ;;  %s6387_s11 = inlined_call_operand.vmem [shape: f32[7,8,8], index: 11, kind: input, shape index: {}]   ;;  %s6388_s13 = inlined_call_operand.vmem [shape: f32[132,4], index: 13, kind: input, shape index: {}]   ;;  %s6389_s12 = inlined_call_operand.vmem [shape: f32[1,132], index: 12, kind: input, shape index: {}]   ;;  %s6390_s14 = inlined_call_operand.vmem [shape: f32[4,132], index: 14, kind: input, shape index: {}]   ;;  %s6391_s15 = inlined_call_operand.vmem [shape: f32[2,4], index: 15, kind: input, shape index: {}]   ;;  %s6392_s16 = inlined_call_operand.vmem [shape: f32[129,32], index: 16, kind: input, shape index: {}]   ;;  %s6393_s17 = inlined_call_operand.vmem [shape: f32[4,7], index: 17, kind: input, shape index: {}]   ;;  %s6394_s18 = inlined_call_operand.vmem [shape: f32[4,32], index: 18, kind: output, shape index: {}]  }
   0x1   :  { %6406 = sst [smem:[#allocation3_spill]] %s6376_s0  ;;  %168 = vmatprep.mubr.f32.mxu1 %v6402_v3  ;;  %4490 = vset.pattern.permute.xlu0 %v6398_v8  ;;  %vm4227_vm2 = vmpackc.low %vm97_vm0, %vm4727_vm1  ;;  %vm90_vm3 = vcmask 498688   ;;  %v4728_v30 = vmov 1   ;;  %v4729_v31 = vmov 2   ;;  %vm201_vm4 = vcmask 916480   ;;  %s4738_s23 = smov 112  }
   0x2   :  { %6407 = sst [smem:[#allocation4_spill]] %s6377_s2  ;;  %s6409_s29 = sld [smem:[#allocation3_spill]]  ;;  %4491 = vset.pattern.permute.xlu1 %v4728_v30  ;;  %v4567_v30 = vld [vmem:[%s6379_s3 + $0x60] ss:$16 sps:$4 sm:$0xff]   ;;  %vm265_vm9 = vcmask 1046528   ;;  %vm278_vm10 = vcmask 982016  }
   0x3   :  { %6408 = sst [smem:[#allocation5_spill]] %s6378_s1  ;;  %s6410_s30 = sld [smem:[#allocation4_spill]]  ;;  %vm298_vm11 = vcmask 64512   ;;  %vm944_vm13 = vcmask 850944  }
   0x4   :  { %s6411_s24 = sld [smem:[#allocation5_spill]]  ;;  %s4737_s1 = smov 116  }
   0x8   :  { %v63_v0 = vld [vmem:[%s6409_s29 + $0x8] sm:$0xff]  ;;  %v65_v1 = vld [vmem:[%s6409_s29 + $0x18] sm:$0xff]  ;;  %v62_v2 = vld [vmem:[%s6409_s29] sm:$0xff] }
   0x9   :  { %v4214_v4 = vpack.c.bf16 %v65_v1, %v63_v0  ;;  %v64_v5 = vld [vmem:[%s6409_s29 + $0x10] sm:$0xff]  ;;  %v67_v6 = vld [vmem:[%s6409_s29 + $0x28] sm:$0xff]  ;;  %v69_v7 = vld [vmem:[%s6409_s29 + $0x38] sm:$0xff] }
   0xa   :  { %v4216_v9 = vpack.c.bf16 %v64_v5, %v62_v2  ;;  %v4218_v10 = vpack.c.bf16 %v69_v7, %v67_v6  ;;  %v66_v11 = vld [vmem:[%s6409_s29 + $0x20] sm:$0xff]  ;;  %v68_v12 = vld [vmem:[%s6409_s29 + $0x30] sm:$0xff]  ;;  %v71_v13 = vld [vmem:[%s6409_s29 + $0x48] sm:$0xff] }
   0xb   :  { %4215 = vmatprep.subr.bf16.mxu1 %v4214_v4  ;;  %v73_v14 = vld [vmem:[%s6409_s29 + $0x58] sm:$0xff]  ;;  %v4220_v15 = vpack.c.bf16 %v68_v12, %v66_v11  ;;  %v70_v17 = vld [vmem:[%s6409_s29 + $0x40] sm:$0xff]  ;;  %v72_v18 = vld [vmem:[%s6409_s29 + $0x50] sm:$0xff] }
   0xc   :  { %4217 = vmatpush1.bf16.msra.mxu1 %v4216_v9  ;;  %v4222_v16 = vpack.c.bf16 %v73_v14, %v71_v13  ;;  %v75_v19 = vld [vmem:[%s6409_s29 + $0x68] sm:$0xff]  ;;  %v77_v20 = vld [vmem:[%s6409_s29 + $0x78] sm:$0x1f]  ;;  %v4884_v21 = vld [vmem:[%s6410_s30] sm:$0xff]  ;;  %v4224_v22 = vpack.c.bf16 %v72_v18, %v70_v17 }
   0xd   :  { %4219 = vmatprep.subr.bf16.mxu1 %v4218_v10  ;;  %82 = vperm.xlu0 %4490, %v4884_v21   ;;  %v4890_v23 = vld [vmem:[%s6410_s30 + $0x8] sm:$0xff]  ;;  %v4226_v24 = vpack.c.bf16 %v77_v20, %v75_v19  ;;  %v74_v25 = vld [vmem:[%s6409_s29 + $0x60] sm:$0xff]  ;;  %v76_v26 = vld [vmem:[%s6409_s29 + $0x70] sm:$0x1f]  ;;  %s4730_s29 = smov 8   ;;  %s4740_s30 = smov 104  }
   0xe   :  { %v4229_v27 = vpack.c.bf16 %v76_v26, %v74_v25  ;;  %v60_v28 = vld [vmem:[%s6411_s24] sm:$0xff]  ;;  %v61_v29 = vld [vmem:[%s6411_s24 + $0x8] sm:$0xff] }
   0xf   :  { %v4551_v17 = vld [vmem:[%s6379_s3 + $0x4] ss:$16 sps:$4 sm:$0xff]   ;;  %v4552_v18 = vld [vmem:[%s6379_s3 + $0xc] ss:$16 sps:$4 sm:$0xff]   ;;  %v4554_v19 = vld [vmem:[%s6379_s3 + $0x8] ss:$16 sps:$4 sm:$0xff]  }
  0x10   :  { %4221 = vmatpush1.bf16.msra.mxu1 %v4220_v15  ;;  %v4555_v20 = vld [vmem:[%s6379_s3 + $0x20] ss:$16 sps:$4 sm:$0xff]   ;;  %750 = vmatprep.subr.bf16.mxu0 %v4552_v18  ;;  %v4564_v26 = vld [vmem:[%s6379_s3 + $0x4c] ss:$16 sps:$4 sm:$0xff]  }
  0x11   :  { %4223 = vmatprep.subr.bf16.mxu1 %v4222_v16  ;;  %87 = vperm.xlu0 %4490, %v4890_v23   ;;  %v4549_v16 = vld [vmem:[%s6379_s3] ss:$16 sps:$4 sm:$0xff]   ;;  %v4630_v18 = vld [vmem:[%s6379_s3 + $0x1ac] ss:$16 sps:$4 sm:$0xff]  }
  0x12   :  { %751 = vmatpush1.bf16.msra.mxu0 %v4554_v19  ;;  %v4561_v25 = vld [vmem:[%s6379_s3 + $0x40] ss:$16 sps:$4 sm:$0xff]  }
  0x14   :  { %4225 = vmatpush1.bf16.msra.mxu1 %v4224_v22  ;;  %v4558_v22 = vld [vmem:[%s6379_s3 + $0x2c] ss:$16 sps:$4 sm:$0xff]  }
  0x15   :  { %4228 = vmatprep.subr.msk.bf16.mxu1 %vm4227_vm2, %v4226_v24  ;;  %4548 = vset.pattern.permute.xlu0 %v4729_v31  ;;  %v4563_v24 = vld [vmem:[%s6379_s3 + $0x44] ss:$16 sps:$4 sm:$0xff]  }
  0x16   :  { %752 = vmatprep.subr.bf16.mxu0 %v4558_v22 }
  0x18   :  { %4231 = vmatpush1.bf16.msk.msra.mxu1 %vm4227_vm2, %v4229_v27  ;;  %v4566_v27 = vld [vmem:[%s6379_s3 + $0x48] ss:$16 sps:$4 sm:$0xff]  }
  0x19   :  { %697 = vmatprep.subr.bf16.mxu1 %v4551_v17  ;;  %v4629_v17 = vld [vmem:[%s6379_s3 + $0x1a4] ss:$16 sps:$4 sm:$0xff]  }
  0x1b   :  { %3842 = vmatmul.mubr.msk.f32.vlgmr.msra.gmra.mrb[0].mxu1 %vm90_vm3, %v60_v28  ;;  %v4569_v28 = vld [vmem:[%s6379_s3 + $0x64] ss:$16 sps:$4 sm:$0xff]  }
  0x1c   :  { %174 = vmatprep.mubr.f32.mxu1 %v6402_v3  ;;  %698 = vmatpush1.bf16.msra.mxu1 %v4549_v16  ;;  %v4626_v16 = vld [vmem:[%s6379_s3 + $0x188] ss:$16 sps:$4 sm:$0xff]  }
  0x1f   :  { %3843 = vmatmul.mubr.msk.f32.gmra.mrb[2].mxu1 %vm90_vm3, %v61_v29  ;;  %v4570_v29 = vld [vmem:[%s6379_s3 + $0x6c] ss:$16 sps:$4 sm:$0xff]  }
  0x8c   :  { %v83_v32 = vpop.permute.xlu0 %82 }
  0x90   :  { %v88_v38 = vpop.permute.xlu0 %87 }
  0xee   :  { %v170_v33 = vpop.f32.mrb[0].mxu1 }
  0xef   :  { %v171_v34 = vadd.f32 %v170_v33, %v83_v32  ;;  %v172_v35 = vpop.f32.mrb[1].mxu1  ;;  %v4576_v33 = vld [vmem:[%s6379_s3 + $0x8c] ss:$16 sps:$4 sm:$0xff]  }
  0xf0   :  { %v173_v36 = vadd.f32 %v172_v35, %v83_v32  ;;  %v4575_v32 = vld [vmem:[%s6379_s3 + $0x84] ss:$16 sps:$4 sm:$0xff]   ;;  %v4578_v35 = vld [vmem:[%s6379_s3 + $0x88] ss:$16 sps:$4 sm:$0xff]  }
  0xf1   :  { %v185_v37 = vmul.f32 1.442695, %v171_v34  ;;  %vm181_vm6 = vcmp.gt.f32.partialorder %v171_v34, 0.0 }
  0xf2   :  { %v187_v39 = vmul.f32 1.442695, %v173_v36  ;;  %v176_v40 = vpop.f32.mrb[2].mxu1  ;;  %vm182_vm5 = vcmp.gt.f32.partialorder %v173_v36, 0.0 }
  0xf3   :  { %4673 = vpow2.f32 %v185_v37  ;;  %v177_v41 = vadd.f32 %v176_v40, %v88_v38  ;;  %v178_v42 = vpop.f32.mrb[3].mxu1  ;;  %v4582_v37 = vld [vmem:[%s6379_s3 + $0xac] ss:$16 sps:$4 sm:$0xff]   ;;  %v4587_v40 = vld [vmem:[%s6379_s3 + $0xc4] ss:$16 sps:$4 sm:$0xff]  }
  0xf4   :  { %4675 = vpow2.f32 %v187_v39  ;;  %v179_v43 = vadd.f32 %v178_v42, %v88_v38  ;;  %v4579_v38 = vld [vmem:[%s6379_s3 + $0xa0] ss:$16 sps:$4 sm:$0xff]   ;;  %v4584_v39 = vld [vmem:[%s6379_s3 + $0xa8] ss:$16 sps:$4 sm:$0xff]  }
  0xf5   :  { %v189_v44 = vmul.f32 1.442695, %v177_v41  ;;  %vm183_vm8 = vcmp.gt.f32.partialorder %v177_v41, 0.0  ;;  %v4585_v42 = vld [vmem:[%s6379_s3 + $0xc0] ss:$16 sps:$4 sm:$0xff]  }
  0xf6   :  { %v191_v45 = vmul.f32 1.442695, %v179_v43  ;;  %vm184_vm7 = vcmp.gt.f32.partialorder %v179_v43, 0.0 }
  0xf7   :  { %4677 = vpow2.f32 %v189_v44  ;;  %v4593_v44 = vld [vmem:[%s6379_s3 + $0xe4] ss:$16 sps:$4 sm:$0xff]  }
  0xf8   :  { %4679 = vpow2.f32 %v191_v45  ;;  %v4594_v45 = vld [vmem:[%s6379_s3 + $0xec] ss:$16 sps:$4 sm:$0xff]  }
  0xfd   :  { %v4674_v46 = vpop.eup %4673 }
  0xfe   :  { %v4676_v47 = vpop.eup %4675  ;;  %v3844_v48 = vadd.f32 -1.0, %v4674_v46  ;;  %v4591_v46 = vld [vmem:[%s6379_s3 + $0xe0] ss:$16 sps:$4 sm:$0xff]  }
  0xff   :  { %v3845_v49 = vadd.f32 -1.0, %v4676_v47  ;;  %v4596_v47 = vld [vmem:[%s6379_s3 + $0xe8] ss:$16 sps:$4 sm:$0xff]  }
 0x100   :  { %v197_v53 = vsel %vm181_vm6, %v171_v34, %v3844_v48  ;;  %v4573_v34 = vld [vmem:[%s6379_s3 + $0x80] ss:$16 sps:$4 sm:$0xff]   ;;  %v4599_v48 = vld [vmem:[%s6379_s3 + $0x104] ss:$16 sps:$4 sm:$0xff]  }
 0x101   :  { %v4678_v50 = vpop.eup %4677  ;;  %v198_v51 = vsel %vm182_vm5, %v173_v36, %v3845_v49  ;;  %v4581_v36 = vld [vmem:[%s6379_s3 + $0xa4] ss:$16 sps:$4 sm:$0xff]   ;;  %v4597_v49 = vld [vmem:[%s6379_s3 + $0x100] ss:$16 sps:$4 sm:$0xff]  }
 0x102   :  { %v4680_v52 = vpop.eup %4679  ;;  %v202_v54 = vsel %vm201_vm4, %v198_v51, 0.0  ;;  %v3846_v55 = vadd.f32 -1.0, %v4678_v50  ;;  %v4600_v50 = vld [vmem:[%s6379_s3 + $0x10c] ss:$16 sps:$4 sm:$0xff]  }
 0x103   :  { %v203_v56 = vadd.f32 %v202_v54, %v197_v53  ;;  %v3847_v57 = vadd.f32 -1.0, %v4680_v52  ;;  %v4605_v52 = vld [vmem:[%s6379_s3 + $0x124] ss:$16 sps:$4 sm:$0xff]   ;;  %v4603_v54 = vld [vmem:[%s6379_s3 + $0x120] ss:$16 sps:$4 sm:$0xff]  }
 0x104   :  { %v199_v59 = vsel %vm183_vm8, %v177_v41, %v3846_v55  ;;  %v4588_v41 = vld [vmem:[%s6379_s3 + $0xcc] ss:$16 sps:$4 sm:$0xff]   ;;  %v4608_v55 = vld [vmem:[%s6379_s3 + $0x128] ss:$16 sps:$4 sm:$0xff]  }
 0x105   :  { %204 = vadd.xlane.f32.xlu1 %v203_v56  ;;  %v200_v58 = vsel %vm184_vm7, %v179_v43, %v3847_v57  ;;  %v4590_v43 = vld [vmem:[%s6379_s3 + $0xc8] ss:$16 sps:$4 sm:$0xff]   ;;  %v4611_v56 = vld [vmem:[%s6379_s3 + $0x144] ss:$16 sps:$4 sm:$0xff]   ;;  %v4612_v57 = vld [vmem:[%s6379_s3 + $0x14c] ss:$16 sps:$4 sm:$0xff]  }
 0x106   :  { %v206_v60 = vsel %vm201_vm4, %v200_v58, 0.0 }
 0x107   :  { %v207_v61 = vadd.f32 %v206_v60, %v199_v59  ;;  %v4617_v60 = vld [vmem:[%s6379_s3 + $0x164] ss:$16 sps:$4 sm:$0xff]  }
 0x109   :  { %208 = vadd.xlane.f32.xlu1 %v207_v61  ;;  %v4618_v61 = vld [vmem:[%s6379_s3 + $0x16c] ss:$16 sps:$4 sm:$0xff]  }
 0x11a   :  { %240 = vperm.xlu1 %4491, %v4884_v21  }
 0x11e   :  { %244 = vperm.xlu1 %4491, %v4890_v23  }
 0x122   :  { %4492 = vset.pattern.permute.xlu1 %v4729_v31  ;;  %v4572_v31 = vld [vmem:[%s6379_s3 + $0x68] ss:$16 sps:$4 sm:$0xff]  }
 0x123   :  { %252 = vperm.xlu1 %4492, %v4884_v21   ;;  %v4557_v21 = vld [vmem:[%s6379_s3 + $0x24] ss:$16 sps:$4 sm:$0xff]  }
 0x124   :  { %699 = vmatprep.subr.bf16.mxu1 %v4557_v21  ;;  %v4632_v21 = vld [vmem:[%s6379_s3 + $0x1a8] ss:$16 sps:$4 sm:$0xff]  }
 0x125   :  { %700 = vmatpush1.bf16.msra.mxu1 %v4555_v20  ;;  %v4627_v20 = vld [vmem:[%s6379_s3 + $0x1a0] ss:$16 sps:$4 sm:$0xff]  }
 0x126   :  { %701 = vmatprep.subr.bf16.mxu1 %v4563_v24 }
 0x129   :  { %702 = vmatpush1.bf16.msra.mxu1 %v4561_v25 }
 0x12a   :  { %703 = vmatprep.subr.bf16.mxu1 %v4569_v28 }
 0x12d   :  { %704 = vmatpush1.bf16.msra.mxu1 %v4567_v30 }
 0x12e   :  { %705 = vmatprep.subr.bf16.mxu1 %v4575_v32 }
 0x131   :  { %706 = vmatpush1.bf16.msra.mxu1 %v4573_v34 }
 0x132   :  { %707 = vmatprep.subr.bf16.mxu1 %v4581_v36 }
 0x135   :  { %708 = vmatpush1.bf16.msra.mxu1 %v4579_v38 }
 0x136   :  { %709 = vmatprep.subr.bf16.mxu1 %v4587_v40 }
 0x139   :  { %710 = vmatpush1.bf16.msra.mxu1 %v4585_v42 }
 0x13a   :  { %711 = vmatprep.subr.bf16.mxu1 %v4593_v44 }
 0x13d   :  { %712 = vmatpush1.bf16.msra.mxu1 %v4591_v46 }
 0x13e   :  { %713 = vmatprep.subr.bf16.mxu1 %v4599_v48  ;;  %v6400_v48 = vmov 0.0|0.0  }
 0x141   :  { %714 = vmatpush1.bf16.msra.mxu1 %v4597_v49  ;;  %v899_v49 = vld [vmem:[%s6380_s5 + $0x80] sm:$0xff] }
 0x142   :  { %715 = vmatprep.subr.bf16.mxu1 %v4605_v52 }
 0x145   :  { %716 = vmatpush1.bf16.msra.mxu1 %v4603_v54 }
 0x146   :  { %717 = vmatprep.subr.bf16.mxu1 %v4611_v56  ;;  %v916_v56 = vld [vmem:[%s6380_s5 + $0x108] sm:$0xff] }
 0x192   :  { %v205_v62 = vpop.xlane.xlu1 %204 }
 0x193   :  { %v211_v63 = vmul.f32 0.004166667, %v205_v62  ;;  %v4615_v62 = vld [vmem:[%s6379_s3 + $0x160] ss:$16 sps:$4 sm:$0xff]  }
 0x195   :  { %v4912_v0 = vsub.f32 %v197_v53, %v211_v63  ;;  %v4914_v1 = vsub.f32 %v198_v51, %v211_v63  ;;  %v4602_v51 = vld [vmem:[%s6379_s3 + $0x108] ss:$16 sps:$4 sm:$0xff]   ;;  %v4606_v53 = vld [vmem:[%s6379_s3 + $0x12c] ss:$16 sps:$4 sm:$0xff]  }
 0x196   :  { %v209_v2 = vpop.xlane.xlu1 %208  ;;  %v4620_v63 = vld [vmem:[%s6379_s3 + $0x168] ss:$16 sps:$4 sm:$0xff]  }
 0x197   :  { %v212_v4 = vmul.f32 0.004166667, %v209_v2  ;;  %v217_v5 = vmul.f32 %v4912_v0, %v4912_v0  ;;  %v218_v6 = vmul.f32 %v4914_v1, %v4914_v1 }
 0x199   :  { %v4920_v7 = vsub.f32 %v199_v59, %v212_v4  ;;  %v4922_v9 = vsub.f32 %v200_v58, %v212_v4  ;;  %v221_v10 = vsel %vm201_vm4, %v218_v6, 0.0  ;;  %v4609_v58 = vld [vmem:[%s6379_s3 + $0x140] ss:$16 sps:$4 sm:$0xff]   ;;  %v4614_v59 = vld [vmem:[%s6379_s3 + $0x148] ss:$16 sps:$4 sm:$0xff]  }
 0x19a   :  { %v222_v11 = vadd.f32 %v221_v10, %v217_v5  ;;  %718 = vmatpush1.bf16.msra.mxu1 %v4609_v58  ;;  %v241_v2 = vpop.permute.xlu1 %240 }
 0x19b   :  { %v219_v12 = vmul.f32 %v4920_v7, %v4920_v7  ;;  %v220_v13 = vmul.f32 %v4922_v9, %v4922_v9  ;;  %719 = vmatprep.subr.bf16.mxu1 %v4617_v60  ;;  %v884_v60 = vld [vmem:[%s6380_s5 + $0x8] sm:$0xff] }
 0x19c   :  { %223 = vadd.xlane.f32.xlu0 %v222_v11 }
 0x19d   :  { %v225_v14 = vsel %vm201_vm4, %v220_v13, 0.0  ;;  %v4623_v13 = vld [vmem:[%s6379_s3 + $0x184] ss:$16 sps:$4 sm:$0xff]  }
 0x19e   :  { %v226_v15 = vadd.f32 %v225_v14, %v219_v12  ;;  %720 = vmatpush1.bf16.msra.mxu1 %v4615_v62  ;;  %v245_v4 = vpop.permute.xlu1 %244  ;;  %v4624_v14 = vld [vmem:[%s6379_s3 + $0x18c] ss:$16 sps:$4 sm:$0xff]  }
 0x19f   :  { %721 = vmatprep.subr.bf16.mxu1 %v4623_v13 }
 0x1a0   :  { %227 = vadd.xlane.f32.xlu1 %v226_v15  ;;  %v4621_v15 = vld [vmem:[%s6379_s3 + $0x180] ss:$16 sps:$4 sm:$0xff]  }
 0x1a2   :  { %v253_v5 = vpop.permute.xlu1 %252  ;;  %722 = vmatpush1.bf16.msra.mxu1 %v4621_v15 }
 0x1a3   :  { %723 = vmatprep.subr.bf16.mxu1 %v4629_v17 }
 0x1a6   :  { %724 = vmatpush1.bf16.msra.mxu1 %v4627_v20 }
 0x1b1   :  { %256 = vperm.xlu1 %4492, %v4890_v23   ;;  %v4560_v23 = vld [vmem:[%s6379_s3 + $0x28] ss:$16 sps:$4 sm:$0xff]  }
 0x1b2   :  { %753 = vmatpush1.bf16.msra.mxu0 %v4560_v23 }
 0x1b3   :  { %754 = vmatprep.subr.bf16.mxu0 %v4564_v26  ;;  %v4635_v26 = vld [vmem:[%s6379_s3 + $0x1c4] ss:$16 sps:$4 sm:$0xff]  }
 0x1b4   :  { %725 = vmatprep.subr.bf16.mxu1 %v4635_v26 }
 0x1b6   :  { %755 = vmatpush1.bf16.msra.mxu0 %v4566_v27  ;;  %v4636_v27 = vld [vmem:[%s6379_s3 + $0x1cc] ss:$16 sps:$4 sm:$0xff]  }
 0x1b7   :  { %756 = vmatprep.subr.bf16.mxu0 %v4570_v29 }
 0x1ba   :  { %757 = vmatpush1.bf16.msra.mxu0 %v4572_v31 }
 0x1bb   :  { %758 = vmatprep.subr.bf16.mxu0 %v4576_v33 }
 0x1be   :  { %759 = vmatpush1.bf16.msra.mxu0 %v4578_v35 }
 0x1bf   :  { %760 = vmatprep.subr.bf16.mxu0 %v4582_v37 }
 0x1c2   :  { %761 = vmatpush1.bf16.msra.mxu0 %v4584_v39 }
 0x1c3   :  { %762 = vmatprep.subr.bf16.mxu0 %v4588_v41 }
 0x1c6   :  { %763 = vmatpush1.bf16.msra.mxu0 %v4590_v43 }
 0x1c7   :  { %764 = vmatprep.subr.bf16.mxu0 %v4594_v45 }
 0x1ca   :  { %765 = vmatpush1.bf16.msra.mxu0 %v4596_v47 }
 0x1cb   :  { %766 = vmatprep.subr.bf16.mxu0 %v4600_v50  ;;  %v900_v50 = vld [vmem:[%s6380_s5 + $0x88] sm:$0xff] }
 0x1ce   :  { %767 = vmatpush1.bf16.msra.mxu0 %v4602_v51  ;;  %v5130_v51 = vpack.c.bf16 %v900_v50, %v899_v49  ;;  %v932_v49 = vld [vmem:[%s6380_s5 + $0x188] sm:$0xff] }
 0x1cf   :  { %768 = vmatprep.subr.bf16.mxu0 %v4606_v53 }
 0x1d2   :  { %769 = vmatpush1.bf16.msra.mxu0 %v4608_v55  ;;  %v915_v55 = vld [vmem:[%s6380_s5 + $0x100] sm:$0xff] }
 0x1d3   :  { %770 = vmatprep.subr.bf16.mxu0 %v4612_v57 }
 0x1d6   :  { %771 = vmatpush1.bf16.msra.mxu0 %v4614_v59  ;;  %v883_v59 = vld [vmem:[%s6380_s5] sm:$0xff] }
 0x1d7   :  { %772 = vmatprep.subr.bf16.mxu0 %v4618_v61  ;;  %v5158_v15 = vpack.c.bf16 %v884_v60, %v883_v59  ;;  %v890_v59 = vld [vmem:[%s6380_s5 + $0x38] sm:$0xff] }
 0x1da   :  { %773 = vmatpush1.bf16.msra.mxu0 %v4620_v63  ;;  %v901_v63 = vld [vmem:[%s6380_s5 + $0x90] sm:$0xff] }
 0x1db   :  { %774 = vmatprep.subr.bf16.mxu0 %v4624_v14  ;;  %v917_v14 = vld [vmem:[%s6380_s5 + $0x110] sm:$0xff] }
 0x1de   :  { %775 = vmatpush1.bf16.msra.mxu0 %v4626_v16  ;;  %v918_v16 = vld [vmem:[%s6380_s5 + $0x118] sm:$0xff] }
 0x1df   :  { %776 = vmatprep.subr.bf16.mxu0 %v4630_v18  ;;  %v885_v18 = vld [vmem:[%s6380_s5 + $0x10] sm:$0xff] }
 0x1e2   :  { %777 = vmatpush1.bf16.msra.mxu0 %v4632_v21  ;;  %v903_v21 = vld [vmem:[%s6380_s5 + $0xa0] sm:$0xff] }
 0x1e3   :  { %778 = vmatprep.subr.bf16.mxu0 %v4636_v27 }
 0x229   :  { %v224_v6 = vpop.xlane.xlu0 %223 }
 0x22a   :  { %v229_v10 = vmul.f32 0.004166667, %v224_v6 }
 0x22c   :  { %4681 = vrsqrt.f32 %v229_v10  ;;  %v5153_v10 = vpack.c.bf16 %v916_v56, %v915_v55  ;;  %v934_v56 = vld [vmem:[%s6380_s5 + $0x198] sm:$0xff] }
 0x22d   :  { %v228_v11 = vpop.xlane.xlu1 %227 }
 0x22e   :  { %v230_v12 = vmul.f32 0.004166667, %v228_v11 }
 0x230   :  { %4683 = vrsqrt.f32 %v230_v12 }
 0x231   :  { %v257_v36 = vpop.permute.xlu1 %256 }
 0x236   :  { %v4682_v19 = vpop.eup %4681 }
 0x237   :  { %v235_v22 = vmul.f32 %v4682_v19, %v4912_v0  ;;  %v236_v23 = vmul.f32 %v4682_v19, %v4914_v1  ;;  %v4633_v0 = vld [vmem:[%s6379_s3 + $0x1c0] ss:$16 sps:$4 sm:$0xff]   ;;  %v4638_v1 = vld [vmem:[%s6379_s3 + $0x1c8] ss:$16 sps:$4 sm:$0xff]   ;;  %s4731_s3 = smov 120  }
 0x238   :  { %726 = vmatpush1.bf16.msra.mxu1 %v4633_v0  ;;  %779 = vmatpush1.bf16.msra.mxu0 %v4638_v1  ;;  %v886_v19 = vld [vmem:[%s6380_s5 + $0x18] sm:$0xff]  ;;  %v887_v1 = vld [vmem:[%s6380_s5 + $0x20] sm:$0xff] }
 0x239   :  { %v247_v24 = vmul.f32 %v241_v2, %v235_v22  ;;  %v248_v25 = vmul.f32 %v241_v2, %v236_v23  ;;  %4264 = vmatprep.subr.bf16.mxu0 %v6400_v48  ;;  %4233 = vmatprep.subr.bf16.mxu1 %v5130_v51  ;;  %v902_v2 = vld [vmem:[%s6380_s5 + $0x98] sm:$0xff]  ;;  %v904_v22 = vld [vmem:[%s6380_s5 + $0xa8] sm:$0xff]  ;;  %v5190_v26 = vpack.c.bf16 %v886_v19, %v885_v18 }
 0x23a   :  { %v4684_v28 = vpop.eup %4683  ;;  %v5165_v17 = vpack.c.bf16 %v902_v2, %v901_v63  ;;  %v5198_v0 = vpack.c.bf16 %v904_v22, %v903_v21  ;;  %v935_v63 = vld [vmem:[%s6380_s5 + $0x1a0] sm:$0xff]  ;;  %v938_v19 = vld [vmem:[%s6380_s5 + $0x1b8] sm:$0xff] }
 0x23b   :  { %v237_v29 = vmul.f32 %v4684_v28, %v4920_v7  ;;  %v238_v30 = vmul.f32 %v4684_v28, %v4922_v9  ;;  %v259_v31 = vadd.f32 %v253_v5, %v247_v24  ;;  %v260_v32 = vadd.f32 %v253_v5, %v248_v25  ;;  %v919_v25 = vld [vmem:[%s6380_s5 + $0x120] sm:$0xff]  ;;  %v920_v28 = vld [vmem:[%s6380_s5 + $0x128] sm:$0xff]  ;;  %v894_v21 = vld [vmem:[%s6380_s5 + $0x58] sm:$0xff] }
 0x23c   :  { %v5184_v24 = vpack.c.bf16 %v918_v16, %v917_v14  ;;  %v910_v14 = vld [vmem:[%s6380_s5 + $0xd8] sm:$0xff]  ;;  %v937_v16 = vld [vmem:[%s6380_s5 + $0x1b0] sm:$0xff] }
 0x23d   :  { %v249_v33 = vmul.f32 %v245_v4, %v237_v29  ;;  %v250_v34 = vmul.f32 %v245_v4, %v238_v30  ;;  %v4498_v35 = vpack.i.bf16 %v260_v32, %v259_v31  ;;  %v283_v39 = vrot.slane %v260_v32, 1  ;;  %v888_v29 = vld [vmem:[%s6380_s5 + $0x28] sm:$0xff] }
 0x23e   :  { %v266_v9 = vrot.slane %v259_v31, 1  ;;  %v5209_v32 = vpack.c.bf16 %v920_v28, %v919_v25  ;;  %v5355_v22 = vpack.c.bf16 %v938_v19, %v937_v16  ;;  %v911_v25 = vld [vmem:[%s6380_s5 + $0xe0] sm:$0xff] }
 0x23f   :  { %v261_v37 = vadd.f32 %v257_v36, %v249_v33  ;;  %v262_v38 = vadd.f32 %v257_v36, %v250_v34  ;;  %4499 = vrot.lane.b32.xlu1 %v4498_v35, %s4730_s29  ;;  %v5212_v33 = vpack.c.bf16 %v888_v29, %v887_v1  ;;  %v921_v34 = vld [vmem:[%s6380_s5 + $0x130] sm:$0xff]  ;;  %v922_v35 = vld [vmem:[%s6380_s5 + $0x138] sm:$0xff]  ;;  %v939_v28 = vld [vmem:[%s6380_s5 + $0x1c0] sm:$0xff] }
 0x240   :  { %v5223_v36 = vpack.c.bf16 %v922_v35, %v921_v34  ;;  %v940_v29 = vld [vmem:[%s6380_s5 + $0x1c8] sm:$0xff] }
 0x241   :  { %v284_v40 = vrot.slane %v262_v38, 1  ;;  %v4503_v7 = vpack.i.bf16 %v262_v38, %v261_v37  ;;  %v267_v41 = vrot.slane %v261_v37, 1  ;;  %v924_v38 = vld [vmem:[%s6380_s5 + $0x148] sm:$0xff]  ;;  %v5383_v34 = vpack.c.bf16 %v940_v29, %v939_v28 }
 0x243   :  { %v289_v42 = vsel %vm265_vm9, %v284_v40, 0.0  ;;  %4504 = vrot.lane.b32.xlu1 %v4503_v7, %s4730_s29  ;;  %v5117_v43 = vsel %vm265_vm9, %v266_v9, %v267_v41  ;;  %v270_v44 = vsel %vm265_vm9, %v267_v41, 0.0  ;;  %v285_v45 = vsel %vm265_vm9, %v283_v39, %v284_v40  ;;  %v925_v40 = vld [vmem:[%s6380_s5 + $0x150] sm:$0xff]  ;;  %v926_v7 = vld [vmem:[%s6380_s5 + $0x158] sm:$0xff]  ;;  %v927_v9 = vld [vmem:[%s6380_s5 + $0x160] sm:$0xff] }
 0x244   :  { %v4493_v46 = vpack.i.bf16 %v270_v44, %v5117_v43  ;;  %v308_v47 = vpack.c.bf16 %v289_v42, %v285_v45  ;;  %v5244_v41 = vpack.c.bf16 %v926_v7, %v925_v40  ;;  %v928_v42 = vld [vmem:[%s6380_s5 + $0x168] sm:$0xff]  ;;  %v930_v45 = vld [vmem:[%s6380_s5 + $0x178] sm:$0xff]  ;;  %v941_v40 = vld [vmem:[%s6380_s5 + $0x1d0] sm:$0xff] }
 0x246   :  { %4494 = vrot.lane.b32.xlu0 %v4493_v46, %s4731_s3 }
 0x2b1   :  { %v4500_v52 = vpop.permute.xlu1 %4499 }
 0x2b2   :  { %v4502_v11 = vunpack.i.h.bf16 %v4500_v52  ;;  %v4501_v12 = vunpack.i.l.bf16 %v4500_v52  ;;  %v905_v52 = vld [vmem:[%s6380_s5 + $0xb0] sm:$0xff] }
 0x2b4   :  { %v299_v23 = vsel %vm298_vm11, %v4501_v12, %v4502_v11 }
 0x2b5   :  { %v4505_v53 = vpop.permute.xlu1 %4504  ;;  %v303_v30 = vsel %vm278_vm10, %v299_v23, %v5117_v43  ;;  %v5254_v43 = vpack.c.bf16 %v928_v42, %v927_v9  ;;  %v942_v9 = vld [vmem:[%s6380_s5 + $0x1d8] sm:$0xff]  ;;  %v897_v42 = vld [vmem:[%s6380_s5 + $0x70] sm:$0xff] }
 0x2b6   :  { %v4507_v61 = vunpack.i.h.bf16 %v4505_v53  ;;  %v4506_v62 = vunpack.i.l.bf16 %v4505_v53  ;;  %v906_v53 = vld [vmem:[%s6380_s5 + $0xb8] sm:$0xff] }
 0x2b7   :  { %v5288_v55 = vpack.c.bf16 %v906_v53, %v905_v52  ;;  %v371_v52 = vlaneseq }
 0x2b8   :  { %v4495_v54 = vpop.permute.xlu0 %4494  ;;  %v300_v20 = vsel %vm298_vm11, %v4506_v62, %v4507_v61  ;;  %v907_v61 = vld [vmem:[%s6380_s5 + $0xc0] sm:$0xff]  ;;  %v908_v62 = vld [vmem:[%s6380_s5 + $0xc8] sm:$0xff] }
 0x2b9   :  { %v4497_v57 = vunpack.i.h.bf16 %v4495_v54  ;;  %v4496_v58 = vunpack.i.l.bf16 %v4495_v54  ;;  %v304_v27 = vsel %vm278_vm10, %v300_v20, %v270_v44  ;;  %v929_v44 = vld [vmem:[%s6380_s5 + $0x170] sm:$0xff]  ;;  %v5316_v2 = vpack.c.bf16 %v908_v62, %v907_v61 }
 0x2ba   :  { %v5264_v46 = vpack.c.bf16 %v930_v45, %v929_v44  ;;  %v933_v54 = vld [vmem:[%s6380_s5 + $0x190] sm:$0xff]  ;;  %v898_v44 = vld [vmem:[%s6380_s5 + $0x78] sm:$0xff]  ;;  %v5411_v45 = vpack.c.bf16 %v942_v9, %v941_v40  ;;  %v372_v53 = vshrl.u32 %v371_v52, 7 }
 0x2bb   :  { %v280_v4 = vsel %vm278_vm10, %v261_v37, %v4497_v57  ;;  %v279_v5 = vsel %vm278_vm10, %v259_v31, %v4496_v58  ;;  %v306_v6 = vpack.c.bf16 %v4497_v57, %v4496_v58  ;;  %v307_v31 = vpack.c.bf16 %v304_v27, %v303_v30  ;;  %v923_v37 = vld [vmem:[%s6380_s5 + $0x140] sm:$0xff]  ;;  %v889_v58 = vld [vmem:[%s6380_s5 + $0x30] sm:$0xff]  ;;  %v912_v27 = vld [vmem:[%s6380_s5 + $0xe8] sm:$0xff] }
 0x2bc   :  { %v305_v13 = vpack.c.bf16 %v280_v4, %v279_v5  ;;  %v5234_v39 = vpack.c.bf16 %v924_v38, %v923_v37  ;;  %v5293_v57 = vpack.c.bf16 %v934_v56, %v933_v54  ;;  %v5302_v60 = vpack.c.bf16 %v890_v59, %v889_v58  ;;  %v936_v4 = vld [vmem:[%s6380_s5 + $0x1a8] sm:$0xff]  ;;  %v891_v5 = vld [vmem:[%s6380_s5 + $0x40] sm:$0xff]  ;;  %v893_v20 = vld [vmem:[%s6380_s5 + $0x50] sm:$0xff] }
 0x2bd   :  { %3908 = vmatprep.mubr.msk.bf16.mxu1 %vm201_vm4, %v306_v6  ;;  %3910 = vmatprep.mubr.msk.bf16.mxu0 %vm201_vm4, %v306_v6  ;;  %v892_v6 = vld [vmem:[%s6380_s5 + $0x48] sm:$0xff]  ;;  %v5327_v11 = vpack.c.bf16 %v936_v4, %v935_v63  ;;  %v5357_v23 = vpack.c.bf16 %v894_v21, %v893_v20  ;;  %v5372_v1 = vpack.c.bf16 %v912_v27, %v911_v25  ;;  %v895_v30 = vld [vmem:[%s6380_s5 + $0x60] sm:$0xff]  ;;  %v913_v37 = vld [vmem:[%s6380_s5 + $0xf0] sm:$0xff]  ;;  %v5426_v54 = vsub.s32 0, %v372_v53 }
 0x2be   :  { %730 = vmatmul.mubr.bf16.vlgmr.msra.gmra.mrb[4].mxu1 %v305_v13  ;;  %783 = vmatmul.mubr.bf16.vlgmr.msra.gmra.mrb[0].mxu0 %v305_v13  ;;  %v5329_v12 = vpack.c.bf16 %v892_v6, %v891_v5  ;;  %v909_v13 = vld [vmem:[%s6380_s5 + $0xd0] sm:$0xff]  ;;  %v914_v38 = vld [vmem:[%s6380_s5 + $0xf8] sm:$0xff]  ;;  %v381_v56 = vsub.s32 2, %v372_v53  ;;  %v369_v58 = vld [vmem:[%s6381_s4] sm:$0xf]  ;;  %v5431_v59 = vsub.s32 1, %v372_v53 }
 0x2bf   :  { %3909 = vmatprep.mubr.msk.bf16.mxu1 %vm201_vm4, %v308_v47  ;;  %3911 = vmatprep.mubr.msk.bf16.mxu0 %vm201_vm4, %v308_v47  ;;  %v931_v47 = vld [vmem:[%s6380_s5 + $0x180] sm:$0xff]  ;;  %v5344_v18 = vpack.c.bf16 %v910_v14, %v909_v13  ;;  %v5400_v7 = vpack.c.bf16 %v914_v38, %v913_v37  ;;  %v385_v61 = vsub.s32 3, %v372_v53  ;;  %v374_v62 = vrot.slane %v369_v58, %v5426_v54 }
 0x2c0   :  { %4266 = vmatpush1.bf16.msra.mxu0 %v5153_v10  ;;  %4235 = vmatpush3.bf16.msra.mxu1 %v5158_v15  ;;  %v5274_v50 = vpack.c.bf16 %v932_v49, %v931_v47  ;;  %v5413_v47 = vpack.c.bf16 %v898_v44, %v897_v42  ;;  %v5422_v49 = vld [vmem:[%s6380_s5 + $0x1e0] sm:$0xff]  ;;  %6412 = vst [vmem:[#allocation2_spill] sm:$0xff] %v5431_v59 }
 0x2c1   :  { %4267 = vmatprep.subr.bf16.mxu0 %v6400_v48  ;;  %4237 = vmatprep.subr.bf16.mxu1 %v5165_v17  ;;  %v382_v63 = vrot.slane %v369_v58, %v381_v56  ;;  %v378_v4 = vrot.slane %v369_v58, %v5431_v59 }
 0x2c4   :  { %4269 = vmatpush1.bf16.msra.mxu0 %v5184_v24  ;;  %4239 = vmatpush3.bf16.msra.mxu1 %v5190_v26 }
 0x2c5   :  { %4270 = vmatprep.subr.bf16.mxu0 %v6400_v48  ;;  %4241 = vmatprep.subr.bf16.mxu1 %v5198_v0 }
 0x2c6   :  { %740 = vmatmul.mubr.bf16.gmra.mrb[8].mxu1 %v307_v31  ;;  %793 = vmatmul.mubr.bf16.gmra.mrb[4].mxu0 %v307_v31  ;;  %v896_v31 = vld [vmem:[%s6380_s5 + $0x68] sm:$0xff] }
 0x2c7   :  { %v5385_v35 = vpack.c.bf16 %v896_v31, %v895_v30 }
 0x2c8   :  { %4272 = vmatpush1.bf16.msra.mxu0 %v5209_v32  ;;  %4243 = vmatpush3.bf16.msra.mxu1 %v5212_v33 }
 0x2c9   :  { %4273 = vmatprep.subr.bf16.mxu0 %v6400_v48  ;;  %4245 = vmatprep.subr.bf16.mxu1 %v5288_v55 }
 0x2cc   :  { %4275 = vmatpush1.bf16.msra.mxu0 %v5223_v36  ;;  %4247 = vmatpush3.bf16.msra.mxu1 %v5302_v60 }
 0x2cd   :  { %4276 = vmatprep.subr.bf16.mxu0 %v6400_v48  ;;  %4249 = vmatprep.subr.bf16.mxu1 %v5316_v2 }
 0x2d0   :  { %4278 = vmatpush1.bf16.msra.mxu0 %v5234_v39  ;;  %4251 = vmatpush3.bf16.msra.mxu1 %v5329_v12 }
 0x2d1   :  { %4279 = vmatprep.subr.bf16.mxu0 %v6400_v48  ;;  %4253 = vmatprep.subr.bf16.mxu1 %v5344_v18 }
 0x2d4   :  { %4281 = vmatpush1.bf16.msra.mxu0 %v5244_v41  ;;  %4255 = vmatpush3.bf16.msra.mxu1 %v5357_v23 }
 0x2d5   :  { %4282 = vmatprep.subr.bf16.mxu0 %v6400_v48  ;;  %4257 = vmatprep.subr.bf16.mxu1 %v5372_v1 }
 0x2d8   :  { %4284 = vmatpush1.bf16.msra.mxu0 %v5254_v43  ;;  %4259 = vmatpush3.bf16.msra.mxu1 %v5385_v35 }
 0x2d9   :  { %4285 = vmatprep.subr.bf16.mxu0 %v6400_v48  ;;  %4261 = vmatprep.subr.bf16.mxu1 %v5400_v7 }
 0x2dc   :  { %4287 = vmatpush1.bf16.msra.mxu0 %v5264_v46  ;;  %4263 = vmatpush3.bf16.msra.mxu1 %v5413_v47 }
 0x2dd   :  { %4288 = vmatprep.subr.bf16.mxu0 %v6400_v48  ;;  %4307 = vmatprep.subr.bf16.mxu1 %v5130_v51  ;;  %v386_v51 = vrot.slane %v369_v58, %v385_v61 }
 0x2e0   :  { %4290 = vmatpush1.bf16.msra.mxu0 %v5274_v50 }
 0x2e1   :  { %4291 = vmatprep.subr.bf16.mxu0 %v6400_v48 }
 0x2e4   :  { %4293 = vmatpush1.bf16.msra.mxu0 %v5293_v57 }
 0x2e5   :  { %4294 = vmatprep.subr.bf16.mxu0 %v6400_v48 }
 0x2e8   :  { %4296 = vmatpush1.bf16.msra.mxu0 %v5327_v11 }
 0x2e9   :  { %4297 = vmatprep.subr.bf16.mxu0 %v6400_v48 }
 0x2ec   :  { %4299 = vmatpush1.bf16.msra.mxu0 %v5355_v22 }
 0x2ed   :  { %4300 = vmatprep.subr.bf16.mxu0 %v6400_v48 }
 0x2f0   :  { %4302 = vmatpush1.bf16.msra.mxu0 %v5383_v34 }
 0x2f1   :  { %4303 = vmatprep.subr.bf16.mxu0 %v6400_v48 }
 0x2f4   :  { %4305 = vmatpush1.bf16.msra.mxu0 %v5411_v45 }
 0x2f5   :  { %1098 = vmatprep.subr.mxu0 %v6402_v3 }
 0x2f8   :  { %1099 = vmatpush1.msra.mxu0 %v5422_v49 }
 0x391   :  { %v731_v5 = vpop.f32.mrb[4].mxu1  ;;  %v784_v6 = vpop.f32.mrb[0].mxu0 }
 0x392   :  { %v5435_v13 = vadd.f32 %v731_v5, %v374_v62  ;;  %v5437_v14 = vadd.f32 %v784_v6, %v382_v63  ;;  %v733_v16 = vpop.f32.mrb[5].mxu1  ;;  %v786_v19 = vpop.f32.mrb[1].mxu0 }
 0x393   :  { %v5439_v20 = vadd.f32 %v733_v16, %v378_v4  ;;  %v5441_v21 = vadd.f32 %v786_v19, %v386_v51  ;;  %v735_v25 = vpop.f32.mrb[6].mxu1  ;;  %v788_v27 = vpop.f32.mrb[2].mxu0 }
 0x394   :  { %v819_v28 = vmul.f32 1.442695, %v5435_v13  ;;  %v823_v29 = vmul.f32 1.442695, %v5437_v14  ;;  %v5447_v37 = vadd.f32 %v735_v25, %v374_v62  ;;  %v737_v38 = vpop.f32.mrb[7].mxu1  ;;  %v5449_v40 = vadd.f32 %v788_v27, %v382_v63  ;;  %v790_v42 = vpop.f32.mrb[3].mxu0 }
 0x395   :  { %v821_v30 = vmul.f32 1.442695, %v5439_v20  ;;  %v825_v31 = vmul.f32 1.442695, %v5441_v21  ;;  %v5451_v9 = vadd.f32 %v737_v38, %v378_v4  ;;  %v5454_v52 = vadd.f32 %v790_v42, %v386_v51 }
 0x396   :  { %4685 = vpow2.f32 %v819_v28  ;;  %v827_v44 = vmul.f32 1.442695, %v5447_v37  ;;  %v831_v53 = vmul.f32 1.442695, %v5449_v40  ;;  %vm804_vm12 = vcmp.gt.f32.partialorder %v5439_v20, 0.0 }
 0x397   :  { %4687 = vpow2.f32 %v823_v29  ;;  %v829_v56 = vmul.f32 1.442695, %v5451_v9  ;;  %v833_v58 = vmul.f32 1.442695, %v5454_v52  ;;  %vm803_vm14 = vcmp.gt.f32.partialorder %v5435_v13, 0.0 }
 0x398   :  { %4689 = vpow2.f32 %v821_v30  ;;  %vm806_vm15 = vcmp.gt.f32.partialorder %v5441_v21, 0.0  ;;  %vm805_vm0 = vcmp.gt.f32.partialorder %v5437_v14, 0.0  ;;  %vm808_vm2 = vcmp.gt.f32.partialorder %v5451_v9, 0.0 }
 0x399   :  { %4691 = vpow2.f32 %v825_v31  ;;  %v741_v61 = vpop.f32.mrb[8].mxu1  ;;  %v794_v5 = vpop.f32.mrb[4].mxu0  ;;  %vm810_vm3 = vcmp.gt.f32.partialorder %v5454_v52, 0.0  ;;  %vm807_vm5 = vcmp.gt.f32.partialorder %v5447_v37, 0.0  ;;  %vm809_vm6 = vcmp.gt.f32.partialorder %v5449_v40, 0.0 }
 0x39a   :  { %4693 = vpow2.f32 %v827_v44  ;;  %v5459_v6 = vadd.f32 %v741_v61, %v374_v62  ;;  %v5461_v16 = vadd.f32 %v794_v5, %v382_v63  ;;  %v743_v19 = vpop.f32.mrb[9].mxu1  ;;  %v796_v25 = vpop.f32.mrb[5].mxu0 }
 0x39b   :  { %4695 = vpow2.f32 %v831_v53  ;;  %v5463_v27 = vadd.f32 %v743_v19, %v378_v4  ;;  %v5465_v28 = vadd.f32 %v796_v25, %v386_v51  ;;  %v745_v29 = vpop.f32.mrb[10].mxu1  ;;  %v798_v30 = vpop.f32.mrb[6].mxu0 }
 0x39c   :  { %4697 = vpow2.f32 %v829_v56  ;;  %v835_v31 = vmul.f32 1.442695, %v5459_v6  ;;  %v839_v38 = vmul.f32 1.442695, %v5461_v16  ;;  %v5469_v42 = vadd.f32 %v745_v29, %v374_v62  ;;  %v747_v44 = vpop.f32.mrb[11].mxu1  ;;  %v800_v61 = vpop.f32.mrb[7].mxu0 }
 0x39d   :  { %4699 = vpow2.f32 %v833_v58  ;;  %v837_v5 = vmul.f32 1.442695, %v5463_v27  ;;  %v841_v53 = vmul.f32 1.442695, %v5465_v28  ;;  %v5474_v25 = vadd.f32 %v798_v30, %v382_v63 }
 0x39e   :  { %4701 = vpow2.f32 %v835_v31  ;;  %v843_v19 = vmul.f32 1.442695, %v5469_v42  ;;  %v5476_v8 = vadd.f32 %v747_v44, %v378_v4  ;;  %v5478_v56 = vadd.f32 %v800_v61, %v386_v51 }
 0x39f   :  { %4703 = vpow2.f32 %v839_v38  ;;  %v847_v62 = vmul.f32 1.442695, %v5474_v25  ;;  %vm812_vm7 = vcmp.gt.f32.partialorder %v5463_v27, 0.0  ;;  %vm814_vm8 = vcmp.gt.f32.partialorder %v5465_v28, 0.0 }
 0x3a0   :  { %v4686_v48 = vpop.eup %4685  ;;  %4705 = vpow2.f32 %v837_v5  ;;  %v845_v58 = vmul.f32 1.442695, %v5476_v8  ;;  %v849_v3 = vmul.f32 1.442695, %v5478_v56 }
 0x3a1   :  { %v4688_v29 = vpop.eup %4687  ;;  %4707 = vpow2.f32 %v841_v53  ;;  %v3912_v59 = vadd.f32 -1.0, %v4686_v48 }
 0x3a2   :  { %v4690_v31 = vpop.eup %4689  ;;  %4709 = vpow2.f32 %v843_v19  ;;  %v3914_v30 = vadd.f32 -1.0, %v4688_v29 }
 0x3a3   :  { %v4692_v63 = vpop.eup %4691  ;;  %4711 = vpow2.f32 %v847_v62  ;;  %v3913_v4 = vadd.f32 -1.0, %v4690_v31  ;;  %v5490_v5 = vsel %vm803_vm14, %v5435_v13, %v3912_v59  ;;  %vm813_vm14 = vcmp.gt.f32.partialorder %v5461_v16, 0.0 }
 0x3a4   :  { %v4694_v38 = vpop.eup %4693  ;;  %4713 = vpow2.f32 %v845_v58  ;;  %v3915_v51 = vadd.f32 -1.0, %v4692_v63  ;;  %v5498_v58 = vsel %vm805_vm0, %v5437_v14, %v3914_v30  ;;  %vm818_vm0 = vcmp.gt.f32.partialorder %v5478_v56, 0.0 }
 0x3a5   :  { %v4696_v44 = vpop.eup %4695  ;;  %4715 = vpow2.f32 %v849_v3  ;;  %v5487_v61 = vsel %vm804_vm12, %v5439_v20, %v3913_v4  ;;  %v3916_v19 = vadd.f32 -1.0, %v4694_v38  ;;  %vm811_vm12 = vcmp.gt.f32.partialorder %v5459_v6, 0.0 }
 0x3a6   :  { %v4698_v48 = vpop.eup %4697  ;;  %1021 = vmatprep.mubr.f32.mxu1 %v5487_v61  ;;  %v5495_v53 = vsel %vm806_vm15, %v5441_v21, %v3915_v51  ;;  %v3918_v59 = vadd.f32 -1.0, %v4696_v44  ;;  %vm816_vm15 = vcmp.gt.f32.partialorder %v5476_v8, 0.0 }
 0x3a7   :  { %v4700_v62 = vpop.eup %4699  ;;  %3928 = vmatprep.mubr.msk.f32.mxu0 %vm944_vm13, %v5495_v53  ;;  %1022 = vmatmul.mubr.f32.vlgmr.msra.gmra.mrb[12].mxu1 %v5490_v5  ;;  %v3917_v3 = vadd.f32 -1.0, %v4698_v48 }
 0x3a8   :  { %v4702_v13 = vpop.eup %4701  ;;  %1107 = vmatmul.mubr.f32.vlgmr.msra.gmra.mrb[8].mxu0 %v5498_v58  ;;  %4309 = vmatpush3.bf16.msra.mxu1 %v5158_v15  ;;  %v3919_v20 = vadd.f32 -1.0, %v4700_v62  ;;  %v5517_v15 = vsel %vm807_vm5, %v5447_v37, %v3916_v19  ;;  %vm1379_vm5 = vcmask 1043456  }
 0x3a9   :  { %v4704_v21 = vpop.eup %4703  ;;  %v5508_v14 = vsel %vm808_vm2, %v5451_v9, %v3917_v3  ;;  %4311 = vmatprep.subr.bf16.mxu1 %v5165_v17  ;;  %v3920_v63 = vadd.f32 -1.0, %v4702_v13  ;;  %v5524_v17 = vsel %vm809_vm6, %v5449_v40, %v3918_v59  ;;  %vm815_vm2 = vcmp.gt.f32.partialorder %v5469_v42, 0.0 }
 0x3aa   :  { %v4706_v29 = vpop.eup %4705  ;;  %1026 = vmatprep.mubr.f32.mxu1 %v5508_v14  ;;  %v5514_v31 = vsel %vm810_vm3, %v5454_v52, %v3919_v20  ;;  %v3922_v4 = vadd.f32 -1.0, %v4704_v21  ;;  %vm817_vm3 = vcmp.gt.f32.partialorder %v5474_v25, 0.0  ;;  %vm1127_vm6 = vcmask 31744  }
 0x3ab   :  { %v4708_v30 = vpop.eup %4707  ;;  %3929 = vmatprep.mubr.msk.f32.mxu0 %vm944_vm13, %v5514_v31  ;;  %1027 = vmatmul.mubr.f32.gmra.mrb[14].mxu1 %v5517_v15  ;;  %v3921_v9 = vadd.f32 -1.0, %v4706_v29 }
 0x3ac   :  { %v4710_v38 = vpop.eup %4709  ;;  %1112 = vmatmul.mubr.f32.gmra.mrb[10].mxu0 %v5524_v17  ;;  %4313 = vmatpush3.bf16.msra.mxu1 %v5190_v26  ;;  %v3923_v37 = vadd.f32 -1.0, %v4708_v30  ;;  %v5540_v26 = vsel %vm811_vm12, %v5459_v6, %v3920_v63  ;;  %vm1642_vm12 = vcmask 1039360  }
 0x3ad   :  { %v4712_v52 = vpop.eup %4711  ;;  %v5531_v51 = vsel %vm812_vm7, %v5463_v27, %v3921_v9  ;;  %4315 = vmatprep.subr.bf16.mxu1 %v5198_v0  ;;  %v3924_v48 = vadd.f32 -1.0, %v4710_v38  ;;  %v5547_v0 = vsel %vm813_vm14, %v5461_v16, %v3922_v4  ;;  %vm1368_vm7 = vcmask 1040384  }
 0x3ae   :  { %v4714_v40 = vpop.eup %4713  ;;  %1031 = vmatprep.mubr.f32.mxu1 %v5531_v51  ;;  %v5537_v44 = vsel %vm814_vm8, %v5465_v28, %v3923_v37  ;;  %v3926_v62 = vadd.f32 -1.0, %v4712_v52  ;;  %vm1946_vm8 = vcmask 1042432   ;;  %vm1939_vm14 = vcmask 842752  }
 0x3af   :  { %v4716_v19 = vpop.eup %4715  ;;  %3930 = vmatprep.mubr.msk.f32.mxu0 %vm944_vm13, %v5537_v44  ;;  %1032 = vmatmul.mubr.f32.gmra.mrb[16].mxu1 %v5540_v26  ;;  %v3925_v27 = vadd.f32 -1.0, %v4714_v40  ;;  %v5563_v3 = vsel %vm815_vm2, %v5469_v42, %v3924_v48  ;;  %vm4385_vm2 = vmpackc.low %vm265_vm9, %vm4727_vm1  ;;  %vm2524_vm1 = vcmask 1014784  }
 0x3b0   :  { %1117 = vmatmul.mubr.f32.gmra.mrb[12].mxu0 %v5547_v0  ;;  %4317 = vmatpush3.bf16.msra.mxu1 %v5212_v33  ;;  %v3927_v6 = vadd.f32 -1.0, %v4716_v19  ;;  %v1142_v33 = vmul.f32 %v5487_v61, %v5487_v61 }
 0x3b1   :  { %v5554_v28 = vsel %vm816_vm15, %v5476_v8, %v3925_v27  ;;  %4319 = vmatprep.subr.bf16.mxu1 %v5288_v55  ;;  %v5570_v8 = vsel %vm817_vm3, %v5474_v25, %v3926_v62  ;;  %v6413_v55 = vmov 0.0   ;;  %vm4735_vm15 = vmmov 0  }
 0x3b2   :  { %1036 = vmatprep.mubr.f32.mxu1 %v5554_v28  ;;  %v5560_v16 = vsel %vm818_vm0, %v5478_v56, %v3927_v6  ;;  %vm2528_vm0 = vcmask 1045504   ;;  %vm2070_vm3 = vcmask 252928  }
 0x3b3   :  { %3931 = vmatprep.mubr.msk.f32.mxu0 %vm944_vm13, %v5560_v16  ;;  %1037 = vmatmul.mubr.f32.gmra.mrb[18].mxu1 %v5563_v3 }
 0x3b4   :  { %1122 = vmatmul.mubr.f32.gmra.mrb[14].mxu0 %v5570_v8  ;;  %4321 = vmatpush3.bf16.msra.mxu1 %v5302_v60  ;;  %v1141_v60 = vmul.f32 %v5490_v5, %v5490_v5 }
 0x3b5   :  { %1233 = vmatprep.mubr.f32.mxu1 %v1142_v33  ;;  %4323 = vmatprep.subr.bf16.mxu1 %v5316_v2  ;;  %v6414_v2 = vmov 0.0|0.0  }
 0x3b6   :  { %1452 = vmatprep.mubr.f32.mxu0 %v6413_v55 }
 0x3b8   :  { %4325 = vmatpush3.bf16.msra.mxu1 %v5329_v12  ;;  %v1146_v12 = vmul.f32 %v5508_v14, %v5508_v14 }
 0x3b9   :  { %4327 = vmatprep.subr.bf16.mxu1 %v5344_v18  ;;  %v1145_v18 = vmul.f32 %v5517_v15, %v5517_v15 }
 0x3bc   :  { %4329 = vmatpush3.bf16.msra.mxu1 %v5357_v23  ;;  %v1150_v23 = vmul.f32 %v5531_v51, %v5531_v51 }
 0x3bd   :  { %4331 = vmatprep.subr.bf16.mxu1 %v5372_v1  ;;  %v1149_v1 = vmul.f32 %v5540_v26, %v5540_v26 }
 0x3c0   :  { %4333 = vmatpush3.bf16.msra.mxu1 %v5385_v35  ;;  %v1153_v35 = vmul.f32 %v5563_v3, %v5563_v3 }
 0x3c1   :  { %4335 = vmatprep.subr.bf16.mxu1 %v5400_v7 }
 0x3c4   :  { %4337 = vmatpush3.bf16.msra.mxu1 %v5413_v47 }
 0x3c5   :  { %4338 = vmatprep.subr.bf16.mxu1 %v6414_v2 }
 0x3c7   :  { %1234 = vmatmul.mubr.f32.vlgmr.msra.gmra.mrb[20].mxu1 %v1141_v60 }
 0x3c8   :  { %1238 = vmatprep.mubr.f32.mxu1 %v1146_v12  ;;  %4340 = vmatpush1.bf16.msra.mxu1 %v5153_v10  ;;  %v1154_v10 = vmul.f32 %v5554_v28, %v5554_v28 }
 0x3c9   :  { %4341 = vmatprep.subr.bf16.mxu1 %v6414_v2 }
 0x3cb   :  { %1239 = vmatmul.mubr.f32.gmra.mrb[22].mxu1 %v1145_v18 }
 0x3cc   :  { %1243 = vmatprep.mubr.f32.mxu1 %v1150_v23  ;;  %4343 = vmatpush1.bf16.msra.mxu1 %v5184_v24  ;;  %v1144_v24 = vmul.f32 %v5495_v53, %v5495_v53  ;;  %v5662_v23 = vld [vmem:[%s6382_s6 + $0x8] sm:$0xff] }
 0x3cd   :  { %4344 = vmatprep.subr.bf16.mxu1 %v6414_v2 }
 0x3cf   :  { %1244 = vmatmul.mubr.f32.gmra.mrb[24].mxu1 %v1149_v1 }
 0x3d0   :  { %1248 = vmatprep.mubr.f32.mxu1 %v1154_v10  ;;  %4346 = vmatpush1.bf16.msra.mxu1 %v5209_v32  ;;  %v1143_v32 = vmul.f32 %v5498_v58, %v5498_v58  ;;  %v1375_v10 = vcombine.high %v5662_v23, %v5662_v23 }
 0x3d1   :  { %4347 = vmatprep.subr.bf16.mxu1 %v6414_v2 }
 0x3d3   :  { %1249 = vmatmul.mubr.f32.gmra.mrb[26].mxu1 %v1153_v35 }
 0x3d4   :  { %4349 = vmatpush1.bf16.msra.mxu1 %v5223_v36  ;;  %3932 = vmatprep.mubr.msk.f32.mxu1 %vm944_vm13, %v1144_v24  ;;  %v1148_v36 = vmul.f32 %v5514_v31, %v5514_v31 }
 0x3d5   :  { %4350 = vmatprep.subr.bf16.mxu1 %v6414_v2 }
 0x3d8   :  { %4352 = vmatpush1.bf16.msra.mxu1 %v5234_v39  ;;  %v6415_v39 = vmov 0  }
 0x3d9   :  { %4353 = vmatprep.subr.bf16.mxu1 %v6414_v2 }
 0x3dc   :  { %4355 = vmatpush1.bf16.msra.mxu1 %v5244_v41  ;;  %v1147_v41 = vmul.f32 %v5524_v17, %v5524_v17 }
 0x3dd   :  { %4356 = vmatprep.subr.bf16.mxu1 %v6414_v2 }
 0x3e0   :  { %4358 = vmatpush1.bf16.msra.mxu1 %v5254_v43  ;;  %v1152_v43 = vmul.f32 %v5537_v44, %v5537_v44 }
 0x3e1   :  { %4359 = vmatprep.subr.bf16.mxu1 %v6414_v2 }
 0x3e4   :  { %4361 = vmatpush1.bf16.msra.mxu1 %v5264_v46  ;;  %v1151_v46 = vmul.f32 %v5547_v0, %v5547_v0 }
 0x3e5   :  { %4362 = vmatprep.subr.bf16.mxu1 %v6414_v2 }
 0x3e8   :  { %4364 = vmatpush1.bf16.msra.mxu1 %v5274_v50  ;;  %v1156_v50 = vmul.f32 %v5560_v16, %v5560_v16 }
 0x3e9   :  { %4365 = vmatprep.subr.bf16.mxu1 %v6414_v2 }
 0x3ec   :  { %4367 = vmatpush1.bf16.msra.mxu1 %v5293_v57  ;;  %v1155_v57 = vmul.f32 %v5570_v8, %v5570_v8 }
 0x3ed   :  { %4368 = vmatprep.subr.bf16.mxu1 %v6414_v2 }
 0x3f0   :  { %4370 = vmatpush1.bf16.msra.mxu1 %v5327_v11  ;;  %v1370_v11 = vld [vmem:[%s6382_s6] sm:$0xff] }
 0x3f1   :  { %4371 = vmatprep.subr.bf16.mxu1 %v6414_v2 }
 0x3f4   :  { %4373 = vmatpush1.bf16.msra.mxu1 %v5355_v22 }
 0x3f5   :  { %4374 = vmatprep.subr.bf16.mxu1 %v6414_v2 }
 0x3f8   :  { %4376 = vmatpush1.bf16.msra.mxu1 %v5383_v34  ;;  %v1374_v34 = vcombine.high %v1370_v11, %v1370_v11 }
 0x3f9   :  { %4377 = vmatprep.subr.bf16.mxu1 %v6414_v2 }
 0x3fa   :  { %3936 = vmatprep.subr.msk.mxu0 %vm1379_vm5, %v1374_v34 }
 0x3fb   :  { %3937 = vmatpush1.msk.msra.mxu0 %vm1379_vm5, %v1370_v11 }
 0x3fc   :  { %4379 = vmatpush1.bf16.msra.mxu1 %v5411_v45  ;;  %3939 = vmatprep.subr.msk.mxu0 %vm1379_vm5, %v1375_v10 }
 0x3fd   :  { %1310 = vmatprep.subr.mxu1 %v6413_v55 }
 0x400   :  { %1311 = vmatpush1.msra.mxu1 %v5422_v49 }
 0x401   :  { %1319 = vmatmul.mubr.f32.vlgmr.msra.gmra.mrb[28].mxu1 %v1143_v32  ;;  %2001 = vmatprep.subr.bf16.mxu1 %v6415_v39 }
 0x402   :  { %3933 = vmatprep.mubr.msk.f32.mxu1 %vm944_vm13, %v1148_v36 }
 0x405   :  { %1324 = vmatmul.mubr.f32.gmra.mrb[30].mxu1 %v1147_v41 }
 0x406   :  { %3934 = vmatprep.mubr.msk.f32.mxu1 %vm944_vm13, %v1152_v43 }
 0x409   :  { %1329 = vmatmul.mubr.f32.gmra.mrb[32].mxu1 %v1151_v46 }
 0x40a   :  { %3935 = vmatprep.mubr.msk.f32.mxu1 %vm944_vm13, %v1156_v50 }
 0x40d   :  { %1334 = vmatmul.mubr.f32.gmra.mrb[34].mxu1 %v1155_v57 }
 0x47a   :  { %v4107_v22 = vpop.f32.mrb[12].mxu1 }
 0x47b   :  { %v1108_v7 = vpop.f32.mrb[8].mxu0  ;;  %v4108_v45 = vpop.f32.mrb[13].mxu1 }
 0x47c   :  { %v4109_v47 = vadd.f32 %v4108_v45, %v4107_v22  ;;  %v1110_v49 = vpop.f32.mrb[9].mxu0 }
 0x47e   :  { %v1109_v42 = vadd.f32 %v4109_v47, %v1108_v7  ;;  %v4110_v25 = vpop.f32.mrb[14].mxu1 }
 0x47f   :  { %v1113_v56 = vpop.f32.mrb[10].mxu0  ;;  %v4111_v59 = vpop.f32.mrb[15].mxu1 }
 0x480   :  { %v4112_v13 = vadd.f32 %v4111_v59, %v4110_v25  ;;  %v1115_v20 = vpop.f32.mrb[11].mxu0  ;;  %v1128_v9 = vsel %vm1127_vm6, %v1109_v42, 0.0 }
 0x482   :  { %v1114_v21 = vadd.f32 %v4112_v13, %v1113_v56  ;;  %v4113_v29 = vpop.f32.mrb[16].mxu1 }
 0x483   :  { %v1118_v63 = vpop.f32.mrb[12].mxu0  ;;  %v4114_v30 = vpop.f32.mrb[17].mxu1 }
 0x484   :  { %v1129_v4 = vsel %vm1127_vm6, %v1114_v21, 0.0  ;;  %v4115_v38 = vadd.f32 %v4114_v30, %v4113_v29  ;;  %v1120_v37 = vpop.f32.mrb[13].mxu0 }
 0x485   :  { %v1130_v52 = vadd.f32 %v1129_v4, %v1128_v9 }
 0x486   :  { %v1119_v40 = vadd.f32 %v4115_v38, %v1118_v63  ;;  %v4116_v48 = vpop.f32.mrb[18].mxu1 }
 0x487   :  { %v1123_v19 = vpop.f32.mrb[14].mxu0  ;;  %v4117_v27 = vpop.f32.mrb[19].mxu1 }
 0x488   :  { %v1131_v62 = vsel %vm1127_vm6, %v1119_v40, 0.0  ;;  %v4118_v6 = vadd.f32 %v4117_v27, %v4116_v48  ;;  %v1125_v33 = vpop.f32.mrb[15].mxu0 }
 0x489   :  { %v1132_v60 = vadd.f32 %v1131_v62, %v1130_v52 }
 0x48a   :  { %v1124_v12 = vadd.f32 %v4118_v6, %v1123_v19 }
 0x48c   :  { %v1133_v18 = vsel %vm1127_vm6, %v1124_v12, 0.0 }
 0x48d   :  { %v1134_v1 = vadd.f32 %v1133_v18, %v1132_v60 }
 0x48f   :  { %v1135_v49 = vrot.slane %v1134_v1, 4 }
 0x491   :  { %v1136_v59 = vadd.f32 %v1135_v49, %v1134_v1  ;;  %v4649_v49 = vld [vmem:[%s6384_s8 + $0x40] sm:$0xff]  }
 0x493   :  { %v1137_v9 = vrot.slane %v1136_v59, 2 }
 0x495   :  { %v1138_v48 = vadd.f32 %v1137_v9, %v1136_v59  ;;  %v4653_v59 = vld [vmem:[%s6384_s8 + $0x8] sm:$0xff]   ;;  %v4647_v9 = vld [vmem:[%s6384_s8 + $0xb0] sm:$0xff]  }
 0x497   :  { %v1139_v62 = vrot.slane %v1138_v48, 1 }
 0x499   :  { %v1140_v60 = vadd.f32 %v1139_v62, %v1138_v48  ;;  %v4660_v48 = vld [vmem:[%s6384_s8 + $0xd8] sm:$0xff]  }
 0x49a   :  { %v4151_v35 = vpop.f32.mrb[20].mxu1 }
 0x49b   :  { %v4152_v24 = vpop.f32.mrb[21].mxu1  ;;  %v1353_v1 = vmul.f32 0.00025614753, %v1140_v60 }
 0x49c   :  { %v4153_v32 = vadd.f32 %v4152_v24, %v4151_v35 }
 0x49e   :  { %v4154_v36 = vpop.f32.mrb[22].mxu1 }
 0x49f   :  { %v4155_v41 = vpop.f32.mrb[23].mxu1 }
 0x4a0   :  { %v4156_v43 = vadd.f32 %v4155_v41, %v4154_v36 }
 0x4a2   :  { %v4157_v46 = vpop.f32.mrb[24].mxu1 }
 0x4a3   :  { %v4158_v50 = vpop.f32.mrb[25].mxu1 }
 0x4a4   :  { %v4159_v57 = vadd.f32 %v4158_v50, %v4157_v46 }
 0x4a6   :  { %v4160_v11 = vpop.f32.mrb[26].mxu1 }
 0x4a7   :  { %v4161_v22 = vpop.f32.mrb[27].mxu1 }
 0x4a8   :  { %v4162_v34 = vadd.f32 %v4161_v22, %v4160_v11 }
 0x4d4   :  { %v1320_v7 = vpop.f32.mrb[28].mxu1 }
 0x4d5   :  { %v1321_v45 = vadd.f32 %v4153_v32, %v1320_v7  ;;  %v1322_v47 = vpop.f32.mrb[29].mxu1  ;;  %v1355_v32 = vmul.f32 %v1353_v1, %v1353_v1 }
 0x4d6   :  { %v4642_v47 = vld [vmem:[%s6384_s8 + $0x88] sm:$0xff]  }
 0x4d7   :  { %v1339_v13 = vsel %vm1127_vm6, %v1321_v45, 0.0  ;;  %v4641_v45 = vld [vmem:[%s6384_s8 + $0x80] sm:$0xff]  }
 0x4d8   :  { %v1325_v42 = vpop.f32.mrb[30].mxu1  ;;  %2002 = vmatpush1.bf16.msra.mxu1 %v4641_v45 }
 0x4d9   :  { %v1326_v25 = vadd.f32 %v4156_v43, %v1325_v42  ;;  %v1327_v56 = vpop.f32.mrb[31].mxu1  ;;  %v1358_v43 = vld [vmem:[%s6383_s7] sm:$0x1]  ;;  %2003 = vmatprep.subr.bf16.mxu1 %v6415_v39 }
 0x4da   :  { %v4650_v42 = vld [vmem:[%s6384_s8] sm:$0xff]   ;;  %v4652_v56 = vld [vmem:[%s6384_s8 + $0x48] sm:$0xff]  }
 0x4db   :  { %v1340_v20 = vsel %vm1127_vm6, %v1326_v25, 0.0  ;;  %v4644_v25 = vld [vmem:[%s6384_s8 + $0x98] sm:$0xff]  }
 0x4dc   :  { %v1341_v21 = vadd.f32 %v1340_v20, %v1339_v13  ;;  %v1330_v29 = vpop.f32.mrb[32].mxu1  ;;  %2004 = vmatpush1.bf16.msra.mxu1 %v4642_v47  ;;  %v4645_v13 = vld [vmem:[%s6384_s8 + $0xa0] sm:$0xff]   ;;  %v4655_v20 = vld [vmem:[%s6384_s8 + $0x50] sm:$0xff]  }
 0x4dd   :  { %v1331_v63 = vadd.f32 %v4159_v57, %v1330_v29  ;;  %v1332_v30 = vpop.f32.mrb[33].mxu1  ;;  %v1362_v57 = vld [vmem:[%s6383_s7 + $0x1] sm:$0x1]  ;;  %2005 = vmatprep.subr.bf16.mxu1 %v6415_v39  ;;  %v4658_v29 = vld [vmem:[%s6384_s8 + $0x58] sm:$0xff]   ;;  %s4739_s7 = smov 108  }
 0x4de   :  { %v4659_v30 = vld [vmem:[%s6384_s8 + $0x18] sm:$0xff]  }
 0x4df   :  { %v1342_v4 = vsel %vm1127_vm6, %v1331_v63, 0.0  ;;  %v4646_v63 = vld [vmem:[%s6384_s8 + $0xa8] sm:$0xff]  }
 0x4e0   :  { %v1343_v38 = vadd.f32 %v1342_v4, %v1341_v21  ;;  %v1335_v37 = vpop.f32.mrb[34].mxu1  ;;  %v4656_v21 = vld [vmem:[%s6384_s8 + $0x10] sm:$0xff]   ;;  %v4661_v4 = vld [vmem:[%s6384_s8 + $0x60] sm:$0xff]  }
 0x4e1   :  { %v1336_v52 = vadd.f32 %v4162_v34, %v1335_v37  ;;  %v1337_v40 = vpop.f32.mrb[35].mxu1  ;;  %v4651_v37 = vld [vmem:[%s6384_s8 + $0xc0] sm:$0xff]  }
 0x4e2   :  { %v4657_v40 = vld [vmem:[%s6384_s8 + $0xd0] sm:$0xff]  }
 0x4e3   :  { %v1344_v19 = vsel %vm1127_vm6, %v1336_v52, 0.0  ;;  %v4654_v52 = vld [vmem:[%s6384_s8 + $0xc8] sm:$0xff]  }
 0x4e4   :  { %v1345_v27 = vadd.f32 %v1344_v19, %v1343_v38  ;;  %v4648_v38 = vld [vmem:[%s6384_s8 + $0xb8] sm:$0xff]  }
 0x4e6   :  { %v1346_v6 = vrot.slane %v1345_v27, 4 }
 0x4e8   :  { %v1347_v33 = vadd.f32 %v1346_v6, %v1345_v27  ;;  %v4662_v6 = vld [vmem:[%s6384_s8 + $0x20] sm:$0xff]  }
 0x4ea   :  { %v1348_v12 = vrot.slane %v1347_v33, 2 }
 0x4ec   :  { %v1349_v18 = vadd.f32 %v1348_v12, %v1347_v33  ;;  %v4663_v33 = vld [vmem:[%s6384_s8 + $0xe0] sm:$0xff]  }
 0x4ee   :  { %v1350_v10 = vrot.slane %v1349_v18, 1 }
 0x4f0   :  { %v1351_v35 = vadd.f32 %v1350_v10, %v1349_v18  ;;  %v4664_v10 = vld [vmem:[%s6384_s8 + $0x68] sm:$0xff]  }
 0x4f2   :  { %v1354_v24 = vmul.f32 0.00025614753, %v1351_v35 }
 0x4f4   :  { %v1356_v36 = vsub.f32 %v1354_v24, %v1355_v32  ;;  %v6416_v32 = vld [vmem:[#allocation2_spill] sm:$0xff] }
 0x4f6   :  { %v1357_v41 = vmax.f32 %v1356_v36, 0.0 }
 0x4f8   :  { %4717 = vrsqrt.f32 %v1357_v41 }
 0x502   :  { %v4718_v46 = vpop.eup %4717 }
 0x503   :  { %v1361_v50 = vmul.f32 %v4718_v46, %v1358_v43 }
 0x505   :  { %v1363_v11 = vmul.f32 %v1361_v50, %v1353_v1 }
 0x507   :  { %v1364_v22 = vsub.f32 %v1362_v57, %v1363_v11 }
 0x509   :  { %v1366_v34 = vrot.slane %v1364_v22, 7 }
 0x50b   :  { %v1369_v7 = vsel %vm1368_vm7, %v1361_v50, %v1366_v34 }
 0x50c   :  { %3938 = vmatmul.mubr.msk.f32.vlgmr.msra.gmra.mrb[16].mxu0 %vm1127_vm6, %v1369_v7 }
 0x50d   :  { %3940 = vmatpush1.msk.msra.mxu0 %vm1379_vm5, %v5662_v23  ;;  %1523 = vmatprep.mubr.f32.mxu0 %v6413_v55  ;;  %v4643_v23 = vld [vmem:[%s6384_s8 + $0x90] sm:$0xff]  }
 0x50e   :  { %2006 = vmatpush1.bf16.msra.mxu1 %v4643_v23  ;;  %4163 = vmatprep.subr.bf16.mxu0 %v4649_v49 }
 0x50f   :  { %2007 = vmatprep.subr.bf16.mxu1 %v6415_v39 }
 0x510   :  { %3941 = vmatmul.mubr.msk.f32.vlgmr.msra.gmra.mrb[18].mxu0 %vm1127_vm6, %v1369_v7 }
 0x511   :  { %4164 = vmatpush3.bf16.msra.mxu0 %v4650_v42 }
 0x512   :  { %4165 = vmatprep.subr.bf16.mxu0 %v4652_v56  ;;  %2008 = vmatpush1.bf16.msra.mxu1 %v4644_v25  ;;  %v4668_v25 = vld [vmem:[%s6384_s8 + $0x30] sm:$0xff]  }
 0x513   :  { %2009 = vmatprep.subr.bf16.mxu1 %v6415_v39 }
 0x515   :  { %4166 = vmatpush3.bf16.msra.mxu0 %v4653_v59 }
 0x516   :  { %4167 = vmatprep.subr.bf16.mxu0 %v4655_v20  ;;  %2010 = vmatpush1.bf16.msra.mxu1 %v4645_v13  ;;  %v4669_v13 = vld [vmem:[%s6384_s8 + $0xf0] ss:$0 sps:$4 sm:$0xff]  }
 0x517   :  { %2011 = vmatprep.subr.bf16.mxu1 %v6415_v39 }
 0x519   :  { %4168 = vmatpush3.bf16.msra.mxu0 %v4656_v21 }
 0x51a   :  { %4169 = vmatprep.subr.bf16.mxu0 %v4658_v29  ;;  %2012 = vmatpush1.bf16.msra.mxu1 %v4646_v63 }
 0x51b   :  { %2013 = vmatprep.subr.bf16.mxu1 %v6415_v39 }
 0x51d   :  { %4170 = vmatpush3.bf16.msra.mxu0 %v4659_v30  ;;  %v4734_v30 = vmov 65535  }
 0x51e   :  { %4171 = vmatprep.subr.bf16.mxu0 %v4661_v4  ;;  %2014 = vmatpush1.bf16.msra.mxu1 %v4647_v9  ;;  %v1947_v9 = vsel %vm1946_vm8, 4294967295, %v4734_v30  ;;  %v4671_v4 = vld [vmem:[%s6384_s8 + $0x38] sm:$0xff]   ;;  %vm2986_vm8 = vcmask 949248  }
 0x51f   :  { %2015 = vmatprep.subr.bf16.mxu1 %v6415_v39 }
 0x521   :  { %4172 = vmatpush3.bf16.msra.mxu0 %v4662_v6 }
 0x522   :  { %2016 = vmatpush1.bf16.msra.mxu1 %v4648_v38  ;;  %4173 = vmatprep.subr.bf16.mxu0 %v4664_v10 }
 0x523   :  { %2017 = vmatprep.subr.bf16.mxu1 %v6415_v39 }
 0x526   :  { %2018 = vmatpush1.bf16.msra.mxu1 %v4651_v37 }
 0x527   :  { %2019 = vmatprep.subr.bf16.mxu1 %v6415_v39 }
 0x52a   :  { %2020 = vmatpush1.bf16.msra.mxu1 %v4654_v52 }
 0x52b   :  { %2021 = vmatprep.subr.bf16.mxu1 %v6415_v39 }
 0x52e   :  { %2022 = vmatpush1.bf16.msra.mxu1 %v4657_v40  ;;  %v1948_v40 = vsel %vm1379_vm5, %v1947_v9, 0 }
 0x52f   :  { %2023 = vmatprep.subr.bf16.mxu1 %v6415_v39 }
 0x532   :  { %2024 = vmatpush1.bf16.msra.mxu1 %v4660_v48  ;;  %v1950_v48 = vand.u32 %v4669_v13, %v1948_v40 }
 0x533   :  { %2025 = vmatprep.subr.bf16.mxu1 %v6415_v39 }
 0x536   :  { %2026 = vmatpush1.bf16.msra.mxu1 %v4663_v33 }
 0x537   :  { %2027 = vmatprep.subr.bf16.mxu1 %v6415_v39 }
 0x5df   :  { %v1454_v19 = vpop.f32.mrb[16].mxu0 }
 0x5e0   :  { %v1456_v27 = vpop.f32.mrb[17].mxu0  ;;  %v5774_v35 = vrot.slane %v1454_v19, %v5426_v54  ;;  %v1565_v47 = vrot.slane %v1454_v19, %v6416_v32 }
 0x5e1   :  { %v5759_v62 = vrot.slane %v1456_v27, %v5426_v54  ;;  %v5779_v36 = vrot.slane %v1456_v27, %v6416_v32 }
 0x5e2   :  { %v1550_v42 = vmul.f32 %v5774_v35, %v5517_v15  ;;  %v1554_v19 = vmul.f32 %v5774_v35, %v5540_v26  ;;  %v1558_v33 = vmul.f32 %v5774_v35, %v5563_v3 }
 0x5e3   :  { %v1525_v60 = vpop.f32.mrb[18].mxu0  ;;  %v1547_v1 = vmul.f32 %v5759_v62, %v5487_v61  ;;  %v1551_v7 = vmul.f32 %v5759_v62, %v5508_v14  ;;  %v1559_v45 = vmul.f32 %v5759_v62, %v5554_v28  ;;  %v1546_v14 = vmul.f32 %v5774_v35, %v5490_v5 }
 0x5e4   :  { %v1541_v12 = vrot.slane %v1525_v60, %v5426_v54  ;;  %v1527_v18 = vpop.f32.mrb[19].mxu0  ;;  %v1573_v41 = vrot.slane %v1525_v60, %v6416_v32  ;;  %v5847_v29 = vadd.f32 %v1565_v47, %v1550_v42  ;;  %v5884_v3 = vadd.f32 %v1565_v47, %v1558_v33 }
 0x5e5   :  { %v1545_v24 = vrot.slane %v1527_v18, %v5426_v54  ;;  %v1577_v46 = vrot.slane %v1527_v18, %v6416_v32  ;;  %v5789_v22 = vadd.f32 %v5779_v36, %v1547_v1  ;;  %v5830_v15 = vadd.f32 %v5779_v36, %v1551_v7 }
 0x5e6   :  { %v1548_v43 = vmul.f32 %v1541_v12, %v5498_v58  ;;  %v1552_v61 = vmul.f32 %v1541_v12, %v5524_v17  ;;  %v1560_v11 = vmul.f32 %v1541_v12, %v5570_v8  ;;  %v4665_v58 = vld [vmem:[%s6384_s8 + $0x28] sm:$0xff]   ;;  %v5837_v20 = vadd.f32 %v5779_v36, %v1559_v45 }
 0x5e7   :  { %v1549_v50 = vmul.f32 %v1545_v24, %v5495_v53  ;;  %v1553_v57 = vmul.f32 %v1545_v24, %v5514_v31  ;;  %v4666_v53 = vld [vmem:[%s6384_s8 + $0xe8] sm:$0xff]   ;;  %v4667_v31 = vld [vmem:[%s6384_s8 + $0x70] sm:$0xff]   ;;  %4174 = vmatpush3.bf16.msra.mxu0 %v4665_v58  ;;  %v1557_v5 = vmul.f32 %v1545_v24, %v5537_v44  ;;  %v1561_v59 = vmul.f32 %v1545_v24, %v5560_v16  ;;  %v4670_v16 = vld [vmem:[%s6384_s8 + $0x78] sm:$0xff]  }
 0x5e8   :  { %v5791_v34 = vadd.f32 %v1573_v41, %v1548_v43  ;;  %v5815_v49 = vadd.f32 %v1573_v41, %v1552_v61  ;;  %v5824_v56 = vadd.f32 %v1573_v41, %v1560_v11  ;;  %2028 = vmatpush1.bf16.msra.mxu1 %v4666_v53  ;;  %4175 = vmatprep.subr.bf16.mxu0 %v4667_v31 }
 0x5e9   :  { %v5804_v17 = vadd.f32 %v1577_v46, %v1549_v50  ;;  %v5806_v8 = vadd.f32 %v1577_v46, %v1553_v57  ;;  %v5839_v44 = vadd.f32 %v1565_v47, %v1546_v14  ;;  %2029 = vmatprep.subr.bf16.mxu1 %v6415_v39  ;;  %v1556_v63 = vmul.f32 %v1541_v12, %v5547_v0 }
 0x5ea   :  { %v4508_v23 = vpack.i.bf16 %v5791_v34, %v5789_v22  ;;  %v4513_v21 = vpack.i.bf16 %v5815_v49, %v5830_v15  ;;  %v4533_v38 = vpack.i.bf16 %v5824_v56, %v5837_v20  ;;  %v5855_v37 = vadd.f32 %v1577_v46, %v1557_v5 }
 0x5eb   :  { %v4528_v28 = vpack.i.bf16 %v5806_v8, %v5804_v17  ;;  %4176 = vmatpush3.bf16.msra.mxu0 %v4668_v25  ;;  %v5857_v52 = vadd.f32 %v1577_v46, %v1561_v59  ;;  %v1555_v0 = vmul.f32 %v5759_v62, %v5531_v51  ;;  %v4518_v27 = vpack.i.bf16 %v5847_v29, %v5839_v44 }
 0x5ec   :  { %4509 = vrot.lane.b32.xlu1 %v4508_v23, %s4733_s22  ;;  %4177 = vmatprep.subr.bf16.mxu0 %v4670_v16  ;;  %v5868_v6 = vadd.f32 %v1573_v41, %v1556_v63  ;;  %v5882_v62 = vadd.f32 %v1565_v47, %v1554_v19 }
 0x5ed   :  { %4529 = vrot.lane.b32.xlu0 %v4528_v28, %s4733_s22  ;;  %2030 = vmatpush1.bf16.msra.mxu1 %v1950_v48  ;;  %v4543_v60 = vpack.i.bf16 %v5857_v52, %v5855_v37  ;;  %v5877_v51 = vadd.f32 %v5779_v36, %v1555_v0 }
 0x5ee   :  { %v4538_v12 = vpack.i.bf16 %v5884_v3, %v5882_v62 }
 0x5ef   :  { %4178 = vmatpush3.bf16.msra.mxu0 %v4671_v4  ;;  %v4523_v26 = vpack.i.bf16 %v5868_v6, %v5877_v51 }
 0x5f0   :  { %4514 = vrot.lane.b32.xlu1 %v4513_v21, %s4733_s22  ;;  %4380 = vmatprep.subr.bf16.mxu0 %v6414_v2 }
 0x5f1   :  { %4534 = vrot.lane.b32.xlu0 %v4533_v38, %s4733_s22 }
 0x5f4   :  { %4519 = vrot.lane.b32.xlu1 %v4518_v27, %s4733_s22 }
 0x5f5   :  { %4544 = vrot.lane.b32.xlu0 %v4543_v60, %s4733_s22 }
 0x5f8   :  { %4524 = vrot.lane.b32.xlu1 %v4523_v26, %s4733_s22 }
 0x5fc   :  { %4539 = vrot.lane.b32.xlu1 %v4538_v12, %s4733_s22 }
 0x65e   :  { %v4510_v18 = vpop.permute.xlu1 %4509 }
 0x65f   :  { %v4512_v1 = vunpack.i.h.bf16 %v4510_v18  ;;  %v4511_v10 = vunpack.i.l.bf16 %v4510_v18  ;;  %v4530_v35 = vpop.permute.xlu0 %4529 }
 0x660   :  { %v4532_v24 = vunpack.i.h.bf16 %v4530_v35  ;;  %v4531_v36 = vunpack.i.l.bf16 %v4530_v35 }
 0x661   :  { %v1644_v41 = vsel %vm1642_vm12, %v4511_v10, %v4512_v1 }
 0x662   :  { %v1678_v43 = vmax.f32 %v5806_v8, %v4532_v24  ;;  %v1645_v61 = vsel %vm1642_vm12, %v4512_v1, %v4531_v36  ;;  %v1674_v46 = vmax.f32 %v5804_v17, %v4531_v36  ;;  %v4515_v50 = vpop.permute.xlu1 %4514  ;;  %v1672_v14 = vmax.f32 %v5789_v22, %v1644_v41  ;;  %v2162_v41 = vld [vmem:[%s6385_s10 + $0x70] sm:$0xff] }
 0x663   :  { %v4517_v57 = vunpack.i.h.bf16 %v4515_v50  ;;  %v4516_v11 = vunpack.i.l.bf16 %v4515_v50  ;;  %v4535_v7 = vpop.permute.xlu0 %4534  ;;  %v1673_v53 = vmax.f32 %v5791_v34, %v1645_v61  ;;  %v2170_v50 = vld [vmem:[%s6385_s10 + $0xb0] sm:$0xff] }
 0x664   :  { %v1690_v58 = vpack.c.bf16 %v1678_v43, %v1674_v46  ;;  %v4537_v47 = vunpack.i.h.bf16 %v4535_v7  ;;  %v4536_v23 = vunpack.i.l.bf16 %v4535_v7  ;;  %v2166_v46 = vld [vmem:[%s6385_s10 + $0x90] sm:$0xff] }
 0x665   :  { %v1647_v31 = vsel %vm1642_vm12, %v4516_v11, %v4517_v57  ;;  %v1648_v45 = vsel %vm1642_vm12, %v4517_v57, %v4532_v24  ;;  %v3997_v57 = vcombine.low %v2166_v46, %v2170_v50  ;;  %v2174_v7 = vld [vmem:[%s6385_s10 + $0xd0] sm:$0xff] }
 0x666   :  { %v1677_v8 = vmax.f32 %v5815_v49, %v1648_v45  ;;  %v4520_v42 = vpop.permute.xlu1 %4519  ;;  %3973 = vmatprep.mubr.msk.bf16.mxu1 %vm1939_vm14, %v1690_v58  ;;  %v1676_v17 = vmax.f32 %v5830_v15, %v1647_v31  ;;  %v1653_v49 = vsel %vm1642_vm12, %v4536_v23, %v4537_v47  ;;  %v2178_v58 = vld [vmem:[%s6385_s10 + $0xf0] sm:$0xff] }
 0x667   :  { %v4522_v25 = vunpack.i.h.bf16 %v4520_v42  ;;  %v4521_v28 = vunpack.i.l.bf16 %v4520_v42  ;;  %v4545_v5 = vpop.permute.xlu0 %4544  ;;  %v4006_v31 = vcombine.high %v2174_v7, %v2178_v58  ;;  %v2182_v45 = vld [vmem:[%s6385_s10 + $0x110] sm:$0xff] }
 0x668   :  { %v1689_v59 = vpack.c.bf16 %v1677_v8, %v1673_v53  ;;  %v4547_v34 = vunpack.i.h.bf16 %v4545_v5  ;;  %v4546_v13 = vunpack.i.l.bf16 %v4545_v5  ;;  %v1688_v16 = vpack.c.bf16 %v1676_v17, %v1672_v14  ;;  %v2186_v14 = vld [vmem:[%s6385_s10 + $0x130] sm:$0xff] }
 0x669   :  { %v1643_v21 = vsel %vm1642_vm12, %v4521_v28, %v4511_v10  ;;  %v1646_v22 = vsel %vm1642_vm12, %v4522_v25, %v4516_v11  ;;  %v3998_v11 = vcombine.high %v2166_v46, %v2170_v50  ;;  %v4005_v53 = vcombine.low %v2174_v7, %v2178_v58  ;;  %v2194_v42 = vld [vmem:[%s6385_s10 + $0x170] sm:$0xff]  ;;  %v2148_v46 = vld [vmem:[%s6385_s10] sm:$0xff] }
 0x66a   :  { %v1671_v63 = vmax.f32 %v5839_v44, %v1643_v21  ;;  %v1675_v30 = vmax.f32 %v5847_v29, %v1646_v22  ;;  %v1686_v9 = vmax.f32 %v5857_v52, %v4547_v34  ;;  %v4525_v15 = vpop.permute.xlu1 %4524  ;;  %1984 = vmatprep.mubr.bf16.mxu0 %v1688_v16  ;;  %v1654_v4 = vsel %vm1642_vm12, %v4537_v47, %v4547_v34  ;;  %v2198_v28 = vld [vmem:[%s6385_s10 + $0x190] sm:$0xff]  ;;  %v2152_v50 = vld [vmem:[%s6385_s10 + $0x20] sm:$0xff] }
 0x66b   :  { %v1682_v38 = vmax.f32 %v5855_v37, %v4546_v13  ;;  %v4527_v40 = vunpack.i.h.bf16 %v4525_v15  ;;  %v4526_v0 = vunpack.i.l.bf16 %v4525_v15  ;;  %2034 = vmatmul.mubr.bf16.vlgmr.msra.gmra.mrb[36].mxu1 %v1689_v59  ;;  %v1684_v52 = vmax.f32 %v5837_v20, %v1653_v49  ;;  %v2202_v5 = vld [vmem:[%s6385_s10 + $0x1b0] sm:$0xff]  ;;  %v2156_v7 = vld [vmem:[%s6385_s10 + $0x40] sm:$0xff] }
 0x66c   :  { %v1687_v48 = vpack.c.bf16 %v1675_v30, %v1671_v63  ;;  %v1685_v26 = vmax.f32 %v5824_v56, %v1654_v4  ;;  %v2150_v56 = vld [vmem:[%s6385_s10 + $0x10] sm:$0xff]  ;;  %v4013_v8 = vcombine.low %v2182_v45, %v2186_v14  ;;  %v4014_v47 = vcombine.high %v2182_v45, %v2186_v14  ;;  %v2160_v58 = vld [vmem:[%s6385_s10 + $0x60] sm:$0xff] }
 0x66d   :  { %v1694_v19 = vpack.c.bf16 %v1686_v9, %v1682_v38  ;;  %v1650_v27 = vsel %vm1642_vm12, %v4526_v0, %v4527_v40  ;;  %v1651_v33 = vsel %vm1642_vm12, %v4527_v40, %v4546_v13  ;;  %v4029_v59 = vcombine.low %v2198_v28, %v2202_v5  ;;  %v5968_v13 = vld [vmem:[%s6385_s10 + $0x1d0] sm:$0xff]  ;;  %v2164_v14 = vld [vmem:[%s6385_s10 + $0x80] sm:$0xff] }
 0x66e   :  { %v4540_v44 = vpop.permute.xlu1 %4539  ;;  %1985 = vmatmul.mubr.bf16.vlgmr.msra.gmra.mrb[20].mxu0 %v1687_v48  ;;  %v1680_v29 = vmax.f32 %v5877_v51, %v1650_v27  ;;  %v1681_v60 = vmax.f32 %v5868_v6, %v1651_v33  ;;  %v2154_v6 = vld [vmem:[%s6385_s10 + $0x30] sm:$0xff]  ;;  %v4030_v34 = vcombine.high %v2198_v28, %v2202_v5  ;;  %v3986_v45 = vcombine.high %v2156_v7, %v2160_v58  ;;  %v2180_v5 = vld [vmem:[%s6385_s10 + $0x100] sm:$0xff] }
 0x66f   :  { %v4542_v37 = vunpack.i.h.bf16 %v4540_v44  ;;  %v4541_v12 = vunpack.i.l.bf16 %v4540_v44  ;;  %3974 = vmatprep.mubr.msk.bf16.mxu1 %vm1939_vm14, %v1694_v19  ;;  %v3982_v36 = vcombine.high %v2150_v56, %v2154_v6  ;;  %v5973_v16 = vld [vmem:[%s6385_s10 + $0x1f0] sm:$0x33] }
 0x670   :  { %v1692_v18 = vpack.c.bf16 %v1684_v52, %v1680_v29  ;;  %v1693_v1 = vpack.c.bf16 %v1685_v26, %v1681_v60  ;;  %v4038_v21 = vcombine.high %v5968_v13, %v5973_v16 }
 0x671   :  { %v1649_v10 = vsel %vm1642_vm12, %v4541_v12, %v4526_v0  ;;  %v1652_v35 = vsel %vm1642_vm12, %v4542_v37, %v4536_v23  ;;  %2635 = vmatprep.subr.bf16.mxu1 %v3982_v36  ;;  %v2190_v23 = vld [vmem:[%s6385_s10 + $0x150] sm:$0xff] }
 0x672   :  { %1992 = vmatprep.mubr.bf16.mxu0 %v1692_v18  ;;  %v1679_v24 = vmax.f32 %v5882_v62, %v1649_v10  ;;  %v1683_v51 = vmax.f32 %v5884_v3, %v1652_v35  ;;  %v3981_v62 = vcombine.low %v2150_v56, %v2154_v6  ;;  %v2158_v3 = vld [vmem:[%s6385_s10 + $0x50] sm:$0xff]  ;;  %v4021_v17 = vcombine.low %v2190_v23, %v2194_v42 }
 0x673   :  { %2042 = vmatmul.mubr.bf16.gmra.mrb[40].mxu1 %v1693_v1  ;;  %v3989_v43 = vcombine.low %v2158_v3, %v2162_v41  ;;  %v3990_v61 = vcombine.high %v2158_v3, %v2162_v41  ;;  %v4022_v25 = vcombine.high %v2190_v23, %v2194_v42  ;;  %v2172_v42 = vld [vmem:[%s6385_s10 + $0xc0] sm:$0xff] }
 0x674   :  { %v1691_v20 = vpack.c.bf16 %v1683_v51, %v1679_v24  ;;  %2667 = vmatprep.mubr.bf16.mxu1 %v6415_v39  ;;  %2636 = vmatpush1.bf16.msra.mxu1 %v3981_v62 }
 0x675   :  { %2637 = vmatprep.subr.bf16.mxu1 %v3990_v61 }
 0x676   :  { %1993 = vmatmul.mubr.bf16.gmra.mrb[24].mxu0 %v1691_v20 }
 0x677   :  { %4206 = vmatprep.mubr.msk.f32.mxu0 %vm4735_vm15, %v6413_v55 }
 0x678   :  { %2638 = vmatpush1.bf16.msra.mxu1 %v3989_v43 }
 0x679   :  { %2639 = vmatprep.subr.bf16.mxu1 %v3998_v11  ;;  %v3978_v11 = vcombine.high %v2148_v46, %v2152_v50 }
 0x67c   :  { %2640 = vmatpush1.bf16.msra.mxu1 %v3997_v57 }
 0x67d   :  { %2641 = vmatprep.subr.bf16.mxu1 %v4006_v31  ;;  %v3977_v31 = vcombine.low %v2148_v46, %v2152_v50  ;;  %v2189_v46 = vld [vmem:[%s6385_s10 + $0x148] sm:$0xff] }
 0x67e   :  { %v2193_v50 = vld [vmem:[%s6385_s10 + $0x168] sm:$0xff] }
 0x680   :  { %2642 = vmatpush1.bf16.msra.mxu1 %v4005_v53  ;;  %v2069_v53 = vld [vmem:[%s6386_s9] sm:$0xff] }
 0x681   :  { %2643 = vmatprep.subr.bf16.mxu1 %v4014_v47  ;;  %v3985_v47 = vcombine.low %v2156_v7, %v2160_v58  ;;  %v2197_v7 = vld [vmem:[%s6385_s10 + $0x188] sm:$0xff] }
 0x682   :  { %v2201_v58 = vld [vmem:[%s6385_s10 + $0x1a8] sm:$0xff] }
 0x684   :  { %2644 = vmatpush1.bf16.msra.mxu1 %v4013_v8  ;;  %v2168_v8 = vld [vmem:[%s6385_s10 + $0xa0] sm:$0xff] }
 0x685   :  { %2645 = vmatprep.subr.bf16.mxu1 %v4022_v25  ;;  %v3994_v23 = vcombine.high %v2164_v14, %v2168_v8  ;;  %v3993_v25 = vcombine.low %v2164_v14, %v2168_v8  ;;  %v2209_v14 = vld [vmem:[%s6385_s10 + $0x1e8] sm:$0x33]  ;;  %v4027_v8 = vcombine.low %v2197_v7, %v2201_v58 }
 0x688   :  { %2646 = vmatpush1.bf16.msra.mxu1 %v4021_v17  ;;  %v2176_v17 = vld [vmem:[%s6385_s10 + $0xe0] sm:$0xff] }
 0x689   :  { %2647 = vmatprep.subr.bf16.mxu1 %v4030_v34  ;;  %v4002_v28 = vcombine.high %v2172_v42, %v2176_v17  ;;  %v4001_v34 = vcombine.low %v2172_v42, %v2176_v17  ;;  %v2151_v42 = vld [vmem:[%s6385_s10 + $0x18] sm:$0xff] }
 0x68a   :  { %v2155_v17 = vld [vmem:[%s6385_s10 + $0x38] sm:$0xff] }
 0x68c   :  { %2648 = vmatpush1.bf16.msra.mxu1 %v4029_v59  ;;  %v2184_v59 = vld [vmem:[%s6385_s10 + $0x120] sm:$0xff] }
 0x68d   :  { %4045 = vmatprep.subr.msk.bf16.mxu1 %vm2528_vm0, %v4038_v21  ;;  %v4010_v21 = vcombine.high %v2180_v5, %v2184_v59 }
 0x73e   :  { %v2035_v22 = vpop.f32.mrb[36].mxu1 }
 0x73f   :  { %v2037_v49 = vpop.f32.mrb[37].mxu1 }
 0x740   :  { %v2038_v63 = vpop.f32.mrb[38].mxu1  ;;  %v2192_v49 = vld [vmem:[%s6385_s10 + $0x160] sm:$0xff] }
 0x741   :  { %v2040_v30 = vpop.f32.mrb[39].mxu1  ;;  %v4179_v9 = vpop.f32.mrb[20].mxu0 }
 0x742   :  { %v4180_v15 = vpop.f32.mrb[21].mxu0 }
 0x743   :  { %v4181_v4 = vadd.f32 %v4180_v15, %v4179_v9  ;;  %v4182_v38 = vpop.f32.mrb[22].mxu0  ;;  %v2196_v9 = vld [vmem:[%s6385_s10 + $0x180] sm:$0xff] }
 0x744   :  { %v4183_v40 = vpop.f32.mrb[23].mxu0  ;;  %v2200_v15 = vld [vmem:[%s6385_s10 + $0x1a0] sm:$0xff] }
 0x745   :  { %v2036_v0 = vadd.f32 %v4181_v4, %v2035_v22  ;;  %v4184_v48 = vadd.f32 %v4183_v40, %v4182_v38  ;;  %v2188_v22 = vld [vmem:[%s6385_s10 + $0x140] sm:$0xff]  ;;  %v4026_v38 = vcombine.high %v2196_v9, %v2200_v15 }
 0x746   :  { %v2043_v19 = vpop.f32.mrb[40].mxu1  ;;  %v4018_v30 = vcombine.high %v2188_v22, %v2192_v49  ;;  %v4017_v4 = vcombine.low %v2188_v22, %v2192_v49  ;;  %v2204_v40 = vld [vmem:[%s6385_s10 + $0x1c0] sm:$0xff]  ;;  %v2167_v22 = vld [vmem:[%s6385_s10 + $0x98] sm:$0xff] }
 0x747   :  { %v2039_v27 = vadd.f32 %v4184_v48, %v2038_v63  ;;  %v2045_v33 = vpop.f32.mrb[41].mxu1  ;;  %v2054_v29 = vrot.slane %v2036_v0, 1  ;;  %v4009_v63 = vcombine.low %v2180_v5, %v2184_v59  ;;  %v4025_v48 = vcombine.low %v2196_v9, %v2200_v15  ;;  %v2159_v5 = vld [vmem:[%s6385_s10 + $0x58] sm:$0xff] }
 0x748   :  { %v2046_v44 = vpop.f32.mrb[42].mxu1  ;;  %v2163_v59 = vld [vmem:[%s6385_s10 + $0x78] sm:$0xff] }
 0x749   :  { %v2055_v52 = vrot.slane %v2039_v27, 1  ;;  %v2048_v60 = vpop.f32.mrb[43].mxu1  ;;  %v4185_v26 = vpop.f32.mrb[24].mxu0  ;;  %v2171_v49 = vld [vmem:[%s6385_s10 + $0xb8] sm:$0xff] }
 0x74a   :  { %v4186_v37 = vpop.f32.mrb[25].mxu0  ;;  %v2175_v9 = vld [vmem:[%s6385_s10 + $0xd8] sm:$0xff] }
 0x74b   :  { %v2056_v12 = vsel %vm265_vm9, %v2054_v29, %v2055_v52  ;;  %v4187_v18 = vadd.f32 %v4186_v37, %v4185_v26  ;;  %v4188_v1 = vpop.f32.mrb[26].mxu0  ;;  %v2149_v29 = vld [vmem:[%s6385_s10 + $0x8] sm:$0xff]  ;;  %v2179_v15 = vld [vmem:[%s6385_s10 + $0xf8] sm:$0xff] }
 0x74c   :  { %v4189_v10 = vpop.f32.mrb[27].mxu0  ;;  %v2065_v35 = vmax.f32 %v2036_v0, %v2056_v12  ;;  %v2208_v0 = vld [vmem:[%s6385_s10 + $0x1e0] sm:$0x33]  ;;  %v2157_v12 = vld [vmem:[%s6385_s10 + $0x48] sm:$0xff] }
 0x74d   :  { %v2044_v24 = vadd.f32 %v4187_v18, %v2043_v19  ;;  %v4190_v51 = vadd.f32 %v4189_v10, %v4188_v1  ;;  %v4034_v19 = vcombine.high %v2204_v40, %v2208_v0 }
 0x74f   :  { %v2057_v20 = vrot.slane %v2044_v24, 1  ;;  %v2047_v56 = vadd.f32 %v4190_v51, %v2046_v44  ;;  %v4037_v44 = vcombine.low %v5968_v13, %v5973_v16  ;;  %v2161_v13 = vld [vmem:[%s6385_s10 + $0x68] sm:$0xff] }
 0x750   :  { %v3988_v10 = vcombine.high %v2157_v12, %v2161_v13  ;;  %v3987_v51 = vcombine.low %v2157_v12, %v2161_v13  ;;  %v2211_v12 = vld [vmem:[%s6385_s10 + $0x1f8] sm:$0x33] }
 0x751   :  { %v2058_v6 = vsel %vm265_vm9, %v2055_v52, %v2057_v20  ;;  %v2059_v62 = vrot.slane %v2047_v56, 1  ;;  %v2153_v52 = vld [vmem:[%s6385_s10 + $0x28] sm:$0xff]  ;;  %v2542_v37 = vsel %vm2528_vm0, %v4037_v44, 0 }
 0x752   :  { %v2066_v36 = vmax.f32 %v2039_v27, %v2058_v6  ;;  %v4033_v27 = vcombine.low %v2204_v40, %v2208_v0  ;;  %v3979_v60 = vcombine.low %v2149_v29, %v2153_v52  ;;  %v3980_v26 = vcombine.high %v2149_v29, %v2153_v52  ;;  %2650 = vmatpush1.bf16.msra.mxu1 %v2542_v37  ;;  %v2177_v6 = vld [vmem:[%s6385_s10 + $0xe8] sm:$0xff]  ;;  %v2183_v40 = vld [vmem:[%s6385_s10 + $0x118] sm:$0xff] }
 0x753   :  { %v2060_v3 = vsel %vm265_vm9, %v2057_v20, %v2059_v62  ;;  %v2068_v41 = vmax.f32 %v2047_v56, %v2059_v62  ;;  %v2173_v56 = vld [vmem:[%s6385_s10 + $0xc8] sm:$0xff]  ;;  %v4007_v0 = vcombine.low %v2175_v9, %v2179_v15  ;;  %v2199_v29 = vld [vmem:[%s6385_s10 + $0x198] sm:$0xff] }
 0x754   :  { %v2067_v43 = vmax.f32 %v2044_v24, %v2060_v3  ;;  %v4381_v61 = vpack.c.bf16 %v2066_v36, %v2065_v35  ;;  %v2530_v33 = vsel %vm2528_vm0, %v4033_v27, 0  ;;  %v2165_v35 = vld [vmem:[%s6385_s10 + $0x88] sm:$0xff]  ;;  %v4004_v36 = vcombine.high %v2173_v56, %v2177_v6  ;;  %v2195_v27 = vld [vmem:[%s6385_s10 + $0x178] sm:$0xff] }
 0x755   :  { %v2169_v24 = vld [vmem:[%s6385_s10 + $0xa8] sm:$0xff]  ;;  %v2203_v52 = vld [vmem:[%s6385_s10 + $0x1b8] sm:$0xff] }
 0x756   :  { %v4384_v57 = vpack.c.bf16 %v2068_v41, %v2067_v43  ;;  %4382 = vmatpush3.bf16.msra.mxu0 %v4381_v61  ;;  %v3996_v20 = vcombine.high %v2165_v35, %v2169_v24  ;;  %v3995_v62 = vcombine.low %v2165_v35, %v2169_v24  ;;  %v2181_v3 = vld [vmem:[%s6385_s10 + $0x108] sm:$0xff]  ;;  %v4003_v43 = vcombine.low %v2173_v56, %v2177_v6  ;;  %v2207_v37 = vld [vmem:[%s6385_s10 + $0x1d8] sm:$0xff]  ;;  %v2718_v56 = vld [vmem:[%s6387_s11] sm:$0xff] }
 0x757   :  { %4383 = vmatprep.subr.bf16.mxu0 %v6414_v2  ;;  %v2185_v41 = vld [vmem:[%s6385_s10 + $0x128] sm:$0xff]  ;;  %v4031_v13 = vcombine.low %v2199_v29, %v2203_v52 }
 0x758   :  { %v4012_v61 = vcombine.high %v2181_v3, %v2185_v41 }
 0x75a   :  { %4386 = vmatpush3.bf16.msk.msra.mxu0 %vm4385_vm2, %v4384_v57  ;;  %v4011_v57 = vcombine.low %v2181_v3, %v2185_v41 }
 0x75b   :  { %2553 = vmatprep.subr.bf16.mxu0 %v3978_v11  ;;  %v4020_v11 = vcombine.high %v2189_v46, %v2193_v50 }
 0x75d   :  { %4207 = vmatmul.mubr.msk.f32.vlgmr.msra.gmra.mrb[28].mxu0 %vm2070_vm3, %v2069_v53  ;;  %v4019_v53 = vcombine.low %v2189_v46, %v2193_v50  ;;  %v3335_v46 = vld [vmem:[%s6388_s13] sm:$0xff]  ;;  %v3336_v50 = vld [vmem:[%s6388_s13 + $0x8] sm:$0xff] }
 0x75e   :  { %2554 = vmatpush1.bf16.msra.mxu0 %v3977_v31  ;;  %2585 = vmatprep.mubr.bf16.mxu0 %v6415_v39  ;;  %v4028_v31 = vcombine.high %v2197_v7, %v2201_v58  ;;  %v6171_v7 = vpack.c.bf16 %v3336_v50, %v3335_v46  ;;  %v3338_v58 = vld [vmem:[%s6388_s13 + $0x18] sm:$0xff] }
 0x75f   :  { %2555 = vmatprep.subr.bf16.mxu0 %v3986_v45  ;;  %v2205_v45 = vld [vmem:[%s6385_s10 + $0x1c8] sm:$0xff] }
 0x762   :  { %2556 = vmatpush1.bf16.msra.mxu0 %v3985_v47  ;;  %v4036_v47 = vcombine.high %v2205_v45, %v2209_v14 }
 0x763   :  { %2557 = vmatprep.subr.bf16.mxu0 %v3994_v23  ;;  %v4035_v23 = vcombine.low %v2205_v45, %v2209_v14 }
 0x766   :  { %2558 = vmatpush1.bf16.msra.mxu0 %v3993_v25  ;;  %v2536_v25 = vsel %vm2528_vm0, %v4035_v23, 0 }
 0x767   :  { %2559 = vmatprep.subr.bf16.mxu0 %v4002_v28  ;;  %v3984_v28 = vcombine.high %v2151_v42, %v2155_v17 }
 0x76a   :  { %2560 = vmatpush1.bf16.msra.mxu0 %v4001_v34  ;;  %v3983_v34 = vcombine.low %v2151_v42, %v2155_v17 }
 0x76b   :  { %2561 = vmatprep.subr.bf16.mxu0 %v4010_v21  ;;  %v3992_v21 = vcombine.high %v2159_v5, %v2163_v59 }
 0x76e   :  { %2562 = vmatpush1.bf16.msra.mxu0 %v4009_v63  ;;  %v3991_v63 = vcombine.low %v2159_v5, %v2163_v59 }
 0x76f   :  { %2563 = vmatprep.subr.bf16.mxu0 %v4018_v30  ;;  %v4000_v30 = vcombine.high %v2167_v22, %v2171_v49 }
 0x772   :  { %2564 = vmatpush1.bf16.msra.mxu0 %v4017_v4  ;;  %v3999_v4 = vcombine.low %v2167_v22, %v2171_v49  ;;  %v4052_v49 = vld [vmem:[%s6387_s11 + $0x10] sm:$0xff] }
 0x773   :  { %2565 = vmatprep.subr.bf16.mxu0 %v4026_v38  ;;  %v4008_v38 = vcombine.high %v2175_v9, %v2179_v15  ;;  %v4054_v9 = vld [vmem:[%s6387_s11 + $0x18] sm:$0xff] }
 0x776   :  { %2566 = vmatpush1.bf16.msra.mxu0 %v4025_v48 }
 0x777   :  { %4041 = vmatprep.subr.msk.bf16.mxu0 %vm2528_vm0, %v4034_v19  ;;  %v2191_v19 = vld [vmem:[%s6385_s10 + $0x158] sm:$0xff] }
 0x778   :  { %v4024_v44 = vcombine.high %v2191_v19, %v2195_v27 }
 0x77a   :  { %2568 = vmatpush1.bf16.msra.mxu0 %v2530_v33 }
 0x77b   :  { %2594 = vmatprep.subr.bf16.mxu0 %v3980_v26  ;;  %v4032_v26 = vcombine.high %v2199_v29, %v2203_v52  ;;  %v3341_v29 = vld [vmem:[%s6388_s13 + $0x30] sm:$0xff]  ;;  %v3342_v52 = vld [vmem:[%s6388_s13 + $0x38] sm:$0xff] }
 0x830   :  { %v2143_v16 = vpop.f32.mrb[28].mxu0 }
 0x831   :  { %v6053_v18 = vpack.c.bf16 %v2143_v16, %v2143_v16  ;;  %v4208_v1 = vpop.f32.mrb[29].mxu0  ;;  %v4040_v16 = vcombine.high %v2207_v37, %v2211_v12 }
 0x832   :  { %v4039_v1 = vcombine.low %v2207_v37, %v2211_v12  ;;  %v3344_v37 = vld [vmem:[%s6388_s13 + $0x48] sm:$0xff] }
 0x833   :  { %4042 = vmatmul.mubr.msk.bf16.vlgmr.msra.gmra.mrb[32].mxu0 %vm2524_vm1, %v6053_v18  ;;  %4046 = vmatmul.mubr.msk.bf16.vlgmr.msra.gmra.mrb[44].mxu1 %vm2524_vm1, %v6053_v18 }
 0x834   :  { %2595 = vmatpush1.bf16.msra.mxu0 %v3979_v60  ;;  %2626 = vmatprep.mubr.bf16.mxu0 %v6415_v39  ;;  %v4023_v60 = vcombine.low %v2191_v19, %v2195_v27 }
 0x835   :  { %2596 = vmatprep.subr.bf16.mxu0 %v3988_v10  ;;  %2786 = vmatprep.mubr.f32.mxu1 %v6413_v55  ;;  %v2548_v10 = vsel %vm2528_vm0, %v4039_v1, 0 }
 0x838   :  { %2597 = vmatpush1.bf16.msra.mxu0 %v3987_v51 }
 0x839   :  { %2598 = vmatprep.subr.bf16.mxu0 %v3996_v20 }
 0x83c   :  { %2599 = vmatpush1.bf16.msra.mxu0 %v3995_v62 }
 0x83d   :  { %2600 = vmatprep.subr.bf16.mxu0 %v4004_v36 }
 0x840   :  { %2601 = vmatpush1.bf16.msra.mxu0 %v4003_v43 }
 0x841   :  { %2602 = vmatprep.subr.bf16.mxu0 %v4012_v61 }
 0x844   :  { %2603 = vmatpush1.bf16.msra.mxu0 %v4011_v57  ;;  %v3337_v57 = vld [vmem:[%s6388_s13 + $0x10] sm:$0xff] }
 0x845   :  { %2604 = vmatprep.subr.bf16.mxu0 %v4020_v11  ;;  %v4391_v45 = vpack.c.bf16 %v3338_v58, %v3337_v57 }
 0x848   :  { %2605 = vmatpush1.bf16.msra.mxu0 %v4019_v53 }
 0x849   :  { %2606 = vmatprep.subr.bf16.mxu0 %v4028_v31 }
 0x84c   :  { %2607 = vmatpush1.bf16.msra.mxu0 %v4027_v8  ;;  %v3339_v8 = vld [vmem:[%s6388_s13 + $0x20] sm:$0xff] }
 0x84d   :  { %4043 = vmatprep.subr.msk.bf16.mxu0 %vm2528_vm0, %v4036_v47  ;;  %v3340_v47 = vld [vmem:[%s6388_s13 + $0x28] sm:$0xff] }
 0x84e   :  { %v4394_v23 = vpack.c.bf16 %v3340_v47, %v3339_v8  ;;  %v3534_v8 = vld [vmem:[%s6390_s14] sm:$0xff] }
 0x84f   :  { %v3536_v47 = vcombine.high %v3534_v8, %v3534_v8 }
 0x850   :  { %2609 = vmatpush1.bf16.msra.mxu0 %v2536_v25  ;;  %v4050_v25 = vld [vmem:[%s6387_s11 + $0x8] sm:$0xff] }
 0x851   :  { %2676 = vmatprep.subr.bf16.mxu0 %v3984_v28 }
 0x853   :  { %4044 = vmatmul.mubr.msk.bf16.vlgmr.msra.gmra.mrb[36].mxu0 %vm2524_vm1, %v6053_v18 }
 0x854   :  { %2677 = vmatpush1.bf16.msra.mxu0 %v3983_v34  ;;  %2708 = vmatprep.mubr.bf16.mxu0 %v6415_v39  ;;  %v2187_v39 = vld [vmem:[%s6385_s10 + $0x138] sm:$0xff] }
 0x855   :  { %2678 = vmatprep.subr.bf16.mxu0 %v3992_v21  ;;  %v4016_v48 = vcombine.high %v2183_v40, %v2187_v39  ;;  %v4015_v33 = vcombine.low %v2183_v40, %v2187_v39 }
 0x858   :  { %2679 = vmatpush1.bf16.msra.mxu0 %v3991_v63 }
 0x859   :  { %2680 = vmatprep.subr.bf16.mxu0 %v4000_v30 }
 0x85c   :  { %2681 = vmatpush1.bf16.msra.mxu0 %v3999_v4 }
 0x85d   :  { %2682 = vmatprep.subr.bf16.mxu0 %v4008_v38  ;;  %v4056_v38 = vld [vmem:[%s6387_s11 + $0x20] sm:$0xff] }
 0x860   :  { %2683 = vmatpush1.bf16.msra.mxu0 %v4007_v0  ;;  %v4058_v0 = vld [vmem:[%s6387_s11 + $0x28] sm:$0xff] }
 0x861   :  { %2684 = vmatprep.subr.bf16.mxu0 %v4016_v48 }
 0x864   :  { %2685 = vmatpush1.bf16.msra.mxu0 %v4015_v33 }
 0x865   :  { %2686 = vmatprep.subr.bf16.mxu0 %v4024_v44  ;;  %v4060_v44 = vld [vmem:[%s6387_s11 + $0x30] sm:$0xff] }
 0x868   :  { %2687 = vmatpush1.bf16.msra.mxu0 %v4023_v60  ;;  %v4397_v60 = vpack.c.bf16 %v3342_v52, %v3341_v29  ;;  %v3527_v52 = vld [vmem:[%s6391_s15 + $0x1] sm:$0x1] }
 0x869   :  { %2688 = vmatprep.subr.bf16.mxu0 %v4032_v26  ;;  %v3343_v26 = vld [vmem:[%s6388_s13 + $0x40] sm:$0xff] }
 0x86a   :  { %v4400_v12 = vpack.c.bf16 %v3344_v37, %v3343_v26 }
 0x86c   :  { %2689 = vmatpush1.bf16.msra.mxu0 %v4031_v13  ;;  %v3345_v13 = vld [vmem:[%s6388_s13 + $0x50] sm:$0xff] }
 0x86d   :  { %4047 = vmatprep.subr.msk.bf16.mxu0 %vm2528_vm0, %v4040_v16  ;;  %v3346_v16 = vld [vmem:[%s6388_s13 + $0x58] sm:$0xff] }
 0x86e   :  { %v4403_v1 = vpack.c.bf16 %v3346_v16, %v3345_v13  ;;  %v3658_v13 = vld [vmem:[%s6392_s16] sm:$0xff]  ;;  %v3659_v16 = vld [vmem:[%s6392_s16 + $0x8] sm:$0xff] }
 0x870   :  { %2691 = vmatpush1.bf16.msra.mxu0 %v2548_v10  ;;  %v3347_v10 = vld [vmem:[%s6388_s13 + $0x60] sm:$0xff] }
 0x871   :  { %4387 = vmatprep.subr.bf16.mxu0 %v6414_v2 }
 0x873   :  { %4048 = vmatmul.mubr.msk.bf16.vlgmr.msra.gmra.mrb[40].mxu0 %vm2524_vm1, %v6053_v18 }
 0x874   :  { %4389 = vmatpush1.bf16.msra.mxu0 %v6171_v7 }
 0x875   :  { %4390 = vmatprep.subr.bf16.mxu0 %v6414_v2 }
 0x878   :  { %4392 = vmatpush1.bf16.msra.mxu0 %v4391_v45 }
 0x879   :  { %4393 = vmatprep.subr.bf16.mxu0 %v6414_v2 }
 0x87c   :  { %4395 = vmatpush1.bf16.msra.mxu0 %v4394_v23 }
 0x87d   :  { %4396 = vmatprep.subr.bf16.mxu0 %v6414_v2 }
 0x880   :  { %4398 = vmatpush1.bf16.msra.mxu0 %v4397_v60 }
 0x881   :  { %4399 = vmatprep.subr.bf16.mxu0 %v6414_v2 }
 0x884   :  { %4401 = vmatpush1.bf16.msra.mxu0 %v4400_v12 }
 0x885   :  { %4402 = vmatprep.subr.bf16.mxu0 %v6414_v2 }
 0x888   :  { %4404 = vmatpush1.bf16.msra.mxu0 %v4403_v1 }
 0x889   :  { %4405 = vmatprep.subr.bf16.mxu0 %v6414_v2 }
 0x906   :  { %v2587_v35 = vpop.f32.mrb[32].mxu0  ;;  %v2669_v24 = vpop.f32.mrb[44].mxu1 }
 0x907   :  { %v2589_v51 = vpop.f32.mrb[33].mxu0  ;;  %v2671_v20 = vpop.f32.mrb[45].mxu1 }
 0x908   :  { %v2591_v6 = vpop.f32.mrb[34].mxu0  ;;  %v2673_v62 = vpop.f32.mrb[46].mxu1  ;;  %2722 = vmatprep.subr.mxu1 %v2589_v51  ;;  %2810 = vrot.lane.b32.xlu1 %v2589_v51, %s4736_s21  ;;  %v3349_v51 = vld [vmem:[%s6388_s13 + $0x70] sm:$0xff] }
 0x909   :  { %v2674_v36 = vpop.f32.mrb[47].mxu1  ;;  %v2592_v3 = vpop.f32.mrb[35].mxu0  ;;  %2723 = vmatpush1.msra.mxu1 %v2587_v35  ;;  %v3348_v35 = vld [vmem:[%s6388_s13 + $0x68] sm:$0xff]  ;;  %v3351_v6 = vld [vmem:[%s6388_s13 + $0x80] sm:$0xf] }
 0x90a   :  { %4049 = vmatmul.mubr.msk.f32.vlgmr.msra.gmra.mrb[48].mxu1 %vm298_vm11, %v2718_v56  ;;  %v2717_v62 = vld [vmem:[%s6389_s12] sm:$0x3] }
 0x90b   :  { %2884 = vmatprep.mubr.f32.mxu1 %v6413_v55  ;;  %v2797_v36 = vrot.slane %v2717_v62, %v5426_v54  ;;  %v2801_v3 = vrot.slane %v2717_v62, %v6416_v32 }
 0x926   :  { %v2628_v18 = vpop.f32.mrb[36].mxu0 }
 0x927   :  { %2896 = vrot.lane.b32.xlu1 %v2628_v18, %s4731_s3  ;;  %2812 = vrot.lane.b32.xlu0 %v2628_v18, %s4736_s21  ;;  %v2630_v41 = vpop.f32.mrb[37].mxu0 }
 0x928   :  { %v2632_v43 = vpop.f32.mrb[38].mxu0 }
 0x929   :  { %v2633_v61 = vpop.f32.mrb[39].mxu0 }
 0x92b   :  { %2982 = vrot.lane.b32.xlu1 %v2630_v41, %s4737_s1  ;;  %2898 = vrot.lane.b32.xlu0 %v2630_v41, %s4731_s3 }
 0x92f   :  { %3069 = vrot.lane.b32.xlu1 %v2669_v24, %s4738_s23  ;;  %2984 = vrot.lane.b32.xlu0 %v2669_v24, %s4737_s1  ;;  %v4406_v24 = vpack.c.bf16 %v3348_v35, %v3347_v10  ;;  %v4436_v35 = vpack.c.bf16 %v3659_v16, %v3658_v13 }
 0x931   :  { %4407 = vmatpush1.bf16.msra.mxu0 %v4406_v24 }
 0x932   :  { %4408 = vmatprep.subr.bf16.mxu0 %v6414_v2 }
 0x933   :  { %3155 = vrot.lane.b32.xlu1 %v2671_v20, %s4739_s7  ;;  %3071 = vrot.lane.b32.xlu0 %v2671_v20, %s4738_s23  ;;  %v3350_v20 = vld [vmem:[%s6388_s13 + $0x78] sm:$0xff] }
 0x934   :  { %v4409_v56 = vpack.c.bf16 %v3350_v20, %v3349_v51 }
 0x936   :  { %4410 = vmatpush1.bf16.msra.mxu0 %v4409_v56 }
 0x937   :  { %3390 = vmatprep.subr.mxu0 %v6413_v55 }
 0x93a   :  { %4064 = vmatpush1.msk.msra.mxu0 %vm1379_vm5, %v3351_v6 }
 0x93b   :  { %4068 = vmatprep.subr.msk.mxu0 %vm1379_vm5, %v3536_v47 }
 0x946   :  { %v2710_v11 = vpop.f32.mrb[40].mxu0 }
 0x947   :  { %3242 = vrot.lane.b32.xlu1 %v2710_v11, %s4740_s30  ;;  %3157 = vrot.lane.b32.xlu0 %v2710_v11, %s4739_s7  ;;  %v2712_v53 = vpop.f32.mrb[41].mxu0 }
 0x948   :  { %v2714_v31 = vpop.f32.mrb[42].mxu0 }
 0x949   :  { %v2715_v14 = vpop.f32.mrb[43].mxu0 }
 0x94b   :  { %3244 = vrot.lane.b32.xlu0 %v2712_v53, %s4740_s30 }
 0x97a   :  { %v2811_v42 = vpop.permute.xlu1 %2810 }
 0x999   :  { %v2813_v17 = vpop.permute.xlu0 %2812  ;;  %v2897_v5 = vpop.permute.xlu1 %2896 }
 0x99a   :  { %v2814_v28 = vsel %vm2524_vm1, %v2811_v42, %v2813_v17  ;;  %2820 = vmatprep.subr.mxu1 %v2813_v17 }
 0x99b   :  { %2821 = vmatpush1.msra.mxu1 %v2814_v28 }
 0x99c   :  { %4051 = vmatmul.mubr.msk.f32.vlgmr.msra.gmra.mrb[48].mxu1 %vm298_vm11, %v4050_v25 }
 0x99d   :  { %v2899_v59 = vpop.permute.xlu0 %2898  ;;  %2970 = vmatprep.mubr.f32.mxu1 %v6413_v55  ;;  %v2983_v21 = vpop.permute.xlu1 %2982 }
 0x99e   :  { %v2900_v34 = vsel %vm278_vm10, %v2897_v5, %v2899_v59  ;;  %2906 = vmatprep.subr.mxu1 %v2899_v59  ;;  %vm3159_vm10 = vcmask 883712  }
 0x99f   :  { %2907 = vmatpush1.msra.mxu1 %v2900_v34 }
 0x9a1   :  { %v2985_v22 = vpop.permute.xlu0 %2984  ;;  %v3070_v15 = vpop.permute.xlu1 %3069 }
 0x9a2   :  { %v2987_v63 = vsel %vm2986_vm8, %v2983_v21, %v2985_v22  ;;  %2993 = vmatprep.subr.mxu1 %v2985_v22 }
 0x9a4   :  { %4053 = vmatmul.mubr.msk.f32.vlgmr.msra.gmra.mrb[48].mxu1 %vm298_vm11, %v4052_v49 }
 0x9a5   :  { %2994 = vmatpush1.msra.mxu1 %v2987_v63  ;;  %v3072_v30 = vpop.permute.xlu0 %3071  ;;  %3057 = vmatprep.mubr.f32.mxu1 %v6413_v55  ;;  %v3156_v40 = vpop.permute.xlu1 %3155 }
 0x9a6   :  { %3079 = vmatprep.subr.mxu1 %v3072_v30  ;;  %v3073_v4 = vsel %vm201_vm4, %v3070_v15, %v3072_v30 }
 0x9ac   :  { %4055 = vmatmul.mubr.msk.f32.vlgmr.msra.gmra.mrb[48].mxu1 %vm298_vm11, %v4054_v9 }
 0x9ad   :  { %3080 = vmatpush1.msra.mxu1 %v3073_v4  ;;  %3143 = vmatprep.mubr.f32.mxu1 %v6413_v55 }
 0x9b4   :  { %4057 = vmatmul.mubr.msk.f32.vlgmr.msra.gmra.mrb[48].mxu1 %vm298_vm11, %v4056_v38 }
 0x9b5   :  { %3230 = vmatprep.mubr.f32.mxu1 %v6413_v55 }
 0x9b9   :  { %v3158_v39 = vpop.permute.xlu0 %3157  ;;  %v3243_v19 = vpop.permute.xlu1 %3242 }
 0x9ba   :  { %v3160_v48 = vsel %vm3159_vm10, %v3156_v40, %v3158_v39  ;;  %3166 = vmatprep.subr.mxu1 %v3158_v39 }
 0x9bb   :  { %3167 = vmatpush1.msra.mxu1 %v3160_v48 }
 0x9bc   :  { %4059 = vmatmul.mubr.msk.f32.vlgmr.msra.gmra.mrb[48].mxu1 %vm298_vm11, %v4058_v0 }
 0x9bd   :  { %v3245_v27 = vpop.permute.xlu0 %3244  ;;  %3316 = vmatprep.mubr.f32.mxu1 %v6413_v55 }
 0x9be   :  { %v3246_v33 = vsel %vm944_vm13, %v3243_v19, %v3245_v27  ;;  %3252 = vmatprep.subr.mxu1 %v3245_v27  ;;  %vm3652_vm13 = vcmask 1031168  }
 0x9bf   :  { %3253 = vmatpush1.msra.mxu1 %v3246_v33  ;;  %v3523_v33 = vld [vmem:[%s6391_s15] sm:$0x1]  ;;  %s4741_s15 = smov 126  }
 0x9c0   :  { %4411 = vmatprep.subr.bf16.mxu1 %v6414_v2 }
 0x9c4   :  { %4061 = vmatmul.mubr.msk.f32.vlgmr.msra.gmra.mrb[48].mxu1 %vm298_vm11, %v4060_v44 }
 0x9c5   :  { %4413 = vmatpush1.bf16.msra.mxu1 %v6171_v7 }
 0x9c6   :  { %4414 = vmatprep.subr.bf16.mxu1 %v6414_v2 }
 0x9c9   :  { %4416 = vmatpush1.bf16.msra.mxu1 %v4391_v45 }
 0x9ca   :  { %4417 = vmatprep.subr.bf16.mxu1 %v6414_v2 }
 0x9cd   :  { %4419 = vmatpush1.bf16.msra.mxu1 %v4394_v23 }
 0x9ce   :  { %4420 = vmatprep.subr.bf16.mxu1 %v6414_v2 }
 0x9d1   :  { %4422 = vmatpush1.bf16.msra.mxu1 %v4397_v60 }
 0x9d2   :  { %4423 = vmatprep.subr.bf16.mxu1 %v6414_v2 }
 0x9d5   :  { %4425 = vmatpush1.bf16.msra.mxu1 %v4400_v12 }
 0x9d6   :  { %4426 = vmatprep.subr.bf16.mxu1 %v6414_v2 }
 0x9d9   :  { %4428 = vmatpush1.bf16.msra.mxu1 %v4403_v1  ;;  %v3660_v1 = vld [vmem:[%s6392_s16 + $0x10] sm:$0xff] }
 0x9da   :  { %4429 = vmatprep.subr.bf16.mxu1 %v6414_v2 }
 0x9dd   :  { %4431 = vmatpush1.bf16.msra.mxu1 %v4406_v24  ;;  %v3661_v24 = vld [vmem:[%s6392_s16 + $0x18] sm:$0xff] }
 0x9de   :  { %4432 = vmatprep.subr.bf16.mxu1 %v6414_v2 }
 0x9e1   :  { %4434 = vmatpush1.bf16.msra.mxu1 %v4409_v56 }
 0x9e2   :  { %3472 = vmatprep.subr.mxu1 %v6413_v55 }
 0x9e5   :  { %4066 = vmatpush1.msk.msra.mxu1 %vm1379_vm5, %v3351_v6  ;;  %v4439_v6 = vpack.c.bf16 %v3661_v24, %v3660_v1 }
 0xa97   :  { %v3318_v18 = vpop.f32.mrb[48].mxu1 }
 0xa98   :  { %v4459_v41 = vadd.f32 %v3318_v18, %v2797_v36  ;;  %v3320_v43 = vpop.f32.mrb[49].mxu1  ;;  %v3663_v18 = vld [vmem:[%s6392_s16 + $0x28] sm:$0xff] }
 0xa99   :  { %v4460_v61 = vadd.f32 %v3320_v43, %v2801_v3  ;;  %v3662_v3 = vld [vmem:[%s6392_s16 + $0x20] sm:$0xff] }
 0xa9a   :  { %v3327_v46 = vmul.f32 1.442695, %v4459_v41  ;;  %vm3325_vm4 = vcmp.gt.f32.partialorder %v4459_v41, 0.0 }
 0xa9b   :  { %v3329_v50 = vmul.f32 1.442695, %v4460_v61  ;;  %vm3326_vm11 = vcmp.gt.f32.partialorder %v4460_v61, 0.0 }
 0xa9c   :  { %4719 = vpow2.f32 %v3327_v46  ;;  %v4442_v46 = vpack.c.bf16 %v3663_v18, %v3662_v3 }
 0xa9d   :  { %4721 = vpow2.f32 %v3329_v50  ;;  %v3664_v50 = vld [vmem:[%s6392_s16 + $0x30] sm:$0xff] }
 0xaa6   :  { %v4720_v57 = vpop.eup %4719 }
 0xaa7   :  { %v4722_v11 = vpop.eup %4721  ;;  %v4062_v7 = vadd.f32 -1.0, %v4720_v57  ;;  %v3665_v57 = vld [vmem:[%s6392_s16 + $0x38] sm:$0xff] }
 0xaa8   :  { %v4063_v58 = vadd.f32 -1.0, %v4722_v11  ;;  %v3666_v11 = vld [vmem:[%s6392_s16 + $0x40] sm:$0xff] }
 0xaa9   :  { %v3333_v53 = vsel %vm3325_vm4, %v4459_v41, %v4062_v7  ;;  %v3667_v7 = vld [vmem:[%s6392_s16 + $0x48] sm:$0xff] }
 0xaaa   :  { %v6274_v31 = vsel %vm3326_vm11, %v4460_v61, %v4063_v58  ;;  %v3435_v14 = vmul.f32 %v3333_v53, %v3333_v53  ;;  %v4448_v58 = vpack.c.bf16 %v3667_v7, %v3666_v11 }
 0xaab   :  { %4065 = vmatprep.mubr.msk.f32.mxu0 %vm1127_vm6, %v6274_v31  ;;  %v3436_v45 = vmul.f32 %v6274_v31, %v6274_v31 }
 0xaac   :  { %3423 = vmatmul.mubr.f32.vlgmr.msra.gmra.mrb[30].mxu0 %v3333_v53 }
 0xaad   :  { %4067 = vmatprep.mubr.msk.f32.mxu1 %vm1127_vm6, %v3436_v45  ;;  %3608 = vmatprep.mubr.f32.mxu0 %v6413_v55 }
 0xaae   :  { %3505 = vmatmul.mubr.f32.vlgmr.msra.gmra.mrb[50].mxu1 %v3435_v14  ;;  %4069 = vmatpush1.msk.msra.mxu0 %vm1379_vm5, %v3534_v8  ;;  %v3670_v14 = vld [vmem:[%s6392_s16 + $0x60] sm:$0xff]  ;;  %v3671_v8 = vld [vmem:[%s6392_s16 + $0x68] sm:$0xff]  ;;  %vm3675_vm5 = vcmask 7168  }
 0xaaf   :  { %4435 = vmatprep.subr.bf16.mxu0 %v6414_v2  ;;  %v4454_v47 = vpack.c.bf16 %v3671_v8, %v3670_v14 }
 0xb7f   :  { %v3424_v23 = vpop.f32.mrb[30].mxu0 }
 0xb80   :  { %v3428_v42 = vsel %vm1127_vm6, %v3424_v23, 0.0  ;;  %v3426_v17 = vpop.f32.mrb[31].mxu0  ;;  %v3672_v23 = vld [vmem:[%s6392_s16 + $0x70] sm:$0xff] }
 0xb81   :  { %v3429_v25 = vrot.slane %v3428_v42, 4  ;;  %v3506_v28 = vpop.f32.mrb[50].mxu1 }
 0xb82   :  { %v3510_v5 = vsel %vm1127_vm6, %v3506_v28, 0.0  ;;  %v3508_v59 = vpop.f32.mrb[51].mxu1 }
 0xb83   :  { %v3430_v34 = vadd.f32 %v3429_v25, %v3428_v42  ;;  %v3511_v21 = vrot.slane %v3510_v5, 4  ;;  %v3673_v42 = vld [vmem:[%s6392_s16 + $0x78] sm:$0xff]  ;;  %v3674_v25 = vld [vmem:[%s6392_s16 + $0x80] sm:$0x1] }
 0xb84   :  { %v4457_v17 = vpack.c.bf16 %v3673_v42, %v3672_v23 }
 0xb85   :  { %v3431_v22 = vrot.slane %v3430_v34, 2  ;;  %v3512_v49 = vadd.f32 %v3511_v21, %v3510_v5 }
 0xb87   :  { %v3432_v63 = vadd.f32 %v3431_v22, %v3430_v34  ;;  %v3513_v30 = vrot.slane %v3512_v49, 2 }
 0xb89   :  { %v3433_v9 = vrot.slane %v3432_v63, 1  ;;  %v3514_v15 = vadd.f32 %v3513_v30, %v3512_v49 }
 0xb8b   :  { %v3434_v4 = vadd.f32 %v3433_v9, %v3432_v63  ;;  %v3515_v38 = vrot.slane %v3514_v15, 1 }
 0xb8d   :  { %v3518_v40 = vmul.f32 0.003787879, %v3434_v4  ;;  %v3516_v39 = vadd.f32 %v3515_v38, %v3514_v15 }
 0xb8f   :  { %v3520_v0 = vmul.f32 %v3518_v40, %v3518_v40  ;;  %v3519_v48 = vmul.f32 0.003787879, %v3516_v39 }
 0xb91   :  { %v3521_v19 = vsub.f32 %v3519_v48, %v3520_v0 }
 0xb93   :  { %v3522_v27 = vmax.f32 %v3521_v19, 0.0 }
 0xb95   :  { %4723 = vrsqrt.f32 %v3522_v27 }
 0xb9f   :  { %v4724_v44 = vpop.eup %4723 }
 0xba0   :  { %v3526_v29 = vmul.f32 %v4724_v44, %v3523_v33 }
 0xba2   :  { %v3528_v60 = vmul.f32 %v3526_v29, %v3518_v40  ;;  %v3756_v40 = vld [vmem:[%s6393_s17] sm:$0xf] }
 0xba4   :  { %v3529_v26 = vsub.f32 %v3527_v52, %v3528_v60 }
 0xba6   :  { %v3531_v37 = vrot.slane %v3529_v26, 7 }
 0xba8   :  { %v3533_v12 = vsel %vm1368_vm7, %v3526_v29, %v3531_v37 }
 0xba9   :  { %4070 = vmatmul.mubr.msk.f32.vlgmr.msra.gmra.mrb[44].mxu0 %vm1127_vm6, %v3533_v12  ;;  %vm3757_vm6 = vcmask 56320  }
 0xbaa   :  { %4437 = vmatpush1.bf16.msra.mxu0 %v4436_v35 }
 0xbab   :  { %4438 = vmatprep.subr.bf16.mxu0 %v6414_v2 }
 0xbae   :  { %4440 = vmatpush1.bf16.msra.mxu0 %v4439_v6 }
 0xbaf   :  { %4441 = vmatprep.subr.bf16.mxu0 %v6414_v2 }
 0xbb2   :  { %4443 = vmatpush1.bf16.msra.mxu0 %v4442_v46 }
 0xbb3   :  { %4444 = vmatprep.subr.bf16.mxu0 %v6414_v2 }
 0xc7c   :  { %v3610_v10 = vpop.f32.mrb[44].mxu0 }
 0xc7d   :  { %v3618_v51 = vrot.slane %v3610_v10, %v5426_v54  ;;  %v3612_v20 = vpop.f32.mrb[45].mxu0  ;;  %v3628_v36 = vrot.slane %v3610_v10, %v6416_v32 }
 0xc7e   :  { %v3622_v56 = vrot.slane %v3612_v20, %v5426_v54  ;;  %v3632_v43 = vrot.slane %v3612_v20, %v6416_v32  ;;  %v4445_v32 = vpack.c.bf16 %v3665_v57, %v3664_v50 }
 0xc7f   :  { %v3623_v62 = vmul.f32 %v3618_v51, %v3333_v53  ;;  %v3668_v53 = vld [vmem:[%s6392_s16 + $0x50] sm:$0xff] }
 0xc80   :  { %v3624_v41 = vmul.f32 %v3622_v56, %v6274_v31  ;;  %4446 = vmatpush1.bf16.msra.mxu0 %v4445_v32  ;;  %v3669_v31 = vld [vmem:[%s6392_s16 + $0x58] sm:$0xff] }
 0xc81   :  { %v3633_v54 = vadd.f32 %v3628_v36, %v3623_v62  ;;  %4447 = vmatprep.subr.bf16.mxu0 %v6414_v2  ;;  %v4451_v45 = vpack.c.bf16 %v3669_v31, %v3668_v53 }
 0xc82   :  { %v3634_v61 = vadd.f32 %v3632_v43, %v3624_v41 }
 0xc83   :  { %3637 = vrot.lane.b32.xlu1 %v3633_v54, %s4733_s22 }
 0xc84   :  { %3639 = vrot.lane.b32.xlu0 %v3634_v61, %s4733_s22  ;;  %4449 = vmatpush1.bf16.msra.mxu0 %v4448_v58 }
 0xc85   :  { %4450 = vmatprep.subr.bf16.mxu0 %v6414_v2 }
 0xc88   :  { %4452 = vmatpush1.bf16.msra.mxu0 %v4451_v45 }
 0xc89   :  { %4453 = vmatprep.subr.bf16.mxu0 %v6414_v2 }
 0xc8c   :  { %4455 = vmatpush1.bf16.msra.mxu0 %v4454_v47 }
 0xc8d   :  { %4456 = vmatprep.subr.bf16.mxu0 %v6414_v2 }
 0xc90   :  { %4458 = vmatpush1.bf16.msra.mxu0 %v4457_v17 }
 0xc91   :  { %3714 = vmatprep.subr.mxu0 %v6413_v55 }
 0xc94   :  { %4071 = vmatpush1.msk.msra.mxu0 %vm1368_vm7, %v3674_v25  ;;  %vm3834_vm7 = vcmask 257024  }
 0xc95   :  { %4209 = vmatprep.subr.mxu0 %v6413_v55 }
 0xcf5   :  { %v3638_v28 = vpop.permute.xlu1 %3637 }
 0xcf6   :  { %v3640_v5 = vpop.permute.xlu0 %3639 }
 0xcf7   :  { %v3641_v59 = vsel %vm1642_vm12, %v3638_v28, %v3640_v5  ;;  %v3645_v34 = vmax.f32 %v3634_v61, %v3640_v5 }
 0xcf8   :  { %v3644_v21 = vmax.f32 %v3633_v54, %v3641_v59 }
 0xcf9   :  { %3650 = vrot.lane.b32.xlu0 %v3645_v34, %s4741_s15 }
 0xcfa   :  { %3648 = vrot.lane.b32.xlu1 %v3644_v21, %s4741_s15 }
 0xd6b   :  { %v3651_v2 = vpop.permute.xlu0 %3650 }
 0xd6c   :  { %v3657_v22 = vmax.f32 %v3645_v34, %v3651_v2  ;;  %v3649_v49 = vpop.permute.xlu1 %3648 }
 0xd6d   :  { %v3653_v63 = vsel %vm3652_vm13, %v3649_v49, %v3651_v2 }
 0xd6e   :  { %v3656_v30 = vmax.f32 %v3644_v21, %v3653_v63  ;;  %4072 = vmatprep.mubr.msk.f32.mxu0 %vm3675_vm5, %v3657_v22 }
 0xd70   :  { %3747 = vmatmul.mubr.f32.vlgmr.msra.gmra.mrb[46].mxu0 %v3656_v30 }
 0xd71   :  { %4211 = vmatprep.mubr.msk.f32.mxu0 %vm4735_vm15, %v6413_v55 }
 0xe43   :  { %v3748_v9 = vpop.f32.mrb[46].mxu0 }
 0xe44   :  { %v3753_v15 = vrot.slane %v3748_v9, 1  ;;  %v3750_v4 = vpop.f32.mrb[47].mxu0 }
 0xe46   :  { %v3755_v38 = vmax.f32 %v3748_v9, %v3753_v15 }
 0xe48   :  { %4210 = vmatpush3.msk.msra.mxu0 %vm265_vm9, %v3755_v38 }
 0xe49   :  { %4212 = vmatmul.mubr.msk.f32.vlgmr.msra.gmra.mrb[48].mxu0 %vm3757_vm6, %v3756_v40 }
 0xf1c   :  { %v3830_v39 = vpop.f32.mrb[48].mxu0 }
 0xf1d   :  { %3835 = vst.msk [vmem:[%s6394_s18] sm:$0xf] %vm3834_vm7, %v3830_v39  ;;  %v4213_v0 = vpop.f32.mrb[49].mxu0 }

</bundles_post_ra>
